<compile_context>
chip_gen: v5e
topology: v5e:2x2
jax: 0.10.0
libtpu: 0.0.40
codegen_flags: <defaults>
</compile_context>

<pallas_src>
import functools
import math

import jax
import jax.numpy as jnp
from jax.experimental import pallas as pl
from jax.experimental.pallas import tpu as pltpu

# bf16 for the MXU operands / streamed activations (2x MXU width, half the
# HBM + VMEM traffic).  Gate math & h/c state remain f32 inside the kernel.
MXU_DTYPE = jnp.bfloat16
_SUBLANE = 16 if jnp.dtype(MXU_DTYPE).itemsize == 2 else 8
_LANE = 128


def _round_up(x, m):
    return ((x + m - 1) // m) * m


# ---------------------------------------------------------------------------
# Pallas kernel: one LSTM layer, both directions, time-chunked
# ---------------------------------------------------------------------------
def lstm_layer_kernel(x_ref, wih_ref, whh_ref, b_ref, out_ref,
                      h_ref, c_ref, xw_ref, *, time_chunk, batch_padded):
    """Grid = (2, n_chunks): axis 0 = direction (0 fwd, 1 bwd), axis 1 = chunk.

    x_ref:   (T*Bp, Din)       time-major flattened input chunk (MXU_DTYPE)
    wih_ref: (1, Din, 4Hp)     this direction's W_ih^T (MXU_DTYPE, padded)
    whh_ref: (1, Hp,  4Hp)     this direction's W_hh^T (MXU_DTYPE, padded)
    b_ref:   (1, 1,   4Hp)     b_ih + b_hh (f32, padded)
    out_ref: (T*Bp, Hp)        this direction's column block of the layer out
    h_ref/c_ref: (Bp, Hp) f32  VMEM scratch carried across chunks
    xw_ref:  (T*Bp, 4Hp) f32   VMEM scratch for the hoisted input projection
    """
    d = pl.program_id(0)      # direction: 0 = forward, 1 = backward
    j = pl.program_id(1)      # chunk index in processing order for this dir
    T, Bp = time_chunk, batch_padded
    Hp = h_ref.shape[-1]

    @pl.when(j == 0)
    def _():
        h_ref[...] = jnp.zeros_like(h_ref)
        c_ref[...] = jnp.zeros_like(c_ref)

    # Hoisted input projection: one wide MXU pass for the whole time chunk.
    xw_ref[...] = jnp.dot(x_ref[...], wih_ref[0],
                          preferred_element_type=jnp.float32) + b_ref[0]

    whh = whh_ref[0]                                  # (Hp, 4Hp), MXU_DTYPE

    def step(s, carry):
        h, c = carry
        # Forward processes within-chunk time s; backward processes T-1-s
        # (its chunks are already reversed by the index_map), so per-chunk
        # outputs land back in forward time order.  Scalar offset only --
        # no full-width vector selects, no epilogue concat.
        idx = jnp.where(d == 1, T - 1 - s, s)
        off = pl.multiple_of(idx * Bp, Bp)

        gates = xw_ref[pl.ds(off, Bp), :] + jnp.dot(
            h.astype(whh.dtype), whh, preferred_element_type=jnp.float32)
        i = jax.nn.sigmoid(gates[:, 0 * Hp:1 * Hp])
        f = jax.nn.sigmoid(gates[:, 1 * Hp:2 * Hp])
        g = jnp.tanh(gates[:, 2 * Hp:3 * Hp])
        o = jax.nn.sigmoid(gates[:, 3 * Hp:4 * Hp])
        c = f * c + i * g
        h = o * jnp.tanh(c)
        out_ref[pl.ds(off, Bp), :] = h.astype(out_ref.dtype)
        return h, c

    h, c = jax.lax.fori_loop(0, T, step, (h_ref[...], c_ref[...]), unroll=True)
    h_ref[...] = h
    c_ref[...] = c


# ---------------------------------------------------------------------------
# Wrappers
# ---------------------------------------------------------------------------
def _choose_time_chunk(S, Bp, Din, Hp, *, cap=32, budget=40 << 20):
    """Largest divisor T of S (<= cap) whose per-call VMEM fits the budget.

    Budget is sized for v7x's 64 MiB physical VMEM (also fine on v5e/v6e).
    TODO(synk): pad + mask ragged sequence tails so awkward S doesn't force
    tiny divisors.
    """
    io_item = jnp.dtype(MXU_DTYPE).itemsize
    w_item = jnp.dtype(MXU_DTYPE).itemsize
    # weights double-buffered + h/c scratch (fixed), per-T: x/out chunks
    # (double-buffered) + xw f32 scratch.
    fixed = 2 * (Din * 4 * Hp + Hp * 4 * Hp) * w_item + 2 * Bp * Hp * 4
    per_t = Bp * (2 * Din * io_item + 2 * Hp * io_item + 4 * Hp * 4)

    best = 1
    for t in range(1, min(S, cap) + 1):
        if S % t == 0 and fixed + t * per_t <= budget:
            best = t
    needed = fixed + best * per_t
    vmem_limit = int(min(max(2 * needed, 32 << 20), 56 << 20))
    return best, vmem_limit


def run_lstm_layer(x2, wih2, whh2, b2, *, batch_padded, time_chunk, vmem_limit):
    """x2: (S*Bp, Din) time-major flattened (MXU_DTYPE).

    Returns (S*Bp, 2*Hp) in MXU_DTYPE: [fwd | bwd] per row, forward time
    order -- already the next layer's input layout.
    """
    SBp, Din = x2.shape
    Bp = batch_padded
    S = SBp // Bp
    T = time_chunk
    nc = S // T
    Hp = whh2.shape[1]

    def x_map(dd, jj):
        # backward direction reads chunks in reverse time order
        return (jj * (1 - dd) + (nc - 1 - jj) * dd, 0)

    def out_map(dd, jj):
        # row block = chunk (forward order), column block = direction
        return (jj * (1 - dd) + (nc - 1 - jj) * dd, dd)

    w_map = lambda dd, jj: (dd, 0, 0)

    kernel = functools.partial(lstm_layer_kernel, time_chunk=T,
                               batch_padded=Bp)

    return pl.pallas_call(
        kernel,
        out_shape=jax.ShapeDtypeStruct((SBp, 2 * Hp), MXU_DTYPE),
        grid_spec=pltpu.PrefetchScalarGridSpec(
            num_scalar_prefetch=0,
            grid=(2, nc),
            in_specs=[
                pl.BlockSpec((T * Bp, Din), x_map),
                pl.BlockSpec((1, Din, 4 * Hp), w_map),
                pl.BlockSpec((1, Hp, 4 * Hp), w_map),
                pl.BlockSpec((1, 1, 4 * Hp), w_map),
            ],
            out_specs=pl.BlockSpec((T * Bp, Hp), out_map),
            scratch_shapes=[
                pltpu.VMEM((Bp, Hp), jnp.float32),        # h
                pltpu.VMEM((Bp, Hp), jnp.float32),        # c
                pltpu.VMEM((T * Bp, 4 * Hp), jnp.float32),  # hoisted x@W_ih
            ],
        ),
        compiler_params=pltpu.CompilerParams(
            dimension_semantics=("parallel", "arbitrary"),
            vmem_limit_bytes=vmem_limit),
    )(x2, wih2, whh2, b2)


def lstm_module_forward(text, params):
    """Equivalent of LSTM.forward(text): text (B, S, E) -> (B, 1)."""
    B, S, _ = text.shape
    H = params["hidden_dim"]
    Hp = params["hidden_pad"]
    Bp = _round_up(B, _SUBLANE)          # pad batch to the sublane tile

    x = jnp.transpose(text, (1, 0, 2)).astype(MXU_DTYPE)      # (S, B, E)
    x = jnp.pad(x, ((0, 0), (0, Bp - B), (0, 0)))             # (S, Bp, E)
    x2 = x.reshape(S * Bp, x.shape[-1])                       # time-major flat

    for layer in params["layers"]:
        Din = x2.shape[1]
        T, vmem_limit = _choose_time_chunk(S, Bp, Din, Hp)
        x2 = run_lstm_layer(x2, layer["wihT2"], layer["whhT2"], layer["b2"],
                            batch_padded=Bp, time_chunk=T,
                            vmem_limit=vmem_limit)
        # x2 is (S*Bp, 2*Hp): [fwd | bwd] already concatenated by the kernel.
        # TODO(synk): inter-layer dropout skipped (eval-mode forward applies none).

    last = x2[(S - 1) * Bp:(S - 1) * Bp + B]                  # (B, 2*Hp)
    o = jnp.concatenate([last[:, :H], last[:, Hp:Hp + H]], axis=-1)
    o = o.astype(jnp.float32)
    # Tiny Linear(2H -> 1) head: left to XLA.
    return o @ params["w_lin"].T + params["b_lin_raw"]


# ---------------------------------------------------------------------------
# Parameter init + packing (PyTorch-style uniform(-1/sqrt(H), 1/sqrt(H)))
# ---------------------------------------------------------------------------
def _pad_gate_cols(wT, H, Hp):
    """(din, 4H) -> (din, 4Hp): gate k's H columns land at k*Hp (zeros else)."""
    out = jnp.zeros((wT.shape[0], 4 * Hp), wT.dtype)
    for k in range(4):
        out = out.at[:, k * Hp:k * Hp + H].set(wT[:, k * H:(k + 1) * H])
    return out


def _pad_rows(wT, rows_map, n_rows):
    """Scatter rows of wT into a zero (n_rows, cols) at the given positions."""
    out = jnp.zeros((n_rows, wT.shape[1]), wT.dtype)
    for dst, src in rows_map:
        out = out.at[dst[0]:dst[1]].set(wT[src[0]:src[1]])
    return out


def init_params(key, embedding_dim, hidden_dim, n_layers):
    H = hidden_dim
    Hp = _round_up(H, _LANE)
    k = 1.0 / math.sqrt(H)
    layers = []
    for l in range(n_layers):
        din = embedding_dim if l == 0 else 2 * H
        dirs = {}
        for dname in ("fwd", "bwd"):
            key, k1, k2, k3, k4 = jax.random.split(key, 5)
            w_ih = jax.random.uniform(k1, (4 * H, din), jnp.float32, -k, k)
            w_hh = jax.random.uniform(k2, (4 * H, H), jnp.float32, -k, k)
            b_ih = jax.random.uniform(k3, (4 * H,), jnp.float32, -k, k)
            b_hh = jax.random.uniform(k4, (4 * H,), jnp.float32, -k, k)
            dirs[dname] = {"w_ih": w_ih, "w_hh": w_hh, "b_ih": b_ih, "b_hh": b_hh}

        wih_p, whh_p, b_p = [], [], []
        for dname in ("fwd", "bwd"):
            p = dirs[dname]
            wihT = _pad_gate_cols(p["w_ih"].T, H, Hp)        # (din, 4Hp)
            if l > 0:
                # layer >=1 input is the padded (2*Hp) concat [fwd | bwd]
                wihT = _pad_rows(wihT, [((0, H), (0, H)),
                                        ((Hp, Hp + H), (H, 2 * H))], 2 * Hp)
            whhT = _pad_gate_cols(p["w_hh"].T, H, Hp)        # (H, 4Hp)
            whhT = _pad_rows(whhT, [((0, H), (0, H))], Hp)   # (Hp, 4Hp)
            bias = _pad_gate_cols((p["b_ih"] + p["b_hh"]).reshape(1, -1), H, Hp)
            wih_p.append(wihT)
            whh_p.append(whhT)
            b_p.append(bias)

        layers.append({
            "fwd": dirs["fwd"], "bwd": dirs["bwd"],
            # stacked, transposed, gate/lane-padded weights in MXU_DTYPE
            "wihT2": jnp.stack(wih_p, 0).astype(MXU_DTYPE),
            "whhT2": jnp.stack(whh_p, 0).astype(MXU_DTYPE),
            "b2": jnp.stack(b_p, 0).astype(jnp.float32),
        })

    kl = 1.0 / math.sqrt(2 * H)
    key, k1, k2 = jax.random.split(key, 3)
    w_lin = jax.random.uniform(k1, (1, 2 * H), jnp.float32, -kl, kl)
    b_lin = jax.random.uniform(k2, (1,), jnp.float32, -kl, kl)
    return {"layers": layers, "w_lin": w_lin, "b_lin_raw": b_lin,
            "hidden_dim": H, "hidden_pad": Hp}


# ---------------------------------------------------------------------------
# Pure-JAX reference (mirrors torch.nn.LSTM bidirectional, batch_first),
# using the same MXU_DTYPE casts at the matmul inputs as the kernel path.
# ---------------------------------------------------------------------------
def ref_forward(text, params):
    H = params["hidden_dim"]

    def cell_scan(x_seq, p):
        B = x_seq.shape[1]
        wihT = p["w_ih"].T.astype(MXU_DTYPE)
        whhT = p["w_hh"].T.astype(MXU_DTYPE)
        b = (p["b_ih"] + p["b_hh"]).astype(jnp.float32)

        def step(carry, x_t):
            h, c = carry
            gates = (jnp.dot(x_t, wihT, preferred_element_type=jnp.float32) + b
                     + jnp.dot(h.astype(MXU_DTYPE), whhT,
                               preferred_element_type=jnp.float32))
            i = jax.nn.sigmoid(gates[:, 0 * H:1 * H])
            f = jax.nn.sigmoid(gates[:, 1 * H:2 * H])
            g = jnp.tanh(gates[:, 2 * H:3 * H])
            o = jax.nn.sigmoid(gates[:, 3 * H:4 * H])
            c = f * c + i * g
            h = o * jnp.tanh(c)
            return (h, c), h

        init = (jnp.zeros((B, H), jnp.float32), jnp.zeros((B, H), jnp.float32))
        _, hs = jax.lax.scan(step, init, x_seq)
        return hs  # (S, B, H), f32

    x = jnp.transpose(text, (1, 0, 2)).astype(MXU_DTYPE)
    for layer in params["layers"]:
        hf = cell_scan(x, layer["fwd"])
        hb = cell_scan(x[::-1], layer["bwd"])[::-1]
        x = jnp.concatenate([hf, hb], axis=-1).astype(MXU_DTYPE)
    o = x[-1].astype(jnp.float32)
    return o @ params["w_lin"].T + params["b_lin_raw"]


# ---------------------------------------------------------------------------
if __name__ == "__main__":
    batch, seq = 2, 8
    embedding_dim, hidden_dim, n_layers, dropout = 32, 32, 2, 0.0

    key = jax.random.PRNGKey(0)
    key, pkey, xkey = jax.random.split(key, 3)
    params = init_params(pkey, embedding_dim, hidden_dim, n_layers)
    text = jax.random.normal(xkey, (batch, seq, embedding_dim), jnp.float32)

    out = jax.block_until_ready(lstm_module_forward(text, params))
    ref = jax.block_until_ready(ref_forward(text, params))

    assert out.shape == (batch, 1), out.shape
    # bf16 MXU operands in both paths; remaining deltas are accumulation-order
    # and transcendental-implementation noise, so a loose-but-meaningful tol.
    tol = 1e-4 if MXU_DTYPE == jnp.float32 else 5e-3
    assert jnp.allclose(out, ref, atol=tol, rtol=tol), (out, ref)
    print("KERNEL_OK")
</pallas_src>

<mosaic_0001>
module attributes {stable_mosaic.version = 11 : i64} {
  func.func @lstm_layer_kernel(%arg0: i32, %arg1: i32, %arg2: memref<128x32xbf16, #tpu.memory_space<vmem>>, %arg3: memref<1x32x512xbf16, #tpu.memory_space<vmem>>, %arg4: memref<1x128x512xbf16, #tpu.memory_space<vmem>>, %arg5: memref<1x1x512xf32, #tpu.memory_space<vmem>>, %arg6: memref<128x128xbf16, #tpu.memory_space<vmem>>, %arg7: memref<16x128xf32, #tpu.memory_space<vmem>>, %arg8: memref<16x128xf32, #tpu.memory_space<vmem>>, %arg9: memref<128x512xf32, #tpu.memory_space<vmem>>) attributes {dimension_semantics = [#tpu.dimension_semantics<parallel>, #tpu.dimension_semantics<arbitrary>], iteration_bounds = array<i64: 2, 1>, scalar_prefetch = 0 : i64, scratch_operands = 3 : i64, tpu.core_type = #tpu.core_type<tc>, window_params = [{transform_indices = @transform_0, window_bounds = array<i64: 128, 32>}, {transform_indices = @transform_1, window_bounds = array<i64: 1, 32, 512>}, {transform_indices = @transform_2, window_bounds = array<i64: 1, 128, 512>}, {transform_indices = @transform_3, window_bounds = array<i64: 1, 1, 512>}, {transform_indices = @transform_4, window_bounds = array<i64: 128, 128>}]} {
    %c0_i32 = arith.constant 0 : i32
    %0 = arith.cmpi eq, %arg1, %c0_i32 : i32
    %1 = arith.extui %0 : i1 to i32
    %c0_i32_0 = arith.constant 0 : i32
    %2 = arith.cmpi ne, %1, %c0_i32_0 : i32
    scf.if %2 {
      %cst_93 = arith.constant 0.000000e+00 : f32
      %322 = vector.broadcast %cst_93 : f32 to vector<16x128xf32>
      %c0_94 = arith.constant 0 : index
      %c0_95 = arith.constant 0 : index
      %323 = vector.load %arg7[%c0_94, %c0_95] : memref<16x128xf32, #tpu.memory_space<vmem>>, vector<16x128xf32>
      tpu.vector_store %arg7[%c0_94, %c0_95], %322 {strides = array<i32>} : memref<16x128xf32, #tpu.memory_space<vmem>>, vector<16x128xf32>,
      %cst_96 = arith.constant 0.000000e+00 : f32
      %324 = vector.broadcast %cst_96 : f32 to vector<16x128xf32>
      %c0_97 = arith.constant 0 : index
      %c0_98 = arith.constant 0 : index
      %325 = vector.load %arg8[%c0_97, %c0_98] : memref<16x128xf32, #tpu.memory_space<vmem>>, vector<16x128xf32>
      tpu.vector_store %arg8[%c0_97, %c0_98], %324 {strides = array<i32>} : memref<16x128xf32, #tpu.memory_space<vmem>>, vector<16x128xf32>,
    } else {
    }
    %c0 = arith.constant 0 : index
    %c0_1 = arith.constant 0 : index
    %3 = vector.load %arg2[%c0, %c0_1] : memref<128x32xbf16, #tpu.memory_space<vmem>>, vector<128x32xbf16>
    %c0_2 = arith.constant 0 : index
    %c0_3 = arith.constant 0 : index
    %c0_4 = arith.constant 0 : index
    %4 = vector.load %arg3[%c0_2, %c0_3, %c0_4] : memref<1x32x512xbf16, #tpu.memory_space<vmem>>, vector<1x32x512xbf16>
    %5 = vector.shape_cast %4 : vector<1x32x512xbf16> to vector<32x512xbf16>
    %cst = arith.constant dense<0.000000e+00> : vector<128x512xf32>
    %6 = tpu.matmul %3, %5, %cst {dimension_numbers = #tpu.dot_dimension_numbers<[1], [0], [0], [1], [0, 0, 1, 1], [], []>} : vector<128x32xbf16>, vector<32x512xbf16>, vector<128x512xf32> -> vector<128x512xf32>
    %c0_5 = arith.constant 0 : index
    %c0_6 = arith.constant 0 : index
    %c0_7 = arith.constant 0 : index
    %7 = vector.load %arg5[%c0_5, %c0_6, %c0_7] : memref<1x1x512xf32, #tpu.memory_space<vmem>>, vector<1x1x512xf32>
    %8 = vector.shape_cast %7 : vector<1x1x512xf32> to vector<1x512xf32>
    %9 = vector.broadcast %8 : vector<1x512xf32> to vector<128x512xf32>
    %10 = arith.addf %6, %9 : vector<128x512xf32>
    %c0_8 = arith.constant 0 : index
    %c0_9 = arith.constant 0 : index
    %11 = vector.load %arg9[%c0_8, %c0_9] : memref<128x512xf32, #tpu.memory_space<vmem>>, vector<128x512xf32>
    tpu.vector_store %arg9[%c0_8, %c0_9], %10 {strides = array<i32>} : memref<128x512xf32, #tpu.memory_space<vmem>>, vector<128x512xf32>,
    %c0_10 = arith.constant 0 : index
    %c0_11 = arith.constant 0 : index
    %c0_12 = arith.constant 0 : index
    %12 = vector.load %arg4[%c0_10, %c0_11, %c0_12] : memref<1x128x512xbf16, #tpu.memory_space<vmem>>, vector<1x128x512xbf16>
    %13 = vector.shape_cast %12 : vector<1x128x512xbf16> to vector<128x512xbf16>
    %c0_13 = arith.constant 0 : index
    %c0_14 = arith.constant 0 : index
    %14 = vector.load %arg7[%c0_13, %c0_14] : memref<16x128xf32, #tpu.memory_space<vmem>>, vector<16x128xf32>
    %c0_15 = arith.constant 0 : index
    %c0_16 = arith.constant 0 : index
    %15 = vector.load %arg8[%c0_15, %c0_16] : memref<16x128xf32, #tpu.memory_space<vmem>>, vector<16x128xf32>
    %c0_i32_17 = arith.constant 0 : i32
    %c1_i32 = arith.constant 1 : i32
    %16 = arith.cmpi eq, %arg0, %c1_i32 : i32
    %c7_i32 = arith.constant 7 : i32
    %17 = arith.subi %c7_i32, %c0_i32_17 : i32
    %18 = arith.select %16, %17, %c0_i32_17 : i32
    %c16_i32 = arith.constant 16 : i32
    %19 = arith.muli %18, %c16_i32 : i32
    %20 = tpu.assume_multiple %19, 16 : i32
    %21 = arith.index_cast %20 : i32 to index
    %c0_18 = arith.constant 0 : index
    %22 = vector.load %arg9[%21, %c0_18] : memref<128x512xf32, #tpu.memory_space<vmem>>, vector<16x512xf32>
    %23 = arith.truncf %14 : vector<16x128xf32> to vector<16x128xbf16>
    %cst_19 = arith.constant dense<0.000000e+00> : vector<16x512xf32>
    %24 = tpu.matmul %23, %13, %cst_19 {dimension_numbers = #tpu.dot_dimension_numbers<[1], [0], [0], [1], [0, 0, 1, 1], [], []>} : vector<16x128xbf16>, vector<128x512xbf16>, vector<16x512xf32> -> vector<16x512xf32>
    %25 = arith.addf %22, %24 : vector<16x512xf32>
    %26 = vector.extract_strided_slice %25 {offsets = [0, 0], sizes = [16, 128], strides = [1, 1]} : vector<16x512xf32> to vector<16x128xf32>
    %27 = arith.negf %26 : vector<16x128xf32>
    %28 = math.exp %27 : vector<16x128xf32>
    %cst_20 = arith.constant 1.000000e+00 : f32
    %29 = vector.broadcast %cst_20 : f32 to vector<16x128xf32>
    %30 = arith.addf %29, %28 : vector<16x128xf32>
    %31 = arith.divf %29, %30 : vector<16x128xf32>
    %32 = vector.extract_strided_slice %25 {offsets = [0, 128], sizes = [16, 128], strides = [1, 1]} : vector<16x512xf32> to vector<16x128xf32>
    %33 = arith.negf %32 : vector<16x128xf32>
    %34 = math.exp %33 : vector<16x128xf32>
    %cst_21 = arith.constant 1.000000e+00 : f32
    %35 = vector.broadcast %cst_21 : f32 to vector<16x128xf32>
    %36 = arith.addf %35, %34 : vector<16x128xf32>
    %37 = arith.divf %35, %36 : vector<16x128xf32>
    %38 = vector.extract_strided_slice %25 {offsets = [0, 256], sizes = [16, 128], strides = [1, 1]} : vector<16x512xf32> to vector<16x128xf32>
    %39 = math.tanh %38 : vector<16x128xf32>
    %40 = vector.extract_strided_slice %25 {offsets = [0, 384], sizes = [16, 128], strides = [1, 1]} : vector<16x512xf32> to vector<16x128xf32>
    %41 = arith.negf %40 : vector<16x128xf32>
    %42 = math.exp %41 : vector<16x128xf32>
    %cst_22 = arith.constant 1.000000e+00 : f32
    %43 = vector.broadcast %cst_22 : f32 to vector<16x128xf32>
    %44 = arith.addf %43, %42 : vector<16x128xf32>
    %45 = arith.divf %43, %44 : vector<16x128xf32>
    %46 = arith.mulf %37, %15 : vector<16x128xf32>
    %47 = arith.mulf %31, %39 : vector<16x128xf32>
    %48 = arith.addf %46, %47 : vector<16x128xf32>
    %49 = math.tanh %48 : vector<16x128xf32>
    %50 = arith.mulf %45, %49 : vector<16x128xf32>
    %51 = arith.truncf %50 : vector<16x128xf32> to vector<16x128xbf16>
    %52 = arith.index_cast %20 : i32 to index
    %c0_23 = arith.constant 0 : index
    %53 = vector.load %arg6[%52, %c0_23] : memref<128x128xbf16, #tpu.memory_space<vmem>>, vector<16x128xbf16>
    tpu.vector_store %arg6[%52, %c0_23], %51 {strides = array<i32>} : memref<128x128xbf16, #tpu.memory_space<vmem>>, vector<16x128xbf16>,
    %c1_i32_24 = arith.constant 1 : i32
    %c1_i32_25 = arith.constant 1 : i32
    %54 = arith.cmpi eq, %arg0, %c1_i32_25 : i32
    %c7_i32_26 = arith.constant 7 : i32
    %55 = arith.subi %c7_i32_26, %c1_i32_24 : i32
    %56 = arith.select %54, %55, %c1_i32_24 : i32
    %c16_i32_27 = arith.constant 16 : i32
    %57 = arith.muli %56, %c16_i32_27 : i32
    %58 = tpu.assume_multiple %57, 16 : i32
    %59 = arith.index_cast %58 : i32 to index
    %c0_28 = arith.constant 0 : index
    %60 = vector.load %arg9[%59, %c0_28] : memref<128x512xf32, #tpu.memory_space<vmem>>, vector<16x512xf32>
    %61 = arith.truncf %50 : vector<16x128xf32> to vector<16x128xbf16>
    %cst_29 = arith.constant dense<0.000000e+00> : vector<16x512xf32>
    %62 = tpu.matmul %61, %13, %cst_29 {dimension_numbers = #tpu.dot_dimension_numbers<[1], [0], [0], [1], [0, 0, 1, 1], [], []>} : vector<16x128xbf16>, vector<128x512xbf16>, vector<16x512xf32> -> vector<16x512xf32>
    %63 = arith.addf %60, %62 : vector<16x512xf32>
    %64 = vector.extract_strided_slice %63 {offsets = [0, 0], sizes = [16, 128], strides = [1, 1]} : vector<16x512xf32> to vector<16x128xf32>
    %65 = arith.negf %64 : vector<16x128xf32>
    %66 = math.exp %65 : vector<16x128xf32>
    %cst_30 = arith.constant 1.000000e+00 : f32
    %67 = vector.broadcast %cst_30 : f32 to vector<16x128xf32>
    %68 = arith.addf %67, %66 : vector<16x128xf32>
    %69 = arith.divf %67, %68 : vector<16x128xf32>
    %70 = vector.extract_strided_slice %63 {offsets = [0, 128], sizes = [16, 128], strides = [1, 1]} : vector<16x512xf32> to vector<16x128xf32>
    %71 = arith.negf %70 : vector<16x128xf32>
    %72 = math.exp %71 : vector<16x128xf32>
    %cst_31 = arith.constant 1.000000e+00 : f32
    %73 = vector.broadcast %cst_31 : f32 to vector<16x128xf32>
    %74 = arith.addf %73, %72 : vector<16x128xf32>
    %75 = arith.divf %73, %74 : vector<16x128xf32>
    %76 = vector.extract_strided_slice %63 {offsets = [0, 256], sizes = [16, 128], strides = [1, 1]} : vector<16x512xf32> to vector<16x128xf32>
    %77 = math.tanh %76 : vector<16x128xf32>
    %78 = vector.extract_strided_slice %63 {offsets = [0, 384], sizes = [16, 128], strides = [1, 1]} : vector<16x512xf32> to vector<16x128xf32>
    %79 = arith.negf %78 : vector<16x128xf32>
    %80 = math.exp %79 : vector<16x128xf32>
    %cst_32 = arith.constant 1.000000e+00 : f32
    %81 = vector.broadcast %cst_32 : f32 to vector<16x128xf32>
    %82 = arith.addf %81, %80 : vector<16x128xf32>
    %83 = arith.divf %81, %82 : vector<16x128xf32>
    %84 = arith.mulf %75, %48 : vector<16x128xf32>
    %85 = arith.mulf %69, %77 : vector<16x128xf32>
    %86 = arith.addf %84, %85 : vector<16x128xf32>
    %87 = math.tanh %86 : vector<16x128xf32>
    %88 = arith.mulf %83, %87 : vector<16x128xf32>
    %89 = arith.truncf %88 : vector<16x128xf32> to vector<16x128xbf16>
    %90 = arith.index_cast %58 : i32 to index
    %c0_33 = arith.constant 0 : index
    %91 = vector.load %arg6[%90, %c0_33] : memref<128x128xbf16, #tpu.memory_space<vmem>>, vector<16x128xbf16>
    tpu.vector_store %arg6[%90, %c0_33], %89 {strides = array<i32>} : memref<128x128xbf16, #tpu.memory_space<vmem>>, vector<16x128xbf16>,
    %c2_i32 = arith.constant 2 : i32
    %c1_i32_34 = arith.constant 1 : i32
    %92 = arith.cmpi eq, %arg0, %c1_i32_34 : i32
    %c7_i32_35 = arith.constant 7 : i32
    %93 = arith.subi %c7_i32_35, %c2_i32 : i32
    %94 = arith.select %92, %93, %c2_i32 : i32
    %c16_i32_36 = arith.constant 16 : i32
    %95 = arith.muli %94, %c16_i32_36 : i32
    %96 = tpu.assume_multiple %95, 16 : i32
    %97 = arith.index_cast %96 : i32 to index
    %c0_37 = arith.constant 0 : index
    %98 = vector.load %arg9[%97, %c0_37] : memref<128x512xf32, #tpu.memory_space<vmem>>, vector<16x512xf32>
    %99 = arith.truncf %88 : vector<16x128xf32> to vector<16x128xbf16>
    %cst_38 = arith.constant dense<0.000000e+00> : vector<16x512xf32>
    %100 = tpu.matmul %99, %13, %cst_38 {dimension_numbers = #tpu.dot_dimension_numbers<[1], [0], [0], [1], [0, 0, 1, 1], [], []>} : vector<16x128xbf16>, vector<128x512xbf16>, vector<16x512xf32> -> vector<16x512xf32>
    %101 = arith.addf %98, %100 : vector<16x512xf32>
    %102 = vector.extract_strided_slice %101 {offsets = [0, 0], sizes = [16, 128], strides = [1, 1]} : vector<16x512xf32> to vector<16x128xf32>
    %103 = arith.negf %102 : vector<16x128xf32>
    %104 = math.exp %103 : vector<16x128xf32>
    %cst_39 = arith.constant 1.000000e+00 : f32
    %105 = vector.broadcast %cst_39 : f32 to vector<16x128xf32>
    %106 = arith.addf %105, %104 : vector<16x128xf32>
    %107 = arith.divf %105, %106 : vector<16x128xf32>
    %108 = vector.extract_strided_slice %101 {offsets = [0, 128], sizes = [16, 128], strides = [1, 1]} : vector<16x512xf32> to vector<16x128xf32>
    %109 = arith.negf %108 : vector<16x128xf32>
    %110 = math.exp %109 : vector<16x128xf32>
    %cst_40 = arith.constant 1.000000e+00 : f32
    %111 = vector.broadcast %cst_40 : f32 to vector<16x128xf32>
    %112 = arith.addf %111, %110 : vector<16x128xf32>
    %113 = arith.divf %111, %112 : vector<16x128xf32>
    %114 = vector.extract_strided_slice %101 {offsets = [0, 256], sizes = [16, 128], strides = [1, 1]} : vector<16x512xf32> to vector<16x128xf32>
    %115 = math.tanh %114 : vector<16x128xf32>
    %116 = vector.extract_strided_slice %101 {offsets = [0, 384], sizes = [16, 128], strides = [1, 1]} : vector<16x512xf32> to vector<16x128xf32>
    %117 = arith.negf %116 : vector<16x128xf32>
    %118 = math.exp %117 : vector<16x128xf32>
    %cst_41 = arith.constant 1.000000e+00 : f32
    %119 = vector.broadcast %cst_41 : f32 to vector<16x128xf32>
    %120 = arith.addf %119, %118 : vector<16x128xf32>
    %121 = arith.divf %119, %120 : vector<16x128xf32>
    %122 = arith.mulf %113, %86 : vector<16x128xf32>
    %123 = arith.mulf %107, %115 : vector<16x128xf32>
    %124 = arith.addf %122, %123 : vector<16x128xf32>
    %125 = math.tanh %124 : vector<16x128xf32>
    %126 = arith.mulf %121, %125 : vector<16x128xf32>
    %127 = arith.truncf %126 : vector<16x128xf32> to vector<16x128xbf16>
    %128 = arith.index_cast %96 : i32 to index
    %c0_42 = arith.constant 0 : index
    %129 = vector.load %arg6[%128, %c0_42] : memref<128x128xbf16, #tpu.memory_space<vmem>>, vector<16x128xbf16>
    tpu.vector_store %arg6[%128, %c0_42], %127 {strides = array<i32>} : memref<128x128xbf16, #tpu.memory_space<vmem>>, vector<16x128xbf16>,
    %c3_i32 = arith.constant 3 : i32
    %c1_i32_43 = arith.constant 1 : i32
    %130 = arith.cmpi eq, %arg0, %c1_i32_43 : i32
    %c7_i32_44 = arith.constant 7 : i32
    %131 = arith.subi %c7_i32_44, %c3_i32 : i32
    %132 = arith.select %130, %131, %c3_i32 : i32
    %c16_i32_45 = arith.constant 16 : i32
    %133 = arith.muli %132, %c16_i32_45 : i32
    %134 = tpu.assume_multiple %133, 16 : i32
    %135 = arith.index_cast %134 : i32 to index
    %c0_46 = arith.constant 0 : index
    %136 = vector.load %arg9[%135, %c0_46] : memref<128x512xf32, #tpu.memory_space<vmem>>, vector<16x512xf32>
    %137 = arith.truncf %126 : vector<16x128xf32> to vector<16x128xbf16>
    %cst_47 = arith.constant dense<0.000000e+00> : vector<16x512xf32>
    %138 = tpu.matmul %137, %13, %cst_47 {dimension_numbers = #tpu.dot_dimension_numbers<[1], [0], [0], [1], [0, 0, 1, 1], [], []>} : vector<16x128xbf16>, vector<128x512xbf16>, vector<16x512xf32> -> vector<16x512xf32>
    %139 = arith.addf %136, %138 : vector<16x512xf32>
    %140 = vector.extract_strided_slice %139 {offsets = [0, 0], sizes = [16, 128], strides = [1, 1]} : vector<16x512xf32> to vector<16x128xf32>
    %141 = arith.negf %140 : vector<16x128xf32>
    %142 = math.exp %141 : vector<16x128xf32>
    %cst_48 = arith.constant 1.000000e+00 : f32
    %143 = vector.broadcast %cst_48 : f32 to vector<16x128xf32>
    %144 = arith.addf %143, %142 : vector<16x128xf32>
    %145 = arith.divf %143, %144 : vector<16x128xf32>
    %146 = vector.extract_strided_slice %139 {offsets = [0, 128], sizes = [16, 128], strides = [1, 1]} : vector<16x512xf32> to vector<16x128xf32>
    %147 = arith.negf %146 : vector<16x128xf32>
    %148 = math.exp %147 : vector<16x128xf32>
    %cst_49 = arith.constant 1.000000e+00 : f32
    %149 = vector.broadcast %cst_49 : f32 to vector<16x128xf32>
    %150 = arith.addf %149, %148 : vector<16x128xf32>
    %151 = arith.divf %149, %150 : vector<16x128xf32>
    %152 = vector.extract_strided_slice %139 {offsets = [0, 256], sizes = [16, 128], strides = [1, 1]} : vector<16x512xf32> to vector<16x128xf32>
    %153 = math.tanh %152 : vector<16x128xf32>
    %154 = vector.extract_strided_slice %139 {offsets = [0, 384], sizes = [16, 128], strides = [1, 1]} : vector<16x512xf32> to vector<16x128xf32>
    %155 = arith.negf %154 : vector<16x128xf32>
    %156 = math.exp %155 : vector<16x128xf32>
    %cst_50 = arith.constant 1.000000e+00 : f32
    %157 = vector.broadcast %cst_50 : f32 to vector<16x128xf32>
    %158 = arith.addf %157, %156 : vector<16x128xf32>
    %159 = arith.divf %157, %158 : vector<16x128xf32>
    %160 = arith.mulf %151, %124 : vector<16x128xf32>
    %161 = arith.mulf %145, %153 : vector<16x128xf32>
    %162 = arith.addf %160, %161 : vector<16x128xf32>
    %163 = math.tanh %162 : vector<16x128xf32>
    %164 = arith.mulf %159, %163 : vector<16x128xf32>
    %165 = arith.truncf %164 : vector<16x128xf32> to vector<16x128xbf16>
    %166 = arith.index_cast %134 : i32 to index
    %c0_51 = arith.constant 0 : index
    %167 = vector.load %arg6[%166, %c0_51] : memref<128x128xbf16, #tpu.memory_space<vmem>>, vector<16x128xbf16>
    tpu.vector_store %arg6[%166, %c0_51], %165 {strides = array<i32>} : memref<128x128xbf16, #tpu.memory_space<vmem>>, vector<16x128xbf16>,
    %c4_i32 = arith.constant 4 : i32
    %c1_i32_52 = arith.constant 1 : i32
    %168 = arith.cmpi eq, %arg0, %c1_i32_52 : i32
    %c7_i32_53 = arith.constant 7 : i32
    %169 = arith.subi %c7_i32_53, %c4_i32 : i32
    %170 = arith.select %168, %169, %c4_i32 : i32
    %c16_i32_54 = arith.constant 16 : i32
    %171 = arith.muli %170, %c16_i32_54 : i32
    %172 = tpu.assume_multiple %171, 16 : i32
    %173 = arith.index_cast %172 : i32 to index
    %c0_55 = arith.constant 0 : index
    %174 = vector.load %arg9[%173, %c0_55] : memref<128x512xf32, #tpu.memory_space<vmem>>, vector<16x512xf32>
    %175 = arith.truncf %164 : vector<16x128xf32> to vector<16x128xbf16>
    %cst_56 = arith.constant dense<0.000000e+00> : vector<16x512xf32>
    %176 = tpu.matmul %175, %13, %cst_56 {dimension_numbers = #tpu.dot_dimension_numbers<[1], [0], [0], [1], [0, 0, 1, 1], [], []>} : vector<16x128xbf16>, vector<128x512xbf16>, vector<16x512xf32> -> vector<16x512xf32>
    %177 = arith.addf %174, %176 : vector<16x512xf32>
    %178 = vector.extract_strided_slice %177 {offsets = [0, 0], sizes = [16, 128], strides = [1, 1]} : vector<16x512xf32> to vector<16x128xf32>
    %179 = arith.negf %178 : vector<16x128xf32>
    %180 = math.exp %179 : vector<16x128xf32>
    %cst_57 = arith.constant 1.000000e+00 : f32
    %181 = vector.broadcast %cst_57 : f32 to vector<16x128xf32>
    %182 = arith.addf %181, %180 : vector<16x128xf32>
    %183 = arith.divf %181, %182 : vector<16x128xf32>
    %184 = vector.extract_strided_slice %177 {offsets = [0, 128], sizes = [16, 128], strides = [1, 1]} : vector<16x512xf32> to vector<16x128xf32>
    %185 = arith.negf %184 : vector<16x128xf32>
    %186 = math.exp %185 : vector<16x128xf32>
    %cst_58 = arith.constant 1.000000e+00 : f32
    %187 = vector.broadcast %cst_58 : f32 to vector<16x128xf32>
    %188 = arith.addf %187, %186 : vector<16x128xf32>
    %189 = arith.divf %187, %188 : vector<16x128xf32>
    %190 = vector.extract_strided_slice %177 {offsets = [0, 256], sizes = [16, 128], strides = [1, 1]} : vector<16x512xf32> to vector<16x128xf32>
    %191 = math.tanh %190 : vector<16x128xf32>
    %192 = vector.extract_strided_slice %177 {offsets = [0, 384], sizes = [16, 128], strides = [1, 1]} : vector<16x512xf32> to vector<16x128xf32>
    %193 = arith.negf %192 : vector<16x128xf32>
    %194 = math.exp %193 : vector<16x128xf32>
    %cst_59 = arith.constant 1.000000e+00 : f32
    %195 = vector.broadcast %cst_59 : f32 to vector<16x128xf32>
    %196 = arith.addf %195, %194 : vector<16x128xf32>
    %197 = arith.divf %195, %196 : vector<16x128xf32>
    %198 = arith.mulf %189, %162 : vector<16x128xf32>
    %199 = arith.mulf %183, %191 : vector<16x128xf32>
    %200 = arith.addf %198, %199 : vector<16x128xf32>
    %201 = math.tanh %200 : vector<16x128xf32>
    %202 = arith.mulf %197, %201 : vector<16x128xf32>
    %203 = arith.truncf %202 : vector<16x128xf32> to vector<16x128xbf16>
    %204 = arith.index_cast %172 : i32 to index
    %c0_60 = arith.constant 0 : index
    %205 = vector.load %arg6[%204, %c0_60] : memref<128x128xbf16, #tpu.memory_space<vmem>>, vector<16x128xbf16>
    tpu.vector_store %arg6[%204, %c0_60], %203 {strides = array<i32>} : memref<128x128xbf16, #tpu.memory_space<vmem>>, vector<16x128xbf16>,
    %c5_i32 = arith.constant 5 : i32
    %c1_i32_61 = arith.constant 1 : i32
    %206 = arith.cmpi eq, %arg0, %c1_i32_61 : i32
    %c7_i32_62 = arith.constant 7 : i32
    %207 = arith.subi %c7_i32_62, %c5_i32 : i32
    %208 = arith.select %206, %207, %c5_i32 : i32
    %c16_i32_63 = arith.constant 16 : i32
    %209 = arith.muli %208, %c16_i32_63 : i32
    %210 = tpu.assume_multiple %209, 16 : i32
    %211 = arith.index_cast %210 : i32 to index
    %c0_64 = arith.constant 0 : index
    %212 = vector.load %arg9[%211, %c0_64] : memref<128x512xf32, #tpu.memory_space<vmem>>, vector<16x512xf32>
    %213 = arith.truncf %202 : vector<16x128xf32> to vector<16x128xbf16>
    %cst_65 = arith.constant dense<0.000000e+00> : vector<16x512xf32>
    %214 = tpu.matmul %213, %13, %cst_65 {dimension_numbers = #tpu.dot_dimension_numbers<[1], [0], [0], [1], [0, 0, 1, 1], [], []>} : vector<16x128xbf16>, vector<128x512xbf16>, vector<16x512xf32> -> vector<16x512xf32>
    %215 = arith.addf %212, %214 : vector<16x512xf32>
    %216 = vector.extract_strided_slice %215 {offsets = [0, 0], sizes = [16, 128], strides = [1, 1]} : vector<16x512xf32> to vector<16x128xf32>
    %217 = arith.negf %216 : vector<16x128xf32>
    %218 = math.exp %217 : vector<16x128xf32>
    %cst_66 = arith.constant 1.000000e+00 : f32
    %219 = vector.broadcast %cst_66 : f32 to vector<16x128xf32>
    %220 = arith.addf %219, %218 : vector<16x128xf32>
    %221 = arith.divf %219, %220 : vector<16x128xf32>
    %222 = vector.extract_strided_slice %215 {offsets = [0, 128], sizes = [16, 128], strides = [1, 1]} : vector<16x512xf32> to vector<16x128xf32>
    %223 = arith.negf %222 : vector<16x128xf32>
    %224 = math.exp %223 : vector<16x128xf32>
    %cst_67 = arith.constant 1.000000e+00 : f32
    %225 = vector.broadcast %cst_67 : f32 to vector<16x128xf32>
    %226 = arith.addf %225, %224 : vector<16x128xf32>
    %227 = arith.divf %225, %226 : vector<16x128xf32>
    %228 = vector.extract_strided_slice %215 {offsets = [0, 256], sizes = [16, 128], strides = [1, 1]} : vector<16x512xf32> to vector<16x128xf32>
    %229 = math.tanh %228 : vector<16x128xf32>
    %230 = vector.extract_strided_slice %215 {offsets = [0, 384], sizes = [16, 128], strides = [1, 1]} : vector<16x512xf32> to vector<16x128xf32>
    %231 = arith.negf %230 : vector<16x128xf32>
    %232 = math.exp %231 : vector<16x128xf32>
    %cst_68 = arith.constant 1.000000e+00 : f32
    %233 = vector.broadcast %cst_68 : f32 to vector<16x128xf32>
    %234 = arith.addf %233, %232 : vector<16x128xf32>
    %235 = arith.divf %233, %234 : vector<16x128xf32>
    %236 = arith.mulf %227, %200 : vector<16x128xf32>
    %237 = arith.mulf %221, %229 : vector<16x128xf32>
    %238 = arith.addf %236, %237 : vector<16x128xf32>
    %239 = math.tanh %238 : vector<16x128xf32>
    %240 = arith.mulf %235, %239 : vector<16x128xf32>
    %241 = arith.truncf %240 : vector<16x128xf32> to vector<16x128xbf16>
    %242 = arith.index_cast %210 : i32 to index
    %c0_69 = arith.constant 0 : index
    %243 = vector.load %arg6[%242, %c0_69] : memref<128x128xbf16, #tpu.memory_space<vmem>>, vector<16x128xbf16>
    tpu.vector_store %arg6[%242, %c0_69], %241 {strides = array<i32>} : memref<128x128xbf16, #tpu.memory_space<vmem>>, vector<16x128xbf16>,
    %c6_i32 = arith.constant 6 : i32
    %c1_i32_70 = arith.constant 1 : i32
    %244 = arith.cmpi eq, %arg0, %c1_i32_70 : i32
    %c7_i32_71 = arith.constant 7 : i32
    %245 = arith.subi %c7_i32_71, %c6_i32 : i32
    %246 = arith.select %244, %245, %c6_i32 : i32
    %c16_i32_72 = arith.constant 16 : i32
    %247 = arith.muli %246, %c16_i32_72 : i32
    %248 = tpu.assume_multiple %247, 16 : i32
    %249 = arith.index_cast %248 : i32 to index
    %c0_73 = arith.constant 0 : index
    %250 = vector.load %arg9[%249, %c0_73] : memref<128x512xf32, #tpu.memory_space<vmem>>, vector<16x512xf32>
    %251 = arith.truncf %240 : vector<16x128xf32> to vector<16x128xbf16>
    %cst_74 = arith.constant dense<0.000000e+00> : vector<16x512xf32>
    %252 = tpu.matmul %251, %13, %cst_74 {dimension_numbers = #tpu.dot_dimension_numbers<[1], [0], [0], [1], [0, 0, 1, 1], [], []>} : vector<16x128xbf16>, vector<128x512xbf16>, vector<16x512xf32> -> vector<16x512xf32>
    %253 = arith.addf %250, %252 : vector<16x512xf32>
    %254 = vector.extract_strided_slice %253 {offsets = [0, 0], sizes = [16, 128], strides = [1, 1]} : vector<16x512xf32> to vector<16x128xf32>
    %255 = arith.negf %254 : vector<16x128xf32>
    %256 = math.exp %255 : vector<16x128xf32>
    %cst_75 = arith.constant 1.000000e+00 : f32
    %257 = vector.broadcast %cst_75 : f32 to vector<16x128xf32>
    %258 = arith.addf %257, %256 : vector<16x128xf32>
    %259 = arith.divf %257, %258 : vector<16x128xf32>
    %260 = vector.extract_strided_slice %253 {offsets = [0, 128], sizes = [16, 128], strides = [1, 1]} : vector<16x512xf32> to vector<16x128xf32>
    %261 = arith.negf %260 : vector<16x128xf32>
    %262 = math.exp %261 : vector<16x128xf32>
    %cst_76 = arith.constant 1.000000e+00 : f32
    %263 = vector.broadcast %cst_76 : f32 to vector<16x128xf32>
    %264 = arith.addf %263, %262 : vector<16x128xf32>
    %265 = arith.divf %263, %264 : vector<16x128xf32>
    %266 = vector.extract_strided_slice %253 {offsets = [0, 256], sizes = [16, 128], strides = [1, 1]} : vector<16x512xf32> to vector<16x128xf32>
    %267 = math.tanh %266 : vector<16x128xf32>
    %268 = vector.extract_strided_slice %253 {offsets = [0, 384], sizes = [16, 128], strides = [1, 1]} : vector<16x512xf32> to vector<16x128xf32>
    %269 = arith.negf %268 : vector<16x128xf32>
    %270 = math.exp %269 : vector<16x128xf32>
    %cst_77 = arith.constant 1.000000e+00 : f32
    %271 = vector.broadcast %cst_77 : f32 to vector<16x128xf32>
    %272 = arith.addf %271, %270 : vector<16x128xf32>
    %273 = arith.divf %271, %272 : vector<16x128xf32>
    %274 = arith.mulf %265, %238 : vector<16x128xf32>
    %275 = arith.mulf %259, %267 : vector<16x128xf32>
    %276 = arith.addf %274, %275 : vector<16x128xf32>
    %277 = math.tanh %276 : vector<16x128xf32>
    %278 = arith.mulf %273, %277 : vector<16x128xf32>
    %279 = arith.truncf %278 : vector<16x128xf32> to vector<16x128xbf16>
    %280 = arith.index_cast %248 : i32 to index
    %c0_78 = arith.constant 0 : index
    %281 = vector.load %arg6[%280, %c0_78] : memref<128x128xbf16, #tpu.memory_space<vmem>>, vector<16x128xbf16>
    tpu.vector_store %arg6[%280, %c0_78], %279 {strides = array<i32>} : memref<128x128xbf16, #tpu.memory_space<vmem>>, vector<16x128xbf16>,
    %c7_i32_79 = arith.constant 7 : i32
    %c1_i32_80 = arith.constant 1 : i32
    %282 = arith.cmpi eq, %arg0, %c1_i32_80 : i32
    %c7_i32_81 = arith.constant 7 : i32
    %283 = arith.subi %c7_i32_81, %c7_i32_79 : i32
    %284 = arith.select %282, %283, %c7_i32_79 : i32
    %c16_i32_82 = arith.constant 16 : i32
    %285 = arith.muli %284, %c16_i32_82 : i32
    %286 = tpu.assume_multiple %285, 16 : i32
    %287 = arith.index_cast %286 : i32 to index
    %c0_83 = arith.constant 0 : index
    %288 = vector.load %arg9[%287, %c0_83] : memref<128x512xf32, #tpu.memory_space<vmem>>, vector<16x512xf32>
    %289 = arith.truncf %278 : vector<16x128xf32> to vector<16x128xbf16>
    %cst_84 = arith.constant dense<0.000000e+00> : vector<16x512xf32>
    %290 = tpu.matmul %289, %13, %cst_84 {dimension_numbers = #tpu.dot_dimension_numbers<[1], [0], [0], [1], [0, 0, 1, 1], [], []>} : vector<16x128xbf16>, vector<128x512xbf16>, vector<16x512xf32> -> vector<16x512xf32>
    %291 = arith.addf %288, %290 : vector<16x512xf32>
    %292 = vector.extract_strided_slice %291 {offsets = [0, 0], sizes = [16, 128], strides = [1, 1]} : vector<16x512xf32> to vector<16x128xf32>
    %293 = arith.negf %292 : vector<16x128xf32>
    %294 = math.exp %293 : vector<16x128xf32>
    %cst_85 = arith.constant 1.000000e+00 : f32
    %295 = vector.broadcast %cst_85 : f32 to vector<16x128xf32>
    %296 = arith.addf %295, %294 : vector<16x128xf32>
    %297 = arith.divf %295, %296 : vector<16x128xf32>
    %298 = vector.extract_strided_slice %291 {offsets = [0, 128], sizes = [16, 128], strides = [1, 1]} : vector<16x512xf32> to vector<16x128xf32>
    %299 = arith.negf %298 : vector<16x128xf32>
    %300 = math.exp %299 : vector<16x128xf32>
    %cst_86 = arith.constant 1.000000e+00 : f32
    %301 = vector.broadcast %cst_86 : f32 to vector<16x128xf32>
    %302 = arith.addf %301, %300 : vector<16x128xf32>
    %303 = arith.divf %301, %302 : vector<16x128xf32>
    %304 = vector.extract_strided_slice %291 {offsets = [0, 256], sizes = [16, 128], strides = [1, 1]} : vector<16x512xf32> to vector<16x128xf32>
    %305 = math.tanh %304 : vector<16x128xf32>
    %306 = vector.extract_strided_slice %291 {offsets = [0, 384], sizes = [16, 128], strides = [1, 1]} : vector<16x512xf32> to vector<16x128xf32>
    %307 = arith.negf %306 : vector<16x128xf32>
    %308 = math.exp %307 : vector<16x128xf32>
    %cst_87 = arith.constant 1.000000e+00 : f32
    %309 = vector.broadcast %cst_87 : f32 to vector<16x128xf32>
    %310 = arith.addf %309, %308 : vector<16x128xf32>
    %311 = arith.divf %309, %310 : vector<16x128xf32>
    %312 = arith.mulf %303, %276 : vector<16x128xf32>
    %313 = arith.mulf %297, %305 : vector<16x128xf32>
    %314 = arith.addf %312, %313 : vector<16x128xf32>
    %315 = math.tanh %314 : vector<16x128xf32>
    %316 = arith.mulf %311, %315 : vector<16x128xf32>
    %317 = arith.truncf %316 : vector<16x128xf32> to vector<16x128xbf16>
    %318 = arith.index_cast %286 : i32 to index
    %c0_88 = arith.constant 0 : index
    %319 = vector.load %arg6[%318, %c0_88] : memref<128x128xbf16, #tpu.memory_space<vmem>>, vector<16x128xbf16>
    tpu.vector_store %arg6[%318, %c0_88], %317 {strides = array<i32>} : memref<128x128xbf16, #tpu.memory_space<vmem>>, vector<16x128xbf16>,
    %c8_i32 = arith.constant 8 : i32
    %c0_89 = arith.constant 0 : index
    %c0_90 = arith.constant 0 : index
    %320 = vector.load %arg7[%c0_89, %c0_90] : memref<16x128xf32, #tpu.memory_space<vmem>>, vector<16x128xf32>
    tpu.vector_store %arg7[%c0_89, %c0_90], %316 {strides = array<i32>} : memref<16x128xf32, #tpu.memory_space<vmem>>, vector<16x128xf32>,
    %c0_91 = arith.constant 0 : index
    %c0_92 = arith.constant 0 : index
    %321 = vector.load %arg8[%c0_91, %c0_92] : memref<16x128xf32, #tpu.memory_space<vmem>>, vector<16x128xf32>
    tpu.vector_store %arg8[%c0_91, %c0_92], %314 {strides = array<i32>} : memref<16x128xf32, #tpu.memory_space<vmem>>, vector<16x128xf32>,
    return
  }
  func.func @transform_0(%arg0: i32, %arg1: i32) -> (i32, i32) {
    %c1_i32 = arith.constant 1 : i32
    %0 = arith.subi %c1_i32, %arg0 : i32
    %1 = arith.muli %arg1, %0 : i32
    %c0_i32 = arith.constant 0 : i32
    %2 = arith.subi %c0_i32, %arg1 : i32
    %3 = arith.muli %2, %arg0 : i32
    %4 = arith.addi %1, %3 : i32
    %c0_i32_0 = arith.constant 0 : i32
    %c0_i32_1 = arith.constant 0 : i32
    return %4, %c0_i32_0 : i32, i32
  }
  func.func @transform_1(%arg0: i32, %arg1: i32) -> (i32, i32, i32) {
    %c0_i32 = arith.constant 0 : i32
    %c0_i32_0 = arith.constant 0 : i32
    %c0_i32_1 = arith.constant 0 : i32
    return %arg0, %c0_i32, %c0_i32_0 : i32, i32, i32
  }
  func.func @transform_2(%arg0: i32, %arg1: i32) -> (i32, i32, i32) {
    %c0_i32 = arith.constant 0 : i32
    %c0_i32_0 = arith.constant 0 : i32
    %c0_i32_1 = arith.constant 0 : i32
    return %arg0, %c0_i32, %c0_i32_0 : i32, i32, i32
  }
  func.func @transform_3(%arg0: i32, %arg1: i32) -> (i32, i32, i32) {
    %c0_i32 = arith.constant 0 : i32
    %c0_i32_0 = arith.constant 0 : i32
    %c0_i32_1 = arith.constant 0 : i32
    return %arg0, %c0_i32, %c0_i32_0 : i32, i32, i32
  }
  func.func @transform_4(%arg0: i32, %arg1: i32) -> (i32, i32) {
    %c1_i32 = arith.constant 1 : i32
    %0 = arith.subi %c1_i32, %arg0 : i32
    %1 = arith.muli %arg1, %0 : i32
    %c0_i32 = arith.constant 0 : i32
    %2 = arith.subi %c0_i32, %arg1 : i32
    %3 = arith.muli %2, %arg0 : i32
    %4 = arith.addi %1, %3 : i32
    %c0_i32_0 = arith.constant 0 : i32
    return %4, %arg0 : i32, i32
  }
}

</mosaic_0001>

<bundles_post_ra>
// kernel: tpu_custom_call.1
= control target key start
LH: loop header
LB: loop body
LE: loop exit
PB: predicated region body
PF: predicated region fallthrough
CT: control target
= control target key end

     0   :  { %s4955_s0 = inlined_call_operand.vmem [shape: bf16[128,32], index: 0, kind: input, shape index: {}]   ;;  %s4956_s1 = inlined_call_operand.hbm [shape: bf16[2,32,512], index: 1, kind: input, shape index: {}]   ;;  %s4957_s2 = inlined_call_operand.hbm [shape: bf16[2,128,512], index: 2, kind: input, shape index: {}]   ;;  %s4958_s3 = inlined_call_operand.vmem [shape: f32[2,1,512], index: 3, kind: input, shape index: {}]   ;;  %s4959_s4 = inlined_call_operand.hbm [shape: bf16[128,256], index: 4, kind: output, shape index: {}]  }
   0x1   :  { %4960 = sst [smem:[#allocation14_spill]] %s4956_s1 }
   0x2   :  { %9 = vsyncpa [#allocation6], 0 }
   0x3   :  { %11 = vsyncpa [#allocation6 + $0x1], 0 }
   0x4   :  { %12 = vsyncpa [#allocation9], 0 }
   0x5   :  { %14 = vsyncpa [#allocation9 + $0x1], 0 }
   0x6   :  { %15 = vsyncpa [#allocation7], 0 }
   0x7   :  { %17 = vsyncpa [#allocation7 + $0x1], 0  ;;  %s3820_s15 = smov 0   ;;  %s3822_s16 = smov 0  }
   0x8   :  { %s3824_s17 = smov 0   ;;  %s3826_s18 = smov 0  }
   0x9   :  { %s3828_s19 = smov 0   ;;  %s3830_s20 = smov 0  }
   0xa LB: > { %s2890_s21 = sadd.s32 4294967295, %s3787_s20   ;;  %s2891_s22 = sadd.s32 4294967294, %s3787_s20   ;;  %s3787_s20 = sphi %s3830_s20, %s23_s20   ;;  %s3783_s19 = sphi %s3828_s19, %s4977_s19   ;;  %s3779_s18 = sphi %s3826_s18, %s4976_s18   ;;  %s3775_s17 = sphi %s3824_s17, %s4975_s17   ;;  %s3771_s16 = sphi %s3822_s16, %s4974_s16   ;;  %s3767_s15 = sphi %s3820_s15, %s4973_s15  }
   0xb   : > { %s35_s23 = sadd.s32 1, %s3783_s19  ;;  %s78_s24 = sadd.s32 1, %s3775_s17 }
   0xc   : > { %p37_p0 = scmp.ge.s32.totalorder %s35_s23, 2  ;;  %p85_p1 = scmp.ne.s32.totalorder %s3775_s17, %s3771_s16 }
   0xd   : > { %p86_p2 = scmp.eq.s32.totalorder %s3787_s20, 0  ;;  %p91_p3 = scmp.ne.s32.totalorder %s3771_s16, %s3767_s15 }
   0xe   : > { %s4979_s23 = smov (%p37_p0, %s35_s23), 0  ;;  %p92_p5 = scmp.eq.s32.totalorder %s2890_s21, 0 }
   0xf   : > { %p3861_p4 = por %p86_p2, %p85_p1  ;;  %s75_s26 = ssub.s32 %s3783_s19, %s4979_s23 }
  0x10   : > { %p179_p6 = scmp.eq.s32.totalorder %s2890_s21, 1  ;;  %p76_p7 = scmp.eq.s32.totalorder %s75_s26, 0 }
  0x11   : > { %p3867_p8 = por %p92_p5, %p91_p3  ;;  %p185_p10 = scmp.eq.s32.totalorder %s2891_s22, 1 }
  0x12   : > { %p3871_p9 = por %p179_p6, %p85_p1  ;;  %p2893_p12 = scmp.ge.s32.totalorder %s3787_s20, 2 }
  0x13   : > { %s3876_s29 = scalar_select %p76_p7, %s3775_s17, %s78_s24  }
  0x14   : > { %p3878_p11 = por %p185_p10, %p91_p3  ;;  %p3329_p13 = scmp.lt.s32.totalorder %s3787_s20, 2 }
  0x15   : > { %s3885_s5 = sand.u32 1, %s3775_s17   ;;  %s3214_s7 = sshll.u32 %s3783_s19, 6 }
  0x16   : > { %s2895_s6 = sshll.u32 %s3885_s5, 6  ;;  %s4965_s1 = sld [smem:[#allocation14_spill]] }
  0x17   : > { %s228_s11 = scalar_lea.vmem [#allocation5], %s2895_s6  ;;  %p3894_p0 = pnand %p3329_p13, %p3861_p4 }
  0x18   : > { %s236_s12 = sshll.u32 %s228_s11, 4  ;;  %p2901_p1 = scmp.ge.s32.totalorder %s3787_s20, 1  ;;  %s237_s12 = int_to_ptr.vmem [resolvable:$true] %s236_s12 }
  0x19   : > { %s225_s21 = scalar_lea.sflag [#allocation6], %s3885_s5  ;;  %s3789_s22 = smov 256  }
  0x1a   : > { %s3790_s24 = smov 16   ;;  %p273_p2 = scmp.lt.s32.totalorder %s3787_s20, 3 }
  0x1b   : > { %s2898_s26 = sshll.u32 %s3885_s5, 8  ;;  %s3215_s6 = sshll.u32 %s3783_s19, 8 }
  0x1c   : > { %s233_s10 = scalar_lea.hbm %s4965_s1, %s3214_s7  ;;  %p274_p3 = pnand %p2901_p1, %p273_p2 }
  0x1d   : > { %s234_s13 = sshll.u32 %s233_s10, 4  ;;  %s255_s25 = scalar_lea.hbm %s4957_s2, %s3215_s6  ;;  %s235_s13 = int_to_ptr.hbm [resolvable:$true] %s234_s13 }
  0x1e   : > { %3321 = dma.hbm_to_vmem [thread:$0]  (!%p3894_p0), %s235_s13, 1024, %s237_s12, %s225_s21, %s3789_s22, %s3789_s22, %s3790_s24  }
  0x1f   : > { %s250_s9 = scalar_lea.vmem [#allocation8], %s2898_s26  ;;  %s256_s11 = sshll.u32 %s255_s25, 4  ;;  %s257_s11 = int_to_ptr.hbm [resolvable:$true] %s256_s11 }
  0x20   : > { %s258_s10 = sshll.u32 %s250_s9, 4  ;;  %s247_s1 = scalar_lea.sflag [#allocation9], %s3885_s5  ;;  %s259_s10 = int_to_ptr.vmem [resolvable:$true] %s258_s10 }
  0x21   : > { %3324 = dma.hbm_to_vmem [thread:$0]  (!%p3894_p0), %s257_s11, 4096, %s259_s10, %s247_s1, %s3789_s22, %s3789_s22, %s3790_s24  }
  0x22   : > { %277 = sbr.rel (%p274_p3) target bundleno = 1677 (0x68d), region = 36  ;;  %s3912_s12 = sand.u32 (!%p274_p3), 1, %s3771_s16  }
  0x23   : > { %s2902_s13 = sshll.u32 (!%p274_p3), %s3912_s12, 6  ;;  %s280_s21 = scalar_lea.sflag (!%p274_p3), [#allocation6], %s3912_s12 }
  0x24   : > { %s3918_s6 = scalar_lea.vmem (!%p274_p3), [#allocation5], %s2902_s13 }
  0x27   : > { %3754 = dma.done.wait (%p3867_p8), %s280_s21, 1024  }
  0x28   : > { %3756 = vsyncadd (%p3867_p8), %s280_s21, 4294966272  ;;  %s2903_s1 = sshll.u32 %s3912_s12, 8  ;;  %s290_s5 = scalar_lea.sflag [#allocation9], %s3912_s12 }
  0x29   : > { %s3926_s14 = scalar_lea.vmem [#allocation8], %s2903_s1 }
  0x2a   : > { %3758 = dma.done.wait (%p3867_p8), %s290_s5, 4096  }
  0x2b   : > { %3760 = vsyncadd (%p3867_p8), %s290_s5, 4294963200  ;;  %v2956_v0 = vld [vmem:[%s3918_s6 + $0x20] sm:$0xf]  ;;  %v3230_v1 = vld [vmem:[%s3918_s6 + $0x2c] sm:$0xf0]  ;;  %vm487_vm0 = vcmask 261120  }
  0x2c   : > { %v3228_v2 = vld [vmem:[%s3918_s6 + $0x24] sm:$0xf]  ;;  %v2957_v3 = vor.u32 %v3230_v1, %v2956_v0  ;;  %v2958_v4 = vld [vmem:[%s3918_s6 + $0x30] sm:$0xf0]  ;;  %v2964_v5 = vld [vmem:[%s3918_s6 + $0x28] sm:$0xf] }
  0x2d   : > { %v3231_v6 = vld [vmem:[%s3918_s6 + $0x34] sm:$0xf0]  ;;  %v2961_v7 = vor.u32 %v3228_v2, %v2958_v4  ;;  %v3229_v9 = vld [vmem:[%s3918_s6 + $0x2c] sm:$0xf]  ;;  %v2966_v10 = vld [vmem:[%s3918_s6 + $0x38] sm:$0xf0] }
  0x2e   : > { %v2965_v8 = vor.u32 %v3231_v6, %v2964_v5  ;;  %v2940_v11 = vld [vmem:[%s3918_s6] sm:$0xf]  ;;  %518 = vmatpush.bf16.msra.mxu0 %v2957_v3  ;;  %v2969_v12 = vor.u32 %v3229_v9, %v2966_v10  ;;  %v3226_v13 = vld [vmem:[%s3918_s6 + $0xc] sm:$0xf0]  ;;  %v3224_v14 = vld [vmem:[%s3918_s6 + $0x4] sm:$0xf] }
  0x2f   : > { %v2942_v15 = vld [vmem:[%s3918_s6 + $0x10] sm:$0xf0]  ;;  %567 = vmatpush.bf16.msra.mxu1 %v2961_v7  ;;  %v2941_v16 = vor.u32 %v3226_v13, %v2940_v11  ;;  %v2948_v18 = vld [vmem:[%s3918_s6 + $0x8] sm:$0xf]  ;;  %v3227_v19 = vld [vmem:[%s3918_s6 + $0x14] sm:$0xf0] }
  0x30   : > { %616 = vmatpush.bf16.msra.mxu2 %v2965_v8  ;;  %v2945_v17 = vor.u32 %v3224_v14, %v2942_v15  ;;  %v3225_v20 = vld [vmem:[%s3918_s6 + $0xc] sm:$0xf]  ;;  %665 = vmatpush.bf16.msra.mxu3 %v2969_v12  ;;  %v2949_v21 = vor.u32 %v3227_v19, %v2948_v18  ;;  %v2950_v22 = vld [vmem:[%s3918_s6 + $0x18] sm:$0xf0]  ;;  %v3216_v23 = vld [vmem:[%s4955_s0] sm:$0xff]  ;;  %p354_p4 = scmp.lt.s32.totalorder %s3779_s18, 1 }
  0x31   : > { %v3119_v24 = vld [vmem:[%s3926_s14 + $0xe0] sm:$0xf]  ;;  %v2953_v25 = vor.u32 %v3225_v20, %v2950_v22  ;;  %v3262_v26 = vld [vmem:[%s3926_s14 + $0xec] sm:$0xf0]  ;;  %v3260_v27 = vld [vmem:[%s3926_s14 + $0xe4] sm:$0xf] }
  0x32   : > { %v3121_v28 = vld [vmem:[%s3926_s14 + $0xf0] sm:$0xf0]  ;;  %519 = vmatpush.bf16.msra.mxu0 %v2941_v16  ;;  %v3955_v29 = vor.u32 %v3262_v26, %v3119_v24  ;;  %v3261_v31 = vld [vmem:[%s3926_s14 + $0xec] sm:$0xf]  ;;  %v3129_v32 = vld [vmem:[%s3926_s14 + $0xf8] sm:$0xf0] }
  0x33   : > { %v3957_v30 = vor.u32 %v3260_v27, %v3121_v28  ;;  %v3127_v33 = vld [vmem:[%s3926_s14 + $0xe8] sm:$0xf]  ;;  %568 = vmatpush.bf16.msra.mxu1 %v2945_v17  ;;  %v3263_v34 = vld [vmem:[%s3926_s14 + $0xf4] sm:$0xf0]  ;;  %v3103_v35 = vld [vmem:[%s3926_s14 + $0xc0] sm:$0xf]  ;;  %v3965_v36 = vor.u32 %v3261_v31, %v3129_v32 }
  0x34   : > { %617 = vmatpush.bf16.msra.mxu2 %v2949_v21  ;;  %666 = vmatpush.bf16.msra.mxu3 %v2953_v25  ;;  %v3967_v37 = vor.u32 %v3263_v34, %v3127_v33  ;;  %v3258_v38 = vld [vmem:[%s3926_s14 + $0xcc] sm:$0xf0]  ;;  %v3256_v39 = vld [vmem:[%s3926_s14 + $0xc4] sm:$0xf]  ;;  %v3105_v40 = vld [vmem:[%s3926_s14 + $0xd0] sm:$0xf0] }
  0x35   : > { %2970 = vmatmul.msk.bf16.vlgmr.msra.gmra.mxu0 %vm487_vm0, %v3216_v23  ;;  %v3974_v41 = vor.u32 %v3258_v38, %v3103_v35  ;;  %v3976_v42 = vor.u32 %v3256_v39, %v3105_v40  ;;  %v3257_v43 = vld [vmem:[%s3926_s14 + $0xcc] sm:$0xf]  ;;  %v3113_v44 = vld [vmem:[%s3926_s14 + $0xd8] sm:$0xf0]  ;;  %v3111_v45 = vld [vmem:[%s3926_s14 + $0xc8] sm:$0xf] }
  0x36   : > { %985 = vmatpush.bf16.msrb.mxu0 %v3955_v29  ;;  %2978 = vmatmul.msk.bf16.vlgmr.msra.gmra.mxu1 %vm487_vm0, %v3216_v23  ;;  %v3259_v46 = vld [vmem:[%s3926_s14 + $0xd4] sm:$0xf0]  ;;  %v3087_v48 = vld [vmem:[%s3926_s14 + $0xa0] sm:$0xf]  ;;  %v3254_v49 = vld [vmem:[%s3926_s14 + $0xac] sm:$0xf0]  ;;  %v3993_v51 = vor.u32 %v3257_v43, %v3113_v44 }
  0x37   : > { %999 = vmatpush.bf16.msrb.mxu1 %v3957_v30  ;;  %2986 = vmatmul.msk.bf16.vlgmr.msra.gmra.mxu2 %vm487_vm0, %v3216_v23  ;;  %v3986_v47 = vor.u32 %v3259_v46, %v3111_v45  ;;  %v3252_v50 = vld [vmem:[%s3926_s14 + $0xa4] sm:$0xf]  ;;  %v3995_v52 = vor.u32 %v3254_v49, %v3087_v48  ;;  %v3089_v53 = vld [vmem:[%s3926_s14 + $0xb0] sm:$0xf0]  ;;  %v3253_v54 = vld [vmem:[%s3926_s14 + $0xac] sm:$0xf] }
  0x38   : > { %2994 = vmatmul.msk.bf16.vlgmr.msra.gmra.mxu3 %vm487_vm0, %v3216_v23  ;;  %1013 = vmatpush.bf16.msrb.mxu2 %v3967_v37  ;;  %v4000_v55 = vor.u32 %v3252_v50, %v3089_v53  ;;  %v3097_v56 = vld [vmem:[%s3926_s14 + $0xb8] sm:$0xf0]  ;;  %v3095_v57 = vld [vmem:[%s3926_s14 + $0xa8] sm:$0xf]  ;;  %v3255_v58 = vld [vmem:[%s3926_s14 + $0xb4] sm:$0xf0] }
  0x39   : > { %1027 = vmatpush.bf16.msrb.mxu3 %v3965_v36  ;;  %v4006_v59 = vor.u32 %v3255_v58, %v3095_v57  ;;  %v4010_v60 = vor.u32 %v3253_v54, %v3097_v56  ;;  %v3217_v61 = vld [vmem:[%s4955_s0 + $0x8] sm:$0xff]  ;;  %v3071_v62 = vld [vmem:[%s3926_s14 + $0x80] sm:$0xf]  ;;  %v3250_v63 = vld [vmem:[%s3926_s14 + $0x8c] sm:$0xf0]  ;;  %s355_s22 = scalar_select %p354_p4, %s3779_s18, 1 }
  0x3a   : > { %986 = vmatpush.bf16.msrb.mxu0 %v3974_v41  ;;  %v3248_v0 = vld [vmem:[%s3926_s14 + $0x84] sm:$0xf]  ;;  %v4025_v1 = vor.u32 %v3250_v63, %v3071_v62  ;;  %v3073_v2 = vld [vmem:[%s3926_s14 + $0x90] sm:$0xf0]  ;;  %v3249_v3 = vld [vmem:[%s3926_s14 + $0x8c] sm:$0xf] }
  0x3b   : > { %1000 = vmatpush.bf16.msrb.mxu1 %v3976_v42  ;;  %v3081_v4 = vld [vmem:[%s3926_s14 + $0x98] sm:$0xf0]  ;;  %v4030_v5 = vor.u32 %v3248_v0, %v3073_v2  ;;  %v3079_v7 = vld [vmem:[%s3926_s14 + $0x88] sm:$0xf]  ;;  %v3251_v8 = vld [vmem:[%s3926_s14 + $0x94] sm:$0xf0] }
  0x3c   : > { %1014 = vmatpush.bf16.msrb.mxu2 %v3986_v47  ;;  %v4032_v6 = vor.u32 %v3249_v3, %v3081_v4  ;;  %v4037_v9 = vor.u32 %v3251_v8, %v3079_v7  ;;  %v3218_v10 = vld [vmem:[%s4955_s0 + $0x10] sm:$0xff]  ;;  %v3055_v11 = vld [vmem:[%s3926_s14 + $0x60] sm:$0xf]  ;;  %v3244_v13 = vld [vmem:[%s3926_s14 + $0x64] sm:$0xf]  ;;  %s2905_s24 = sshll.u32 %s355_s22, 2 }
  0x3d   : > { %1028 = vmatpush.bf16.msrb.mxu3 %v3993_v51  ;;  %v3246_v12 = vld [vmem:[%s3926_s14 + $0x6c] sm:$0xf0]  ;;  %v3057_v15 = vld [vmem:[%s3926_s14 + $0x70] sm:$0xf0]  ;;  %v3245_v16 = vld [vmem:[%s3926_s14 + $0x6c] sm:$0xf]  ;;  %s357_s8 = scalar_lea.vmem %s4958_s3, %s2905_s24 }
  0x3e   : > { %987 = vmatpush.bf16.msrb.mxu0 %v3995_v52  ;;  %v4052_v14 = vor.u32 %v3246_v12, %v3055_v11  ;;  %v3065_v17 = vld [vmem:[%s3926_s14 + $0x78] sm:$0xf0]  ;;  %v4057_v18 = vor.u32 %v3244_v13, %v3057_v15  ;;  %v3063_v20 = vld [vmem:[%s3926_s14 + $0x68] sm:$0xf]  ;;  %v3247_v21 = vld [vmem:[%s3926_s14 + $0x74] sm:$0xf0] }
  0x3f   : > { %1001 = vmatpush.bf16.msrb.mxu1 %v4000_v55  ;;  %v4059_v19 = vor.u32 %v3245_v16, %v3065_v17  ;;  %v4064_v22 = vor.u32 %v3247_v21, %v3063_v20  ;;  %v3219_v23 = vld [vmem:[%s4955_s0 + $0x18] sm:$0xff]  ;;  %v3039_v24 = vld [vmem:[%s3926_s14 + $0x40] sm:$0xf]  ;;  %v3242_v25 = vld [vmem:[%s3926_s14 + $0x4c] sm:$0xf0]  ;;  %p808_p5 = scmp.eq.s32.totalorder %s3779_s18, 1 }
  0x40   : > { %1015 = vmatpush.bf16.msrb.mxu2 %v4006_v59  ;;  %v3240_v26 = vld [vmem:[%s3926_s14 + $0x44] sm:$0xf]  ;;  %v4079_v27 = vor.u32 %v3242_v25, %v3039_v24  ;;  %v3041_v28 = vld [vmem:[%s3926_s14 + $0x50] sm:$0xf0]  ;;  %v3241_v31 = vld [vmem:[%s3926_s14 + $0x4c] sm:$0xf] }
  0x41   : > { %1029 = vmatpush.bf16.msrb.mxu3 %v4010_v60  ;;  %v3049_v32 = vld [vmem:[%s3926_s14 + $0x58] sm:$0xf0]  ;;  %v4084_v33 = vor.u32 %v3240_v26, %v3041_v28  ;;  %v3047_v35 = vld [vmem:[%s3926_s14 + $0x48] sm:$0xf]  ;;  %v3243_v38 = vld [vmem:[%s3926_s14 + $0x54] sm:$0xf0] }
  0x42   : > { %988 = vmatpush.bf16.msrb.mxu0 %v4025_v1  ;;  %v4086_v34 = vor.u32 %v3241_v31, %v3049_v32  ;;  %v4091_v39 = vor.u32 %v3243_v38, %v3047_v35  ;;  %v3220_v40 = vld [vmem:[%s4955_s0 + $0x20] sm:$0xff]  ;;  %v3238_v44 = vld [vmem:[%s3926_s14 + $0x2c] sm:$0xf0]  ;;  %v3025_v48 = vld [vmem:[%s3926_s14 + $0x30] sm:$0xf0]  ;;  %v3791_v28 = vmov 0.0|0.0  }
  0x43   : > { %1002 = vmatpush.bf16.msrb.mxu1 %v4030_v5  ;;  %v3023_v43 = vld [vmem:[%s3926_s14 + $0x20] sm:$0xf]  ;;  %v3236_v45 = vld [vmem:[%s3926_s14 + $0x24] sm:$0xf]  ;;  %v3237_v49 = vld [vmem:[%s3926_s14 + $0x2c] sm:$0xf] }
  0x44   : > { %1016 = vmatpush.bf16.msrb.mxu2 %v4037_v9  ;;  %v4106_v46 = vor.u32 %v3238_v44, %v3023_v43  ;;  %v3033_v50 = vld [vmem:[%s3926_s14 + $0x38] sm:$0xf0]  ;;  %v4111_v53 = vor.u32 %v3236_v45, %v3025_v48  ;;  %v3031_v56 = vld [vmem:[%s3926_s14 + $0x28] sm:$0xf]  ;;  %v3239_v57 = vld [vmem:[%s3926_s14 + $0x34] sm:$0xf0] }
  0x45   : > { %2971 = vmatmul.msk.bf16.gmra.mxu0 %vm487_vm0, %v3217_v61  ;;  %1030 = vmatpush.bf16.msrb.mxu3 %v4032_v6  ;;  %v4113_v54 = vor.u32 %v3237_v49, %v3033_v50  ;;  %v4118_v58 = vor.u32 %v3239_v57, %v3031_v56  ;;  %v3007_v62 = vld [vmem:[%s3926_s14] sm:$0xf]  ;;  %v3234_v63 = vld [vmem:[%s3926_s14 + $0xc] sm:$0xf0]  ;;  %v3232_v0 = vld [vmem:[%s3926_s14 + $0x4] sm:$0xf] }
  0x46   : > { %2979 = vmatmul.msk.bf16.gmra.mxu1 %vm487_vm0, %v3217_v61  ;;  %989 = vmatpush.bf16.msrb.mxu0 %v4052_v14  ;;  %v4133_v2 = vor.u32 %v3234_v63, %v3007_v62  ;;  %v3009_v3 = vld [vmem:[%s3926_s14 + $0x10] sm:$0xf0]  ;;  %v3233_v4 = vld [vmem:[%s3926_s14 + $0xc] sm:$0xf]  ;;  %v3017_v7 = vld [vmem:[%s3926_s14 + $0x18] sm:$0xf0] }
  0x47   : > { %2987 = vmatmul.msk.bf16.gmra.mxu2 %vm487_vm0, %v3217_v61  ;;  %1003 = vmatpush.bf16.msrb.mxu1 %v4057_v18  ;;  %v4138_v8 = vor.u32 %v3232_v0, %v3009_v3  ;;  %v3222_v11 = vld [vmem:[%s4955_s0 + $0x30] sm:$0xff]  ;;  %v3015_v12 = vld [vmem:[%s3926_s14 + $0x8] sm:$0xf]  ;;  %v3235_v13 = vld [vmem:[%s3926_s14 + $0x14] sm:$0xf0]  ;;  %s4368_s1 = scalar_lea.vmem [#allocation10], %s2902_s13 }
  0x48   : > { %2995 = vmatmul.msk.bf16.gmra.mxu3 %vm487_vm0, %v3217_v61  ;;  %1017 = vmatpush.bf16.msrb.mxu2 %v4064_v22  ;;  %v3221_v61 = vld [vmem:[%s4955_s0 + $0x28] sm:$0xff]  ;;  %v4156_v15 = vor.u32 %v3235_v13, %v3015_v12  ;;  %v3223_v16 = vld [vmem:[%s4955_s0 + $0x38] sm:$0xff]  ;;  %v397_v17 = vld [vmem:[%s357_s8] sm:$0xf]  ;;  %s809_s25 = scalar_select %p808_p5, 7, 0 }
  0x49   : > { %1031 = vmatpush.bf16.msrb.mxu3 %v4059_v19  ;;  %v4200_v20 = vperm.slane %v397_v17, 0  ;;  %v4202_v21 = vperm.slane %v397_v17, 1  ;;  %v4207_v31 = vperm.slane %v397_v17, 2  ;;  %v4209_v32 = vperm.slane %v397_v17, 3  ;;  %s1181_s13 = scalar_select %p808_p5, 6, 1 }
  0x4a   : > { %990 = vmatpush.bf16.msrb.mxu0 %v4079_v27  ;;  %s3002_s9 = sshll.u32 %s809_s25, 4 }
  0x4b   : > { %1004 = vmatpush.bf16.msrb.mxu1 %v4084_v33  ;;  %s4302_s10 = sshra.s32 %s3002_s9, 3  ;;  %s3140_s14 = sshll.u32 %s1181_s13, 4 }
  0x4c   : > { %1018 = vmatpush.bf16.msrb.mxu2 %v4091_v39  ;;  %s3264_s11 = sshll.u32 %s4302_s10, 5  ;;  %s3139_s6 = sshll.u32 %s4302_s10, 2 }
  0x4d   : > { %1032 = vmatpush.bf16.msrb.mxu3 %v4086_v34  ;;  %s4310_s21 = scalar_lea.vmem [#allocation4], %s3264_s11  ;;  %s1178_s5 = scalar_lea.vmem %s4368_s1, %s3139_s6 [#allocation10] }
  0x4e   : > { %991 = vmatpush.bf16.msrb.mxu0 %v4106_v46  ;;  %s4405_s27 = sshra.s32 %s3140_s14, 3 }
  0x4f   : > { %1005 = vmatpush.bf16.msrb.mxu1 %v4111_v53  ;;  %s3265_s22 = sshll.u32 %s4405_s27, 5  ;;  %s3149_s26 = sshll.u32 %s4405_s27, 2 }
  0x50   : > { %1019 = vmatpush.bf16.msrb.mxu2 %v4118_v58  ;;  %s4408_s24 = scalar_lea.vmem [#allocation4], %s3265_s22  ;;  %s1395_s7 = scalar_lea.vmem %s4368_s1, %s3149_s26 [#allocation10] }
  0x51   : > { %1033 = vmatpush.bf16.msrb.mxu3 %v4113_v54  ;;  %s1398_s8 = scalar_select %p808_p5, 5, 2 }
  0x52   : > { %992 = vmatpush.bf16.msrb.mxu0 %v4133_v2 }
  0x53   : > { %1006 = vmatpush.bf16.msrb.mxu1 %v4138_v8  ;;  %s3150_s25 = sshll.u32 %s1398_s8, 4 }
  0x54   : > { %1020 = vmatpush.bf16.msrb.mxu2 %v4156_v15  ;;  %s4490_s9 = sshra.s32 %s3150_s25, 3 }
  0x55   : > { %2972 = vmatmul.msk.bf16.gmra.mxu0 %vm487_vm0, %v3218_v10  ;;  %s3266_s10 = sshll.u32 %s4490_s9, 5 }
  0x56   : > { %2980 = vmatmul.msk.bf16.gmra.mxu1 %vm487_vm0, %v3218_v10  ;;  %1202 = vmatpush.bf16.msra.mxu0 %v3955_v29  ;;  %s4493_s11 = scalar_lea.vmem [#allocation4], %s3266_s10 }
  0x57   : > { %2988 = vmatmul.msk.bf16.gmra.mxu2 %vm487_vm0, %v3218_v10  ;;  %1216 = vmatpush.bf16.msra.mxu1 %v3957_v30 }
  0x58   : > { %2996 = vmatmul.msk.bf16.gmra.mxu3 %vm487_vm0, %v3218_v10  ;;  %v4140_v10 = vor.u32 %v3233_v4, %v3017_v7  ;;  %1230 = vmatpush.bf16.msra.mxu2 %v3967_v37 }
  0x5a   : > { %1034 = vmatpush.bf16.msrb.mxu3 %v4140_v10  ;;  %1203 = vmatpush.bf16.msra.mxu0 %v3974_v41 }
  0x5b   : > { %1217 = vmatpush.bf16.msra.mxu1 %v3976_v42 }
  0x5c   : > { %1231 = vmatpush.bf16.msra.mxu2 %v3986_v47 }
  0x5e   : > { %1244 = vmatpush.bf16.msra.mxu3 %v3965_v36  ;;  %1204 = vmatpush.bf16.msra.mxu0 %v3995_v52 }
  0x5f   : > { %1218 = vmatpush.bf16.msra.mxu1 %v4000_v55 }
  0x60   : > { %1232 = vmatpush.bf16.msra.mxu2 %v4006_v59 }
  0x62   : > { %1245 = vmatpush.bf16.msra.mxu3 %v3993_v51  ;;  %1205 = vmatpush.bf16.msra.mxu0 %v4025_v1 }
  0x63   : > { %1219 = vmatpush.bf16.msra.mxu1 %v4030_v5 }
  0x64   : > { %1233 = vmatpush.bf16.msra.mxu2 %v4037_v9 }
  0x65   : > { %2973 = vmatmul.msk.bf16.gmra.mxu0 %vm487_vm0, %v3219_v23 }
  0x66   : > { %2981 = vmatmul.msk.bf16.gmra.mxu1 %vm487_vm0, %v3219_v23  ;;  %1246 = vmatpush.bf16.msra.mxu3 %v4010_v60 }
  0x67   : > { %2989 = vmatmul.msk.bf16.gmra.mxu2 %vm487_vm0, %v3219_v23  ;;  %1206 = vmatpush.bf16.msra.mxu0 %v4052_v14 }
  0x68   : > { %2997 = vmatmul.msk.bf16.gmra.mxu3 %vm487_vm0, %v3219_v23  ;;  %1220 = vmatpush.bf16.msra.mxu1 %v4057_v18 }
  0x69   : > { %1234 = vmatpush.bf16.msra.mxu2 %v4064_v22 }
  0x6a   : > { %1247 = vmatpush.bf16.msra.mxu3 %v4032_v6 }
  0x6b   : > { %1207 = vmatpush.bf16.msra.mxu0 %v4079_v27 }
  0x6c   : > { %1221 = vmatpush.bf16.msra.mxu1 %v4084_v33 }
  0x6d   : > { %1235 = vmatpush.bf16.msra.mxu2 %v4091_v39 }
  0x6e   : > { %1248 = vmatpush.bf16.msra.mxu3 %v4059_v19 }
  0x6f   : > { %1208 = vmatpush.bf16.msra.mxu0 %v4106_v46 }
  0x70   : > { %1222 = vmatpush.bf16.msra.mxu1 %v4111_v53 }
  0x71   : > { %1236 = vmatpush.bf16.msra.mxu2 %v4118_v58 }
  0x72   : > { %1249 = vmatpush.bf16.msra.mxu3 %v4086_v34 }
  0x73   : > { %1209 = vmatpush.bf16.msra.mxu0 %v4133_v2 }
  0x74   : > { %1223 = vmatpush.bf16.msra.mxu1 %v4138_v8 }
  0x75   : > { %2974 = vmatmul.msk.bf16.gmra.mxu0 %vm487_vm0, %v3220_v40  ;;  %1237 = vmatpush.bf16.msra.mxu2 %v4156_v15 }
  0x76   : > { %2982 = vmatmul.msk.bf16.gmra.mxu1 %vm487_vm0, %v3220_v40  ;;  %1250 = vmatpush.bf16.msra.mxu3 %v4113_v54 }
  0x77   : > { %2990 = vmatmul.msk.bf16.gmra.mxu2 %vm487_vm0, %v3220_v40 }
  0x78   : > { %2998 = vmatmul.msk.bf16.gmra.mxu3 %vm487_vm0, %v3220_v40 }
  0x7a   : > { %1251 = vmatpush.bf16.msra.mxu3 %v4140_v10 }
  0x85   : > { %2975 = vmatmul.msk.bf16.gmra.mxu0 %vm487_vm0, %v3221_v61 }
  0x86   : > { %2983 = vmatmul.msk.bf16.gmra.mxu1 %vm487_vm0, %v3221_v61 }
  0x87   : > { %2991 = vmatmul.msk.bf16.gmra.mxu2 %vm487_vm0, %v3221_v61 }
  0x88   : > { %2999 = vmatmul.msk.bf16.gmra.mxu3 %vm487_vm0, %v3221_v61 }
  0x95   : > { %2976 = vmatmul.msk.bf16.gmra.mxu0 %vm487_vm0, %v3222_v11 }
  0x96   : > { %2984 = vmatmul.msk.bf16.gmra.mxu1 %vm487_vm0, %v3222_v11 }
  0x97   : > { %2992 = vmatmul.msk.bf16.gmra.mxu2 %vm487_vm0, %v3222_v11 }
  0x98   : > { %3000 = vmatmul.msk.bf16.gmra.mxu3 %vm487_vm0, %v3222_v11 }
  0xa5   : > { %2977 = vmatmul.msk.bf16.gmra.mxu0 %vm487_vm0, %v3223_v16 }
  0xa6   : > { %2985 = vmatmul.msk.bf16.gmra.mxu1 %vm487_vm0, %v3223_v16 }
  0xa7   : > { %2993 = vmatmul.msk.bf16.gmra.mxu2 %vm487_vm0, %v3223_v16 }
  0xa8   : > { %3001 = vmatmul.msk.bf16.gmra.mxu3 %vm487_vm0, %v3223_v16 }
  0xb2   : > { %v521_v23 = vpop.f32.mrf.mxu0 }
  0xb3   : > { %v522_v24 = vadd.f32 %v521_v23, %v4200_v20  ;;  %v570_v25 = vpop.f32.mrf.mxu1 }
  0xb4   : > { %v571_v26 = vadd.f32 %v570_v25, %v4202_v21 }
  0xb5   : > { %708 = vst [vmem:[#allocation4] sm:$0xff] %v522_v24  ;;  %993 = vmatmul.bf16.vlgmr.msrb.gmra.mxu0 %v3791_v28 }
  0xb6   : > { %709 = vst [vmem:[#allocation4 + $0x8] sm:$0xff] %v571_v26  ;;  %1007 = vmatmul.bf16.vlgmr.msrb.gmra.mxu1 %v3791_v28  ;;  %1419 = vmatpush.bf16.msrb.mxu0 %v3955_v29 }
  0xb7   : > { %1021 = vmatmul.bf16.vlgmr.msrb.gmra.mxu2 %v3791_v28  ;;  %1433 = vmatpush.bf16.msrb.mxu1 %v3957_v30 }
  0xb8   : > { %1035 = vmatmul.bf16.vlgmr.msrb.gmra.mxu3 %v3791_v28  ;;  %1447 = vmatpush.bf16.msrb.mxu2 %v3967_v37 }
  0xb9   : > { %1461 = vmatpush.bf16.msrb.mxu3 %v3965_v36 }
  0xba   : > { %v619_v35 = vpop.f32.mrf.mxu2  ;;  %v523_v43 = vpop.f32.mrf.mxu0  ;;  %1420 = vmatpush.bf16.msrb.mxu0 %v3974_v41 }
  0xbb   : > { %v620_v38 = vadd.f32 %v619_v35, %v4207_v31  ;;  %v668_v40 = vpop.f32.mrf.mxu3  ;;  %v524_v45 = vadd.f32 %v523_v43, %v4200_v20  ;;  %v572_v48 = vpop.f32.mrf.mxu1  ;;  %1434 = vmatpush.bf16.msrb.mxu1 %v3976_v42 }
  0xbc   : > { %v669_v44 = vadd.f32 %v668_v40, %v4209_v32  ;;  %v573_v49 = vadd.f32 %v572_v48, %v4202_v21  ;;  %1448 = vmatpush.bf16.msrb.mxu2 %v3986_v47 }
  0xbd   : > { %710 = vst [vmem:[#allocation4 + $0x10] sm:$0xff] %v620_v38  ;;  %1462 = vmatpush.bf16.msrb.mxu3 %v3993_v51 }
  0xbe   : > { %711 = vst [vmem:[#allocation4 + $0x18] sm:$0xff] %v669_v44  ;;  %1421 = vmatpush.bf16.msrb.mxu0 %v3995_v52 }
  0xbf   : > { %712 = vst [vmem:[#allocation4 + $0x20] sm:$0xff] %v524_v45  ;;  %1435 = vmatpush.bf16.msrb.mxu1 %v4000_v55 }
  0xc0   : > { %713 = vst [vmem:[#allocation4 + $0x28] sm:$0xff] %v573_v49  ;;  %1449 = vmatpush.bf16.msrb.mxu2 %v4006_v59 }
  0xc1   : > { %1463 = vmatpush.bf16.msrb.mxu3 %v4010_v60 }
  0xc2   : > { %v621_v50 = vpop.f32.mrf.mxu2  ;;  %v526_v61 = vpop.f32.mrf.mxu0  ;;  %1422 = vmatpush.bf16.msrb.mxu0 %v4025_v1 }
  0xc3   : > { %v622_v56 = vadd.f32 %v621_v50, %v4207_v31  ;;  %v670_v57 = vpop.f32.mrf.mxu3  ;;  %v527_v63 = vadd.f32 %v526_v61, %v4200_v20  ;;  %v575_v0 = vpop.f32.mrf.mxu1  ;;  %1436 = vmatpush.bf16.msrb.mxu1 %v4030_v5 }
  0xc4   : > { %v671_v62 = vadd.f32 %v670_v57, %v4209_v32  ;;  %v576_v3 = vadd.f32 %v575_v0, %v4202_v21  ;;  %1450 = vmatpush.bf16.msrb.mxu2 %v4037_v9 }
  0xc5   : > { %714 = vst [vmem:[#allocation4 + $0x30] sm:$0xff] %v622_v56  ;;  %1464 = vmatpush.bf16.msrb.mxu3 %v4032_v6 }
  0xc6   : > { %715 = vst [vmem:[#allocation4 + $0x38] sm:$0xff] %v671_v62  ;;  %1423 = vmatpush.bf16.msrb.mxu0 %v4052_v14 }
  0xc7   : > { %716 = vst [vmem:[#allocation4 + $0x40] sm:$0xff] %v527_v63  ;;  %1437 = vmatpush.bf16.msrb.mxu1 %v4057_v18 }
  0xc8   : > { %717 = vst [vmem:[#allocation4 + $0x48] sm:$0xff] %v576_v3  ;;  %1451 = vmatpush.bf16.msrb.mxu2 %v4064_v22 }
  0xc9   : > { %1465 = vmatpush.bf16.msrb.mxu3 %v4059_v19 }
  0xca   : > { %v624_v4 = vpop.f32.mrf.mxu2  ;;  %v528_v12 = vpop.f32.mrf.mxu0  ;;  %1424 = vmatpush.bf16.msrb.mxu0 %v4079_v27 }
  0xcb   : > { %v625_v7 = vadd.f32 %v624_v4, %v4207_v31  ;;  %v673_v11 = vpop.f32.mrf.mxu3  ;;  %v529_v16 = vadd.f32 %v528_v12, %v4200_v20  ;;  %v577_v17 = vpop.f32.mrf.mxu1  ;;  %1438 = vmatpush.bf16.msrb.mxu1 %v4084_v33 }
  0xcc   : > { %v674_v13 = vadd.f32 %v673_v11, %v4209_v32  ;;  %v578_v23 = vadd.f32 %v577_v17, %v4202_v21  ;;  %1452 = vmatpush.bf16.msrb.mxu2 %v4091_v39 }
  0xcd   : > { %718 = vst [vmem:[#allocation4 + $0x50] sm:$0xff] %v625_v7  ;;  %1466 = vmatpush.bf16.msrb.mxu3 %v4086_v34 }
  0xce   : > { %719 = vst [vmem:[#allocation4 + $0x58] sm:$0xff] %v674_v13  ;;  %1425 = vmatpush.bf16.msrb.mxu0 %v4106_v46 }
  0xcf   : > { %720 = vst [vmem:[#allocation4 + $0x60] sm:$0xff] %v529_v16  ;;  %1439 = vmatpush.bf16.msrb.mxu1 %v4111_v53 }
  0xd0   : > { %721 = vst [vmem:[#allocation4 + $0x68] sm:$0xff] %v578_v23  ;;  %1453 = vmatpush.bf16.msrb.mxu2 %v4118_v58 }
  0xd1   : > { %1467 = vmatpush.bf16.msrb.mxu3 %v4113_v54 }
  0xd2   : > { %v626_v24 = vpop.f32.mrf.mxu2  ;;  %v531_v28 = vpop.f32.mrf.mxu0  ;;  %1426 = vmatpush.bf16.msrb.mxu0 %v4133_v2 }
  0xd3   : > { %v627_v25 = vadd.f32 %v626_v24, %v4207_v31  ;;  %v675_v26 = vpop.f32.mrf.mxu3  ;;  %v532_v38 = vadd.f32 %v531_v28, %v4200_v20  ;;  %v580_v40 = vpop.f32.mrf.mxu1  ;;  %1440 = vmatpush.bf16.msrb.mxu1 %v4138_v8 }
  0xd4   : > { %v676_v35 = vadd.f32 %v675_v26, %v4209_v32  ;;  %v581_v43 = vadd.f32 %v580_v40, %v4202_v21  ;;  %1454 = vmatpush.bf16.msrb.mxu2 %v4156_v15 }
  0xd5   : > { %722 = vst [vmem:[#allocation4 + $0x70] sm:$0xff] %v627_v25  ;;  %1468 = vmatpush.bf16.msrb.mxu3 %v4140_v10 }
  0xd6   : > { %723 = vst [vmem:[#allocation4 + $0x78] sm:$0xff] %v676_v35 }
  0xd7   : > { %724 = vst [vmem:[#allocation4 + $0x80] sm:$0xff] %v532_v38 }
  0xd8   : > { %725 = vst [vmem:[#allocation4 + $0x88] sm:$0xff] %v581_v43 }
  0xda   : > { %v629_v44 = vpop.f32.mrf.mxu2  ;;  %v533_v49 = vpop.f32.mrf.mxu0 }
  0xdb   : > { %v630_v45 = vadd.f32 %v629_v44, %v4207_v31  ;;  %v678_v48 = vpop.f32.mrf.mxu3  ;;  %v534_v56 = vadd.f32 %v533_v49, %v4200_v20  ;;  %v582_v57 = vpop.f32.mrf.mxu1 }
  0xdc   : > { %v679_v50 = vadd.f32 %v678_v48, %v4209_v32  ;;  %v583_v61 = vadd.f32 %v582_v57, %v4202_v21 }
  0xdd   : > { %726 = vst [vmem:[#allocation4 + $0x90] sm:$0xff] %v630_v45 }
  0xde   : > { %727 = vst [vmem:[#allocation4 + $0x98] sm:$0xff] %v679_v50 }
  0xdf   : > { %728 = vst [vmem:[#allocation4 + $0xa0] sm:$0xff] %v534_v56 }
  0xe0   : > { %729 = vst [vmem:[#allocation4 + $0xa8] sm:$0xff] %v583_v61 }
  0xe2   : > { %v631_v62 = vpop.f32.mrf.mxu2  ;;  %v536_v3 = vpop.f32.mrf.mxu0 }
  0xe3   : > { %v632_v63 = vadd.f32 %v631_v62, %v4207_v31  ;;  %v680_v0 = vpop.f32.mrf.mxu3  ;;  %v537_v7 = vadd.f32 %v536_v3, %v4200_v20  ;;  %v585_v11 = vpop.f32.mrf.mxu1 }
  0xe4   : > { %v681_v4 = vadd.f32 %v680_v0, %v4209_v32  ;;  %v586_v12 = vadd.f32 %v585_v11, %v4202_v21 }
  0xe5   : > { %730 = vst [vmem:[#allocation4 + $0xb0] sm:$0xff] %v632_v63 }
  0xe6   : > { %731 = vst [vmem:[#allocation4 + $0xb8] sm:$0xff] %v681_v4 }
  0xe7   : > { %732 = vst [vmem:[#allocation4 + $0xc0] sm:$0xff] %v537_v7 }
  0xe8   : > { %733 = vst [vmem:[#allocation4 + $0xc8] sm:$0xff] %v586_v12 }
  0xea   : > { %v634_v13 = vpop.f32.mrf.mxu2  ;;  %v538_v23 = vpop.f32.mrf.mxu0 }
  0xeb   : > { %v635_v16 = vadd.f32 %v634_v13, %v4207_v31  ;;  %v683_v17 = vpop.f32.mrf.mxu3  ;;  %v539_v25 = vadd.f32 %v538_v23, %v4200_v20  ;;  %v587_v26 = vpop.f32.mrf.mxu1 }
  0xec   : > { %v684_v24 = vadd.f32 %v683_v17, %v4209_v32  ;;  %v588_v28 = vadd.f32 %v587_v26, %v4202_v21 }
  0xed   : > { %734 = vst [vmem:[#allocation4 + $0xd0] sm:$0xff] %v635_v16 }
  0xee   : > { %735 = vst [vmem:[#allocation4 + $0xd8] sm:$0xff] %v684_v24 }
  0xef   : > { %736 = vst [vmem:[#allocation4 + $0xe0] sm:$0xff] %v539_v25 }
  0xf0   : > { %737 = vst [vmem:[#allocation4 + $0xe8] sm:$0xff] %v588_v28 }
  0xf2   : > { %v636_v35 = vpop.f32.mrf.mxu2  ;;  %v541_v43 = vpop.f32.mrf.mxu0 }
  0xf3   : > { %v637_v38 = vadd.f32 %v636_v35, %v4207_v31  ;;  %v685_v40 = vpop.f32.mrf.mxu3  ;;  %v542_v45 = vadd.f32 %v541_v43, %v4200_v20  ;;  %v590_v48 = vpop.f32.mrf.mxu1 }
  0xf4   : > { %v686_v44 = vadd.f32 %v685_v40, %v4209_v32  ;;  %v591_v49 = vadd.f32 %v590_v48, %v4202_v21 }
  0xf5   : > { %738 = vst [vmem:[#allocation4 + $0xf0] sm:$0xff] %v637_v38 }
  0xf6   : > { %739 = vst [vmem:[#allocation4 + $0xf8] sm:$0xff] %v686_v44 }
  0xf7   : > { %740 = vst [vmem:[#allocation4 + $0x100] sm:$0xff] %v542_v45 }
  0xf8   : > { %741 = vst [vmem:[#allocation4 + $0x108] sm:$0xff] %v591_v49 }
  0xfa   : > { %v639_v50 = vpop.f32.mrf.mxu2  ;;  %v543_v61 = vpop.f32.mrf.mxu0 }
  0xfb   : > { %v640_v56 = vadd.f32 %v639_v50, %v4207_v31  ;;  %v688_v57 = vpop.f32.mrf.mxu3  ;;  %v544_v63 = vadd.f32 %v543_v61, %v4200_v20  ;;  %v592_v0 = vpop.f32.mrf.mxu1 }
  0xfc   : > { %v689_v62 = vadd.f32 %v688_v57, %v4209_v32  ;;  %v593_v3 = vadd.f32 %v592_v0, %v4202_v21 }
  0xfd   : > { %742 = vst [vmem:[#allocation4 + $0x110] sm:$0xff] %v640_v56 }
  0xfe   : > { %743 = vst [vmem:[#allocation4 + $0x118] sm:$0xff] %v689_v62 }
  0xff   : > { %744 = vst [vmem:[#allocation4 + $0x120] sm:$0xff] %v544_v63 }
 0x100   : > { %745 = vst [vmem:[#allocation4 + $0x128] sm:$0xff] %v593_v3 }
 0x102   : > { %v641_v4 = vpop.f32.mrf.mxu2  ;;  %v546_v12 = vpop.f32.mrf.mxu0 }
 0x103   : > { %v642_v7 = vadd.f32 %v641_v4, %v4207_v31  ;;  %v690_v11 = vpop.f32.mrf.mxu3  ;;  %v547_v16 = vadd.f32 %v546_v12, %v4200_v20  ;;  %v595_v17 = vpop.f32.mrf.mxu1 }
 0x104   : > { %v691_v13 = vadd.f32 %v690_v11, %v4209_v32  ;;  %v596_v23 = vadd.f32 %v595_v17, %v4202_v21 }
 0x105   : > { %746 = vst [vmem:[#allocation4 + $0x130] sm:$0xff] %v642_v7 }
 0x106   : > { %747 = vst [vmem:[#allocation4 + $0x138] sm:$0xff] %v691_v13 }
 0x107   : > { %748 = vst [vmem:[#allocation4 + $0x140] sm:$0xff] %v547_v16 }
 0x108   : > { %749 = vst [vmem:[#allocation4 + $0x148] sm:$0xff] %v596_v23 }
 0x10a   : > { %v644_v24 = vpop.f32.mrf.mxu2  ;;  %v548_v28 = vpop.f32.mrf.mxu0 }
 0x10b   : > { %v645_v25 = vadd.f32 %v644_v24, %v4207_v31  ;;  %v693_v26 = vpop.f32.mrf.mxu3  ;;  %v549_v38 = vadd.f32 %v548_v28, %v4200_v20  ;;  %v597_v40 = vpop.f32.mrf.mxu1 }
 0x10c   : > { %v694_v35 = vadd.f32 %v693_v26, %v4209_v32  ;;  %v598_v43 = vadd.f32 %v597_v40, %v4202_v21 }
 0x10d   : > { %750 = vst [vmem:[#allocation4 + $0x150] sm:$0xff] %v645_v25 }
 0x10e   : > { %751 = vst [vmem:[#allocation4 + $0x158] sm:$0xff] %v694_v35 }
 0x10f   : > { %752 = vst [vmem:[#allocation4 + $0x160] sm:$0xff] %v549_v38 }
 0x110   : > { %753 = vst [vmem:[#allocation4 + $0x168] sm:$0xff] %v598_v43 }
 0x112   : > { %v646_v44 = vpop.f32.mrf.mxu2  ;;  %v551_v49 = vpop.f32.mrf.mxu0 }
 0x113   : > { %v647_v45 = vadd.f32 %v646_v44, %v4207_v31  ;;  %v695_v48 = vpop.f32.mrf.mxu3  ;;  %v552_v56 = vadd.f32 %v551_v49, %v4200_v20  ;;  %v600_v57 = vpop.f32.mrf.mxu1 }
 0x114   : > { %v696_v50 = vadd.f32 %v695_v48, %v4209_v32  ;;  %v601_v61 = vadd.f32 %v600_v57, %v4202_v21 }
 0x115   : > { %754 = vst [vmem:[#allocation4 + $0x170] sm:$0xff] %v647_v45 }
 0x116   : > { %755 = vst [vmem:[#allocation4 + $0x178] sm:$0xff] %v696_v50 }
 0x117   : > { %756 = vst [vmem:[#allocation4 + $0x180] sm:$0xff] %v552_v56 }
 0x118   : > { %757 = vst [vmem:[#allocation4 + $0x188] sm:$0xff] %v601_v61 }
 0x11a   : > { %v649_v62 = vpop.f32.mrf.mxu2  ;;  %v553_v3 = vpop.f32.mrf.mxu0 }
 0x11b   : > { %v650_v63 = vadd.f32 %v649_v62, %v4207_v31  ;;  %v698_v0 = vpop.f32.mrf.mxu3  ;;  %v554_v7 = vadd.f32 %v553_v3, %v4200_v20  ;;  %v602_v11 = vpop.f32.mrf.mxu1 }
 0x11c   : > { %v699_v4 = vadd.f32 %v698_v0, %v4209_v32  ;;  %v603_v12 = vadd.f32 %v602_v11, %v4202_v21 }
 0x11d   : > { %758 = vst [vmem:[#allocation4 + $0x190] sm:$0xff] %v650_v63 }
 0x11e   : > { %759 = vst [vmem:[#allocation4 + $0x198] sm:$0xff] %v699_v4 }
 0x11f   : > { %760 = vst [vmem:[#allocation4 + $0x1a0] sm:$0xff] %v554_v7 }
 0x120   : > { %761 = vst [vmem:[#allocation4 + $0x1a8] sm:$0xff] %v603_v12 }
 0x122   : > { %v651_v13 = vpop.f32.mrf.mxu2  ;;  %v556_v23 = vpop.f32.mrf.mxu0 }
 0x123   : > { %v652_v16 = vadd.f32 %v651_v13, %v4207_v31  ;;  %v700_v17 = vpop.f32.mrf.mxu3  ;;  %v557_v25 = vadd.f32 %v556_v23, %v4200_v20  ;;  %v605_v26 = vpop.f32.mrf.mxu1 }
 0x124   : > { %v701_v24 = vadd.f32 %v700_v17, %v4209_v32  ;;  %v606_v28 = vadd.f32 %v605_v26, %v4202_v21 }
 0x125   : > { %762 = vst [vmem:[#allocation4 + $0x1b0] sm:$0xff] %v652_v16 }
 0x126   : > { %763 = vst [vmem:[#allocation4 + $0x1b8] sm:$0xff] %v701_v24 }
 0x127   : > { %764 = vst [vmem:[#allocation4 + $0x1c0] sm:$0xff] %v557_v25 }
 0x128   : > { %765 = vst [vmem:[#allocation4 + $0x1c8] sm:$0xff] %v606_v28 }
 0x12a   : > { %v654_v35 = vpop.f32.mrf.mxu2  ;;  %v558_v43 = vpop.f32.mrf.mxu0 }
 0x12b   : > { %v655_v38 = vadd.f32 %v654_v35, %v4207_v31  ;;  %v703_v40 = vpop.f32.mrf.mxu3  ;;  %v559_v45 = vadd.f32 %v558_v43, %v4200_v20  ;;  %v607_v48 = vpop.f32.mrf.mxu1 }
 0x12c   : > { %v704_v44 = vadd.f32 %v703_v40, %v4209_v32  ;;  %v608_v49 = vadd.f32 %v607_v48, %v4202_v21 }
 0x12d   : > { %766 = vst [vmem:[#allocation4 + $0x1d0] sm:$0xff] %v655_v38 }
 0x12e   : > { %767 = vst [vmem:[#allocation4 + $0x1d8] sm:$0xff] %v704_v44 }
 0x12f   : > { %768 = vst [vmem:[#allocation4 + $0x1e0] sm:$0xff] %v559_v45 }
 0x130   : > { %769 = vst [vmem:[#allocation4 + $0x1e8] sm:$0xff] %v608_v49 }
 0x132   : > { %v656_v50 = vpop.f32.mrf.mxu2  ;;  %v994_v20 = vpop.f32.mrf.mxu0 }
 0x133   : > { %v657_v56 = vadd.f32 %v656_v50, %v4207_v31  ;;  %v705_v57 = vpop.f32.mrf.mxu3  ;;  %v1008_v0 = vpop.f32.mrf.mxu1 }
 0x134   : > { %v706_v62 = vadd.f32 %v705_v57, %v4209_v32 }
 0x137   : > { %v816_v61 = vld [vmem:[%s4310_s21] sm:$0xff]  ;;  %v817_v21 = vld [vmem:[%s4310_s21 + $0x8] sm:$0xff] }
 0x138   : > { %v1041_v63 = vadd.f32 %v994_v20, %v816_v61  ;;  %770 = vst [vmem:[#allocation4 + $0x1f0] sm:$0xff] %v657_v56  ;;  %v1042_v3 = vadd.f32 %v1008_v0, %v817_v21 }
 0x139   : > { %771 = vst [vmem:[#allocation4 + $0x1f8] sm:$0xff] %v706_v62 }
 0x13a   : > { %v3133_v4 = vmul.f32 -1.442695, %v1041_v63  ;;  %v3135_v31 = vmul.f32 -1.442695, %v1042_v3  ;;  %v996_v13 = vpop.f32.mrf.mxu0  ;;  %v1022_v44 = vpop.f32.mrf.mxu2 }
 0x13b   : > { %v1036_v11 = vpop.f32.mrf.mxu3  ;;  %v1010_v32 = vpop.f32.mrf.mxu1 }
 0x13c   : > { %3385 = vpow2.f32 %v3133_v4 }
 0x13d   : > { %3387 = vpow2.f32 %v3135_v31 }
 0x140   : > { %v819_v7 = vld [vmem:[%s4310_s21 + $0x18] sm:$0xff]  ;;  %v820_v12 = vld [vmem:[%s4310_s21 + $0x20] sm:$0xff]  ;;  %v821_v23 = vld [vmem:[%s4310_s21 + $0x28] sm:$0xff] }
 0x141   : > { %v1044_v16 = vadd.f32 %v1036_v11, %v819_v7  ;;  %v1045_v17 = vadd.f32 %v996_v13, %v820_v12  ;;  %v1046_v24 = vadd.f32 %v1010_v32, %v821_v23  ;;  %v823_v45 = vld [vmem:[%s4310_s21 + $0x38] sm:$0xff]  ;;  %v818_v50 = vld [vmem:[%s4310_s21 + $0x10] sm:$0xff] }
 0x142   : > { %v3386_v25 = vpop.eup %3385  ;;  %v1043_v57 = vadd.f32 %v1022_v44, %v818_v50  ;;  %v1024_v44 = vpop.f32.mrf.mxu2 }
 0x143   : > { %v3137_v26 = vmul.f32 -1.442695, %v1044_v16  ;;  %v3388_v28 = vpop.eup %3387  ;;  %v1055_v35 = vadd.f32 1.0, %v3386_v25  ;;  %v3134_v38 = vmul.f32 -1.442695, %v1045_v17  ;;  %v1038_v48 = vpop.f32.mrf.mxu3 }
 0x144   : > { %v1093_v40 = vadd.f32 1.0, %v3388_v28  ;;  %v3136_v43 = vmul.f32 -1.442695, %v1046_v24  ;;  %v1048_v49 = vadd.f32 %v1038_v48, %v823_v45 }
 0x145   : > { %3389 = vpow2.f32 %v3137_v26  ;;  %v1066_v12 = vand.u32 2147483647, %v1055_v35  ;;  %v1068_v13 = vand.u32 2147483648, %v1055_v35  ;;  %vm1062_vm3 = vweird.f32 %v1055_v35 }
 0x146   : > { %3391 = vrcp.f32 %v1055_v35  ;;  %v3138_v61 = vmul.f32 -1.442695, %v1048_v49  ;;  %v1106_v17 = vand.u32 2147483648, %v1093_v40  ;;  %v1104_v24 = vand.u32 2147483647, %v1093_v40 }
 0x147   : > { %3393 = vrcp.f32 %v1093_v40  ;;  %vm1100_vm4 = vweird.f32 %v1093_v40  ;;  %vm1067_vm6 = vcmp.eq.f32.partialorder %v1066_v12, 8.507059e+37 }
 0x148   : > { %3395 = vpow2.f32 %v3134_v38  ;;  %v1069_v38 = vor.u32 1.1754944e-38, %v1068_v13  ;;  %v1107_v49 = vor.u32 1.1754944e-38, %v1106_v17  ;;  %vm1105_vm8 = vcmp.eq.f32.partialorder %v1104_v24, 8.507059e+37 }
 0x149   : > { %3397 = vpow2.f32 %v3136_v43 }
 0x14a   : > { %3399 = vpow2.f32 %v3138_v61  ;;  %v822_v61 = vld [vmem:[%s4310_s21 + $0x30] sm:$0xff]  ;;  %s3159_s21 = sshll.u32 %s4490_s9, 2 }
 0x14b   : > { %v3390_v56 = vpop.eup %3389  ;;  %s1612_s6 = scalar_lea.vmem %s4368_s1, %s3159_s21 [#allocation10] }
 0x14c   : > { %v3392_v20 = vpop.eup %3391  ;;  %v4320_v62 = vadd.f32 1.0, %v3390_v56 }
 0x14d   : > { %v3394_v63 = vpop.eup %3393  ;;  %v1058_v21 = vmul.f32 %v3392_v20, %v1055_v35  ;;  %vm1063_vm1 = vweird.f32 %v3392_v20 }
 0x14e   : > { %v3396_v0 = vpop.eup %3395  ;;  %v1096_v3 = vmul.f32 %v3394_v63, %v1093_v40  ;;  %3401 = vrcp.f32 %v4320_v62  ;;  %vm1101_vm2 = vweird.f32 %v3394_v63  ;;  %vm1064_vm5 = vmor %vm1062_vm3, %vm1063_vm1 }
 0x14f   : > { %v3398_v4 = vpop.eup %3397  ;;  %v1059_v31 = vsub.f32 1.0, %v1058_v21  ;;  %3403 = vtanh.f32 %v1043_v57  ;;  %v4323_v7 = vadd.f32 1.0, %v3396_v0  ;;  %vm1102_vm7 = vmor %vm1100_vm4, %vm1101_vm2  ;;  %v1047_v0 = vadd.f32 %v1024_v44, %v822_v61 }
 0x150   : > { %v1097_v11 = vsub.f32 1.0, %v1096_v3  ;;  %v4325_v16 = vadd.f32 1.0, %v3398_v4  ;;  %v3400_v25 = vpop.eup %3399  ;;  %vm1140_vm2 = vweird.f32 %v4320_v62 }
 0x151   : > { %v1060_v23 = vmul.f32 %v3392_v20, %v1059_v31  ;;  %3405 = vrcp.f32 %v4323_v7  ;;  %v4331_v45 = vadd.f32 1.0, %v3400_v25  ;;  %v1081_v24 = vand.u32 2147483647, %v4323_v7 }
 0x152   : > { %v1098_v32 = vmul.f32 %v3394_v63, %v1097_v11  ;;  %3407 = vrcp.f32 %v4325_v16  ;;  %v1121_v17 = vand.u32 2147483648, %v4325_v16  ;;  %vm1077_vm11 = vweird.f32 %v4323_v7 }
 0x153   : > { %v1061_v26 = vadd.f32 %v3392_v20, %v1060_v23  ;;  %3409 = vrcp.f32 %v4331_v45  ;;  %v1083_v23 = vand.u32 2147483648, %v4323_v7  ;;  %vm1115_vm12 = vweird.f32 %v4325_v16 }
 0x154   : > { %v4329_v28 = vpop.eup %3401  ;;  %v1099_v43 = vadd.f32 %v3394_v63, %v1098_v32  ;;  %3411 = vtanh.f32 %v1047_v0  ;;  %vm1082_vm15 = vcmp.eq.f32.partialorder %v1081_v24, 8.507059e+37 }
 0x155   : > { %v3404_v48 = vpop.eup %3403  ;;  %v1065_v50 = vsel %vm1064_vm5, %v3392_v20, %v1061_v26  ;;  %v1136_v35 = vmul.f32 %v4329_v28, %v4320_v62  ;;  %vm1141_vm14 = vweird.f32 %v4329_v28  ;;  %vm1155_vm5 = vweird.f32 %v4331_v45 }
 0x156   : > { %v1070_v56 = vsel %vm1067_vm6, %v1069_v38, %v1065_v50  ;;  %v1103_v57 = vsel %vm1102_vm7, %v3394_v63, %v1099_v43  ;;  %v1119_v43 = vand.u32 2147483647, %v4325_v16  ;;  %v1122_v50 = vor.u32 1.1754944e-38, %v1121_v17  ;;  %vm1142_vm3 = vmor %vm1140_vm2, %vm1141_vm14 }
 0x157   : > { %v3406_v40 = vpop.eup %3405  ;;  %v1108_v21 = vsel %vm1105_vm8, %v1107_v49, %v1103_v57  ;;  %v1167_v20 = vmul.f32 %v3404_v48, %v1070_v56  ;;  %v1137_v12 = vsub.f32 1.0, %v1136_v35  ;;  %v1084_v56 = vor.u32 1.1754944e-38, %v1083_v23 }
 0x158   : > { %v3408_v3 = vpop.eup %3407  ;;  %v1073_v4 = vmul.f32 %v3406_v40, %v4323_v7  ;;  %v1165_v31 = vmul.f32 0.0, %v1108_v21  ;;  %vm1078_vm9 = vweird.f32 %v3406_v40  ;;  %vm1120_vm1 = vcmp.eq.f32.partialorder %v1119_v43, 8.507059e+37 }
 0x159   : > { %v1111_v11 = vmul.f32 %v3408_v3, %v4325_v16  ;;  %v3410_v25 = vpop.eup %3409  ;;  %vm1116_vm10 = vweird.f32 %v3408_v3  ;;  %v1138_v44 = vmul.f32 %v4329_v28, %v1137_v12  ;;  %vm1079_vm13 = vmor %vm1077_vm11, %vm1078_vm9 }
 0x15a   : > { %v1074_v13 = vsub.f32 1.0, %v1073_v4  ;;  %v4343_v26 = vadd.f32 %v1167_v20, %v1165_v31  ;;  %v1151_v49 = vmul.f32 %v3410_v25, %v4331_v45  ;;  %vm1117_vm0 = vmor %vm1115_vm12, %vm1116_vm10  ;;  %v3412_v21 = vpop.eup %3411  ;;  %vm1156_vm4 = vweird.f32 %v3410_v25 }
 0x15b   : > { %v1112_v63 = vsub.f32 1.0, %v1111_v11  ;;  %v1139_v16 = vadd.f32 %v4329_v28, %v1138_v44  ;;  %v1146_v11 = vand.u32 2147483648, %v4320_v62  ;;  %vm1157_vm7 = vmor %vm1155_vm5, %vm1156_vm4 }
 0x15c   : > { %v1075_v32 = vmul.f32 %v3406_v40, %v1074_v13  ;;  %v1152_v61 = vsub.f32 1.0, %v1151_v49  ;;  %3413 = vtanh.f32 %v4343_v26 }
 0x15d   : > { %v1113_v38 = vmul.f32 %v3408_v3, %v1112_v63  ;;  %v1147_v23 = vor.u32 1.1754944e-38, %v1146_v11  ;;  %v1191_v11 = vld [vmem:[%s4408_s24 + $0x18] sm:$0xff] }
 0x15e   : > { %v1076_v48 = vadd.f32 %v3406_v40, %v1075_v32  ;;  %v1153_v20 = vmul.f32 %v3410_v25, %v1152_v61  ;;  %v1161_v32 = vand.u32 2147483648, %v4331_v45 }
 0x15f   : > { %v1114_v57 = vadd.f32 %v3408_v3, %v1113_v38 }
 0x160   : > { %v1080_v35 = vsel %vm1079_vm13, %v3406_v40, %v1076_v48  ;;  %v1144_v40 = vand.u32 2147483647, %v4320_v62  ;;  %v1154_v63 = vadd.f32 %v3410_v25, %v1153_v20  ;;  %v1159_v62 = vand.u32 2147483647, %v4331_v45 }
 0x161   : > { %v1085_v0 = vsel %vm1082_vm15, %v1084_v56, %v1080_v35  ;;  %v1118_v4 = vsel %vm1117_vm0, %v3408_v3, %v1114_v57  ;;  %v1143_v3 = vsel %vm1142_vm3, %v4329_v28, %v1139_v16  ;;  %v1162_v44 = vor.u32 1.1754944e-38, %v1161_v32 }
 0x162   : > { %v1123_v7 = vsel %vm1120_vm1, %v1122_v50, %v1118_v4  ;;  %v1168_v31 = vmul.f32 %v3412_v21, %v1085_v0  ;;  %v3414_v17 = vpop.eup %3413  ;;  %vm1145_vm6 = vcmp.eq.f32.partialorder %v1144_v40, 8.507059e+37  ;;  %v1158_v38 = vsel %vm1157_vm7, %v3410_v25, %v1154_v63  ;;  %v1188_v25 = vld [vmem:[%s4408_s24] sm:$0xff]  ;;  %v1189_v0 = vld [vmem:[%s4408_s24 + $0x8] sm:$0xff] }
 0x163   : > { %v1166_v12 = vmul.f32 0.0, %v1123_v7  ;;  %v1148_v24 = vsel %vm1145_vm6, %v1147_v23, %v1143_v3  ;;  %vm1160_vm8 = vcmp.eq.f32.partialorder %v1159_v62, 8.507059e+37  ;;  %v1192_v3 = vld [vmem:[%s4408_s24 + $0x20] sm:$0xff] }
 0x164   : > { %v1173_v43 = vmul.f32 %v3414_v17, %v1148_v24  ;;  %v1163_v48 = vsel %vm1160_vm8, %v1162_v44, %v1158_v38  ;;  %v1193_v17 = vld [vmem:[%s4408_s24 + $0x28] sm:$0xff] }
 0x165   : > { %v4358_v13 = vadd.f32 %v1168_v31, %v1166_v12 }
 0x166   : > { %v1175_v50 = vpack.c.bf16 %v1173_v43, %v1173_v43 }
 0x167   : > { %3415 = vtanh.f32 %v4358_v13 }
 0x168   : > { %v1198_v45 = vunpack.c.l.b16 %v1175_v50 }
 0x16d   : > { %v3416_v28 = vpop.eup %3415 }
 0x16e   : > { %v1174_v49 = vmul.f32 %v3416_v28, %v1163_v48 }
 0x170   : > { %v1176_v56 = vpack.c.bf16 %v1174_v49, %v1174_v49  ;;  %v3275_v57 = vpack.c.bf16 %v1174_v49, %v1173_v43 }
 0x172   : > { %3276 = vst [vmem:[%s1178_s5] sm:$0xff] %v3275_v57   ;;  %v1199_v35 = vunpack.c.l.b16 %v1176_v56  ;;  %v1195_v57 = vld [vmem:[%s4408_s24 + $0x38] sm:$0xff]  ;;  %s1615_s5 = scalar_select %p808_p5, 4, 3 }
 0x174   : > { %v1200_v61 = vpack.c.b16 %v1199_v35, %v1198_v45  ;;  %s3160_s13 = sshll.u32 %s1615_s5, 4 }
 0x175   : > { %s4575_s14 = sshra.s32 %s3160_s13, 3 }
 0x176   : > { %1210 = vmatmul.bf16.vlgmr.msra.gmra.mxu0 %v1200_v61  ;;  %1224 = vmatmul.bf16.vlgmr.msra.gmra.mxu1 %v1200_v61  ;;  %s3267_s27 = sshll.u32 %s4575_s14, 5 }
 0x177   : > { %1238 = vmatmul.bf16.vlgmr.msra.gmra.mxu2 %v1200_v61  ;;  %1252 = vmatmul.bf16.vlgmr.msra.gmra.mxu3 %v1200_v61  ;;  %v1190_v61 = vld [vmem:[%s4408_s24 + $0x10] sm:$0xff]  ;;  %s4578_s22 = scalar_lea.vmem [#allocation4], %s3267_s27 }
 0x178   : > { %1636 = vmatpush.bf16.msra.mxu0 %v3955_v29  ;;  %1650 = vmatpush.bf16.msra.mxu1 %v3957_v30 }
 0x179   : > { %1664 = vmatpush.bf16.msra.mxu2 %v3967_v37  ;;  %1678 = vmatpush.bf16.msra.mxu3 %v3965_v36 }
 0x17c   : > { %1637 = vmatpush.bf16.msra.mxu0 %v3974_v41  ;;  %1651 = vmatpush.bf16.msra.mxu1 %v3976_v42 }
 0x17d   : > { %1665 = vmatpush.bf16.msra.mxu2 %v3986_v47  ;;  %1679 = vmatpush.bf16.msra.mxu3 %v3993_v51 }
 0x180   : > { %1638 = vmatpush.bf16.msra.mxu0 %v3995_v52  ;;  %1652 = vmatpush.bf16.msra.mxu1 %v4000_v55 }
 0x181   : > { %1666 = vmatpush.bf16.msra.mxu2 %v4006_v59  ;;  %1680 = vmatpush.bf16.msra.mxu3 %v4010_v60 }
 0x184   : > { %1639 = vmatpush.bf16.msra.mxu0 %v4025_v1  ;;  %1653 = vmatpush.bf16.msra.mxu1 %v4030_v5 }
 0x185   : > { %1667 = vmatpush.bf16.msra.mxu2 %v4037_v9  ;;  %1681 = vmatpush.bf16.msra.mxu3 %v4032_v6 }
 0x188   : > { %1640 = vmatpush.bf16.msra.mxu0 %v4052_v14  ;;  %1654 = vmatpush.bf16.msra.mxu1 %v4057_v18 }
 0x189   : > { %1668 = vmatpush.bf16.msra.mxu2 %v4064_v22  ;;  %1682 = vmatpush.bf16.msra.mxu3 %v4059_v19 }
 0x18c   : > { %1641 = vmatpush.bf16.msra.mxu0 %v4079_v27  ;;  %1655 = vmatpush.bf16.msra.mxu1 %v4084_v33 }
 0x18d   : > { %1669 = vmatpush.bf16.msra.mxu2 %v4091_v39  ;;  %1683 = vmatpush.bf16.msra.mxu3 %v4086_v34 }
 0x190   : > { %1642 = vmatpush.bf16.msra.mxu0 %v4106_v46  ;;  %1656 = vmatpush.bf16.msra.mxu1 %v4111_v53 }
 0x191   : > { %1670 = vmatpush.bf16.msra.mxu2 %v4118_v58  ;;  %1684 = vmatpush.bf16.msra.mxu3 %v4113_v54 }
 0x194   : > { %1643 = vmatpush.bf16.msra.mxu0 %v4133_v2  ;;  %1657 = vmatpush.bf16.msra.mxu1 %v4138_v8 }
 0x195   : > { %1671 = vmatpush.bf16.msra.mxu2 %v4156_v15  ;;  %1685 = vmatpush.bf16.msra.mxu3 %v4140_v10 }
 0x1f3   : > { %v1211_v21 = vpop.f32.mrf.mxu0  ;;  %v1225_v4 = vpop.f32.mrf.mxu1 }
 0x1f4   : > { %v1258_v7 = vadd.f32 %v1211_v21, %v1188_v25  ;;  %v1259_v31 = vadd.f32 %v1225_v4, %v1189_v0 }
 0x1f6   : > { %v3143_v20 = vmul.f32 -1.442695, %v1258_v7  ;;  %v3145_v16 = vmul.f32 -1.442695, %v1259_v31 }
 0x1f8   : > { %3417 = vpow2.f32 %v3143_v20 }
 0x1f9   : > { %3419 = vpow2.f32 %v3145_v16 }
 0x1fa   : > { %v1253_v12 = vpop.f32.mrf.mxu3  ;;  %v1239_v50 = vpop.f32.mrf.mxu2 }
 0x1fb   : > { %v1261_v40 = vadd.f32 %v1253_v12, %v1191_v11  ;;  %v1213_v63 = vpop.f32.mrf.mxu0  ;;  %v1227_v23 = vpop.f32.mrf.mxu1  ;;  %v1260_v21 = vadd.f32 %v1239_v50, %v1190_v61 }
 0x1fc   : > { %v1262_v32 = vadd.f32 %v1213_v63, %v1192_v3  ;;  %v1263_v62 = vadd.f32 %v1227_v23, %v1193_v17 }
 0x1fd   : > { %v3147_v24 = vmul.f32 -1.442695, %v1261_v40 }
 0x1fe   : > { %v3418_v38 = vpop.eup %3417  ;;  %v3144_v43 = vmul.f32 -1.442695, %v1262_v32  ;;  %v3146_v48 = vmul.f32 -1.442695, %v1263_v62 }
 0x1ff   : > { %v3420_v44 = vpop.eup %3419  ;;  %v1272_v28 = vadd.f32 1.0, %v3418_v38  ;;  %3421 = vpow2.f32 %v3147_v24  ;;  %v1194_v38 = vld [vmem:[%s4408_s24 + $0x30] sm:$0xff]  ;;  %s3169_s24 = sshll.u32 %s4575_s14, 2 }
 0x200   : > { %v1310_v49 = vadd.f32 1.0, %v3420_v44  ;;  %3423 = vpow2.f32 %v3144_v43  ;;  %s1829_s26 = scalar_lea.vmem %s4368_s1, %s3169_s24 [#allocation10] }
 0x201   : > { %3425 = vrcp.f32 %v1272_v28  ;;  %v1283_v23 = vand.u32 2147483647, %v1272_v28  ;;  %v1285_v32 = vand.u32 2147483648, %v1272_v28  ;;  %vm1279_vm11 = vweird.f32 %v1272_v28 }
 0x202   : > { %3427 = vrcp.f32 %v1310_v49  ;;  %v1255_v56 = vpop.f32.mrf.mxu3  ;;  %v1241_v63 = vpop.f32.mrf.mxu2  ;;  %v1323_v62 = vand.u32 2147483648, %v1310_v49  ;;  %v1321_v44 = vand.u32 2147483647, %v1310_v49  ;;  %vm1317_vm12 = vweird.f32 %v1310_v49 }
 0x203   : > { %3429 = vpow2.f32 %v3146_v48  ;;  %v1265_v45 = vadd.f32 %v1255_v56, %v1195_v57  ;;  %v1264_v48 = vadd.f32 %v1241_v63, %v1194_v38  ;;  %vm1284_vm14 = vcmp.eq.f32.partialorder %v1283_v23, 8.507059e+37 }
 0x204   : > { %vm1322_vm0 = vcmp.eq.f32.partialorder %v1321_v44, 8.507059e+37 }
 0x205   : > { %v3422_v35 = vpop.eup %3421  ;;  %v3148_v31 = vmul.f32 -1.442695, %v1265_v45  ;;  %v1286_v45 = vor.u32 1.1754944e-38, %v1285_v32 }
 0x206   : > { %v3424_v25 = vpop.eup %3423  ;;  %v4417_v0 = vadd.f32 1.0, %v3422_v35 }
 0x207   : > { %v3426_v4 = vpop.eup %3425  ;;  %v4419_v7 = vadd.f32 1.0, %v3424_v25  ;;  %v1324_v25 = vor.u32 1.1754944e-38, %v1323_v62 }
 0x208   : > { %v3428_v20 = vpop.eup %3427  ;;  %v1275_v16 = vmul.f32 %v3426_v4, %v1272_v28  ;;  %3431 = vrcp.f32 %v4417_v0  ;;  %vm1280_vm9 = vweird.f32 %v3426_v4 }
 0x209   : > { %v3430_v11 = vpop.eup %3429  ;;  %v1313_v12 = vmul.f32 %v3428_v20, %v1310_v49  ;;  %3433 = vrcp.f32 %v4419_v7  ;;  %vm1318_vm10 = vweird.f32 %v3428_v20  ;;  %vm1281_vm13 = vmor %vm1279_vm11, %vm1280_vm9  ;;  %vm1294_vm2 = vweird.f32 %v4419_v7 }
 0x20a   : > { %v1276_v40 = vsub.f32 1.0, %v1275_v16  ;;  %3435 = vtanh.f32 %v1260_v21  ;;  %v4423_v3 = vadd.f32 1.0, %v3430_v11  ;;  %vm1319_vm15 = vmor %vm1317_vm12, %vm1318_vm10  ;;  %vm1357_vm10 = vweird.f32 %v4417_v0 }
 0x20b   : > { %v1314_v17 = vsub.f32 1.0, %v1313_v12  ;;  %3437 = vpow2.f32 %v3148_v31 }
 0x20c   : > { %v1277_v24 = vmul.f32 %v3426_v4, %v1276_v40  ;;  %3439 = vrcp.f32 %v4423_v3  ;;  %v1338_v44 = vand.u32 2147483648, %v4423_v3  ;;  %vm1332_vm6 = vweird.f32 %v4423_v3 }
 0x20d   : > { %v1315_v43 = vmul.f32 %v3428_v20, %v1314_v17  ;;  %3441 = vtanh.f32 %v1264_v48  ;;  %v1298_v17 = vand.u32 2147483647, %v4419_v7 }
 0x20e   : > { %v4427_v50 = vpop.eup %3431  ;;  %v1278_v56 = vadd.f32 %v3426_v4, %v1277_v24  ;;  %v1300_v24 = vand.u32 2147483648, %v4419_v7 }
 0x20f   : > { %v3434_v57 = vpop.eup %3433  ;;  %v1316_v35 = vadd.f32 %v3428_v20, %v1315_v43  ;;  %v1353_v31 = vmul.f32 %v4427_v50, %v4417_v0  ;;  %vm1299_vm5 = vcmp.eq.f32.partialorder %v1298_v17, 8.507059e+37  ;;  %vm1358_vm9 = vweird.f32 %v4427_v50 }
 0x210   : > { %v3436_v61 = vpop.eup %3435  ;;  %v1282_v21 = vsel %vm1281_vm13, %v3426_v4, %v1278_v56  ;;  %v1290_v16 = vmul.f32 %v3434_v57, %v4419_v7  ;;  %vm1295_vm1 = vweird.f32 %v3434_v57  ;;  %v1336_v56 = vand.u32 2147483647, %v4423_v3  ;;  %vm1359_vm11 = vmor %vm1357_vm10, %vm1358_vm9 }
 0x211   : > { %v3438_v11 = vpop.eup %3437  ;;  %v1287_v12 = vsel %vm1284_vm14, %v1286_v45, %v1282_v21  ;;  %v1320_v40 = vsel %vm1319_vm15, %v3428_v20, %v1316_v35  ;;  %v1354_v38 = vsub.f32 1.0, %v1353_v31  ;;  %vm1296_vm4 = vmor %vm1294_vm2, %vm1295_vm1  ;;  %v1339_v7 = vor.u32 1.1754944e-38, %v1338_v44 }
 0x212   : > { %v3440_v28 = vpop.eup %3439  ;;  %v1325_v49 = vsel %vm1322_vm0, %v1324_v25, %v1320_v40  ;;  %v1291_v63 = vsub.f32 1.0, %v1290_v16  ;;  %v1351_v23 = vadd.f32 1.0, %v3438_v11  ;;  %v1384_v62 = vmul.f32 %v3436_v61, %v1287_v12 }
 0x213   : > { %v1382_v32 = vmul.f32 %v1325_v49, %v4343_v26  ;;  %v1328_v4 = vmul.f32 %v3440_v28, %v4423_v3  ;;  %v3442_v45 = vpop.eup %3441  ;;  %vm1333_vm3 = vweird.f32 %v3440_v28  ;;  %v1301_v61 = vor.u32 1.1754944e-38, %v1300_v24 }
 0x214   : > { %v1292_v43 = vmul.f32 %v3434_v57, %v1291_v63  ;;  %3443 = vrcp.f32 %v1351_v23  ;;  %v1355_v25 = vmul.f32 %v4427_v50, %v1354_v38  ;;  %vm1334_vm7 = vmor %vm1332_vm6, %vm1333_vm3  ;;  %vm1337_vm8 = vcmp.eq.f32.partialorder %v1336_v56, 8.507059e+37 }
 0x215   : > { %v1329_v20 = vsub.f32 1.0, %v1328_v4  ;;  %v4439_v35 = vadd.f32 %v1384_v62, %v1382_v32  ;;  %v1361_v62 = vand.u32 2147483647, %v4417_v0  ;;  %vm1372_vm13 = vweird.f32 %v1351_v23 }
 0x216   : > { %v1293_v48 = vadd.f32 %v3434_v57, %v1292_v43  ;;  %v1356_v32 = vadd.f32 %v4427_v50, %v1355_v25  ;;  %v1376_v44 = vand.u32 2147483647, %v1351_v23 }
 0x217   : > { %v1330_v26 = vmul.f32 %v3440_v28, %v1329_v20  ;;  %3445 = vtanh.f32 %v4439_v35  ;;  %v1378_v20 = vand.u32 2147483648, %v1351_v23  ;;  %vm1362_vm14 = vcmp.eq.f32.partialorder %v1361_v62, 8.507059e+37 }
 0x218   : > { %v1297_v21 = vsel %vm1296_vm4, %v3434_v57, %v1293_v48  ;;  %v1363_v57 = vand.u32 2147483648, %v4417_v0  ;;  %v1360_v24 = vsel %vm1359_vm11, %v4427_v50, %v1356_v32  ;;  %vm1377_vm0 = vcmp.eq.f32.partialorder %v1376_v44, 8.507059e+37 }
 0x219   : > { %v1302_v31 = vsel %vm1299_vm5, %v1301_v61, %v1297_v21  ;;  %v1331_v16 = vadd.f32 %v3440_v28, %v1330_v26 }
 0x21a   : > { %v3444_v11 = vpop.eup %3443  ;;  %v1385_v40 = vmul.f32 %v3442_v45, %v1302_v31  ;;  %v1364_v43 = vor.u32 1.1754944e-38, %v1363_v57  ;;  %v1379_v45 = vor.u32 1.1754944e-38, %v1378_v20 }
 0x21b   : > { %v1335_v12 = vsel %vm1334_vm7, %v3440_v28, %v1331_v16  ;;  %v1368_v49 = vmul.f32 %v3444_v11, %v1351_v23  ;;  %vm1373_vm12 = vweird.f32 %v3444_v11  ;;  %v1405_v23 = vld [vmem:[%s4493_s11] sm:$0xff] }
 0x21c   : > { %v1340_v63 = vsel %vm1337_vm8, %v1339_v7, %v1335_v12  ;;  %vm1374_vm15 = vmor %vm1372_vm13, %vm1373_vm12  ;;  %v1365_v0 = vsel %vm1362_vm14, %v1364_v43, %v1360_v24  ;;  %v1409_v24 = vld [vmem:[%s4493_s11 + $0x20] sm:$0xff]  ;;  %v1410_v43 = vld [vmem:[%s4493_s11 + $0x28] sm:$0xff] }
 0x21d   : > { %v1383_v3 = vmul.f32 %v1340_v63, %v4358_v13  ;;  %v1369_v17 = vsub.f32 1.0, %v1368_v49  ;;  %v3446_v38 = vpop.eup %3445 }
 0x21e   : > { %v1390_v56 = vmul.f32 %v3446_v38, %v1365_v0 }
 0x21f   : > { %v4450_v4 = vadd.f32 %v1385_v40, %v1383_v3  ;;  %v1370_v28 = vmul.f32 %v3444_v11, %v1369_v17  ;;  %v1406_v40 = vld [vmem:[%s4493_s11 + $0x8] sm:$0xff]  ;;  %v1408_v17 = vld [vmem:[%s4493_s11 + $0x18] sm:$0xff] }
 0x220   : > { %v1392_v25 = vpack.c.bf16 %v1390_v56, %v1390_v56 }
 0x221   : > { %3447 = vtanh.f32 %v4450_v4  ;;  %v1371_v13 = vadd.f32 %v3444_v11, %v1370_v28 }
 0x222   : > { %v1415_v16 = vunpack.c.l.b16 %v1392_v25 }
 0x223   : > { %v1375_v48 = vsel %vm1374_vm15, %v3444_v11, %v1371_v13 }
 0x224   : > { %v1380_v61 = vsel %vm1377_vm0, %v1379_v45, %v1375_v48 }
 0x227   : > { %v3448_v26 = vpop.eup %3447 }
 0x228   : > { %v1391_v50 = vmul.f32 %v3448_v26, %v1380_v61 }
 0x22a   : > { %v1393_v21 = vpack.c.bf16 %v1391_v50, %v1391_v50  ;;  %v3280_v31 = vpack.c.bf16 %v1391_v50, %v1390_v56 }
 0x22c   : > { %3281 = vst [vmem:[%s1395_s7] sm:$0xff] %v3280_v31   ;;  %v1416_v7 = vunpack.c.l.b16 %v1393_v21  ;;  %v1412_v31 = vld [vmem:[%s4493_s11 + $0x38] sm:$0xff]  ;;  %s1832_s7 = scalar_select %p808_p5, 3, 4 }
 0x22e   : > { %v1417_v12 = vpack.c.b16 %v1416_v7, %v1415_v16  ;;  %s3170_s8 = sshll.u32 %s1832_s7, 4 }
 0x22f   : > { %s4660_s25 = sshra.s32 %s3170_s8, 3 }
 0x230   : > { %1427 = vmatmul.bf16.vlgmr.msrb.gmra.mxu0 %v1417_v12  ;;  %1441 = vmatmul.bf16.vlgmr.msrb.gmra.mxu1 %v1417_v12  ;;  %s3268_s9 = sshll.u32 %s4660_s25, 5 }
 0x231   : > { %1455 = vmatmul.bf16.vlgmr.msrb.gmra.mxu2 %v1417_v12  ;;  %1469 = vmatmul.bf16.vlgmr.msrb.gmra.mxu3 %v1417_v12  ;;  %v1407_v12 = vld [vmem:[%s4493_s11 + $0x10] sm:$0xff]  ;;  %s4663_s10 = scalar_lea.vmem [#allocation4], %s3268_s9 }
 0x232   : > { %1853 = vmatpush.bf16.msrb.mxu0 %v3955_v29  ;;  %1867 = vmatpush.bf16.msrb.mxu1 %v3957_v30 }
 0x233   : > { %1881 = vmatpush.bf16.msrb.mxu2 %v3967_v37  ;;  %1895 = vmatpush.bf16.msrb.mxu3 %v3965_v36 }
 0x236   : > { %1854 = vmatpush.bf16.msrb.mxu0 %v3974_v41  ;;  %1868 = vmatpush.bf16.msrb.mxu1 %v3976_v42 }
 0x237   : > { %1882 = vmatpush.bf16.msrb.mxu2 %v3986_v47  ;;  %1896 = vmatpush.bf16.msrb.mxu3 %v3993_v51 }
 0x23a   : > { %1855 = vmatpush.bf16.msrb.mxu0 %v3995_v52  ;;  %1869 = vmatpush.bf16.msrb.mxu1 %v4000_v55 }
 0x23b   : > { %1883 = vmatpush.bf16.msrb.mxu2 %v4006_v59  ;;  %1897 = vmatpush.bf16.msrb.mxu3 %v4010_v60 }
 0x23e   : > { %1856 = vmatpush.bf16.msrb.mxu0 %v4025_v1  ;;  %1870 = vmatpush.bf16.msrb.mxu1 %v4030_v5 }
 0x23f   : > { %1884 = vmatpush.bf16.msrb.mxu2 %v4037_v9  ;;  %1898 = vmatpush.bf16.msrb.mxu3 %v4032_v6 }
 0x242   : > { %1857 = vmatpush.bf16.msrb.mxu0 %v4052_v14  ;;  %1871 = vmatpush.bf16.msrb.mxu1 %v4057_v18 }
 0x243   : > { %1885 = vmatpush.bf16.msrb.mxu2 %v4064_v22  ;;  %1899 = vmatpush.bf16.msrb.mxu3 %v4059_v19 }
 0x246   : > { %1858 = vmatpush.bf16.msrb.mxu0 %v4079_v27  ;;  %1872 = vmatpush.bf16.msrb.mxu1 %v4084_v33 }
 0x247   : > { %1886 = vmatpush.bf16.msrb.mxu2 %v4091_v39  ;;  %1900 = vmatpush.bf16.msrb.mxu3 %v4086_v34 }
 0x24a   : > { %1859 = vmatpush.bf16.msrb.mxu0 %v4106_v46  ;;  %1873 = vmatpush.bf16.msrb.mxu1 %v4111_v53 }
 0x24b   : > { %1887 = vmatpush.bf16.msrb.mxu2 %v4118_v58  ;;  %1901 = vmatpush.bf16.msrb.mxu3 %v4113_v54 }
 0x24e   : > { %1860 = vmatpush.bf16.msrb.mxu0 %v4133_v2  ;;  %1874 = vmatpush.bf16.msrb.mxu1 %v4138_v8 }
 0x24f   : > { %1888 = vmatpush.bf16.msrb.mxu2 %v4156_v15  ;;  %1902 = vmatpush.bf16.msrb.mxu3 %v4140_v10 }
 0x2ad   : > { %v1428_v11 = vpop.f32.mrf.mxu0  ;;  %v1442_v49 = vpop.f32.mrf.mxu1 }
 0x2ae   : > { %v1475_v63 = vadd.f32 %v1428_v11, %v1405_v23  ;;  %v1476_v32 = vadd.f32 %v1442_v49, %v1406_v40 }
 0x2b0   : > { %v3153_v57 = vmul.f32 -1.442695, %v1475_v63  ;;  %v3155_v3 = vmul.f32 -1.442695, %v1476_v32 }
 0x2b2   : > { %3449 = vpow2.f32 %v3153_v57 }
 0x2b3   : > { %3451 = vpow2.f32 %v3155_v3 }
 0x2b4   : > { %v1470_v62 = vpop.f32.mrf.mxu3  ;;  %v1456_v25 = vpop.f32.mrf.mxu2 }
 0x2b5   : > { %v1478_v28 = vadd.f32 %v1470_v62, %v1408_v17  ;;  %v1430_v38 = vpop.f32.mrf.mxu0  ;;  %v1444_v20 = vpop.f32.mrf.mxu1  ;;  %v1477_v11 = vadd.f32 %v1456_v25, %v1407_v12 }
 0x2b6   : > { %v1479_v13 = vadd.f32 %v1430_v38, %v1409_v24  ;;  %v1480_v44 = vadd.f32 %v1444_v20, %v1410_v43 }
 0x2b7   : > { %v3157_v0 = vmul.f32 -1.442695, %v1478_v28 }
 0x2b8   : > { %v3450_v48 = vpop.eup %3449  ;;  %v3154_v56 = vmul.f32 -1.442695, %v1479_v13  ;;  %v3156_v61 = vmul.f32 -1.442695, %v1480_v44 }
 0x2b9   : > { %v3452_v45 = vpop.eup %3451  ;;  %v1489_v26 = vadd.f32 1.0, %v3450_v48  ;;  %3453 = vpow2.f32 %v3157_v0  ;;  %v1411_v48 = vld [vmem:[%s4493_s11 + $0x30] sm:$0xff]  ;;  %s3179_s11 = sshll.u32 %s4660_s25, 2 }
 0x2ba   : > { %v1527_v50 = vadd.f32 1.0, %v3452_v45  ;;  %3455 = vpow2.f32 %v3154_v56  ;;  %s2046_s21 = scalar_lea.vmem %s4368_s1, %s3179_s11 [#allocation10] }
 0x2bb   : > { %3457 = vrcp.f32 %v1489_v26  ;;  %v1500_v20 = vand.u32 2147483647, %v1489_v26  ;;  %v1502_v13 = vand.u32 2147483648, %v1489_v26  ;;  %vm1496_vm3 = vweird.f32 %v1489_v26 }
 0x2bc   : > { %3459 = vrcp.f32 %v1527_v50  ;;  %v1472_v21 = vpop.f32.mrf.mxu3  ;;  %v1458_v38 = vpop.f32.mrf.mxu2  ;;  %v1540_v44 = vand.u32 2147483648, %v1527_v50  ;;  %v1538_v45 = vand.u32 2147483647, %v1527_v50  ;;  %vm1534_vm4 = vweird.f32 %v1527_v50 }
 0x2bd   : > { %3461 = vpow2.f32 %v3156_v61  ;;  %v1482_v16 = vadd.f32 %v1472_v21, %v1412_v31  ;;  %v1481_v61 = vadd.f32 %v1458_v38, %v1411_v48  ;;  %vm1501_vm6 = vcmp.eq.f32.partialorder %v1500_v20, 8.507059e+37 }
 0x2be   : > { %vm1539_vm8 = vcmp.eq.f32.partialorder %v1538_v45, 8.507059e+37 }
 0x2bf   : > { %v3454_v7 = vpop.eup %3453  ;;  %v3158_v32 = vmul.f32 -1.442695, %v1482_v16  ;;  %v1503_v16 = vor.u32 1.1754944e-38, %v1502_v13 }
 0x2c0   : > { %v3456_v23 = vpop.eup %3455  ;;  %v4502_v40 = vadd.f32 1.0, %v3454_v7 }
 0x2c1   : > { %v3458_v49 = vpop.eup %3457  ;;  %v4504_v63 = vadd.f32 1.0, %v3456_v23  ;;  %v1541_v23 = vor.u32 1.1754944e-38, %v1540_v44 }
 0x2c2   : > { %v3460_v57 = vpop.eup %3459  ;;  %v1492_v3 = vmul.f32 %v3458_v49, %v1489_v26  ;;  %3463 = vrcp.f32 %v4502_v40  ;;  %vm1497_vm1 = vweird.f32 %v3458_v49 }
 0x2c3   : > { %v3462_v17 = vpop.eup %3461  ;;  %v1530_v62 = vmul.f32 %v3460_v57, %v1527_v50  ;;  %3465 = vrcp.f32 %v4504_v63  ;;  %vm1535_vm2 = vweird.f32 %v3460_v57  ;;  %vm1498_vm5 = vmor %vm1496_vm3, %vm1497_vm1  ;;  %vm1511_vm10 = vweird.f32 %v4504_v63 }
 0x2c4   : > { %v1493_v28 = vsub.f32 1.0, %v1492_v3  ;;  %3467 = vtanh.f32 %v1477_v11  ;;  %v4508_v24 = vadd.f32 1.0, %v3462_v17  ;;  %vm1536_vm7 = vmor %vm1534_vm4, %vm1535_vm2  ;;  %vm1574_vm2 = vweird.f32 %v4502_v40 }
 0x2c5   : > { %v1531_v43 = vsub.f32 1.0, %v1530_v62  ;;  %3469 = vpow2.f32 %v3158_v32 }
 0x2c6   : > { %v1494_v0 = vmul.f32 %v3458_v49, %v1493_v28  ;;  %3471 = vrcp.f32 %v4508_v24  ;;  %v1555_v45 = vand.u32 2147483648, %v4508_v24  ;;  %vm1549_vm14 = vweird.f32 %v4508_v24 }
 0x2c7   : > { %v1532_v56 = vmul.f32 %v3460_v57, %v1531_v43  ;;  %3473 = vtanh.f32 %v1481_v61  ;;  %v1515_v43 = vand.u32 2147483647, %v4504_v63 }
 0x2c8   : > { %v4512_v25 = vpop.eup %3463  ;;  %v1495_v21 = vadd.f32 %v3458_v49, %v1494_v0  ;;  %v1517_v0 = vand.u32 2147483648, %v4504_v63 }
 0x2c9   : > { %v3466_v31 = vpop.eup %3465  ;;  %v1533_v7 = vadd.f32 %v3460_v57, %v1532_v56  ;;  %v1570_v32 = vmul.f32 %v4512_v25, %v4502_v40  ;;  %vm1516_vm13 = vcmp.eq.f32.partialorder %v1515_v43, 8.507059e+37  ;;  %vm1575_vm1 = vweird.f32 %v4512_v25 }
 0x2ca   : > { %v3468_v12 = vpop.eup %3467  ;;  %v1499_v11 = vsel %vm1498_vm5, %v3458_v49, %v1495_v21  ;;  %v1507_v3 = vmul.f32 %v3466_v31, %v4504_v63  ;;  %vm1512_vm9 = vweird.f32 %v3466_v31  ;;  %v1553_v21 = vand.u32 2147483647, %v4508_v24  ;;  %vm1576_vm3 = vmor %vm1574_vm2, %vm1575_vm1 }
 0x2cb   : > { %v3470_v17 = vpop.eup %3469  ;;  %v1504_v62 = vsel %vm1501_vm6, %v1503_v16, %v1499_v11  ;;  %v1537_v28 = vsel %vm1536_vm7, %v3460_v57, %v1533_v7  ;;  %v1571_v48 = vsub.f32 1.0, %v1570_v32  ;;  %vm1513_vm12 = vmor %vm1511_vm10, %vm1512_vm9  ;;  %v1556_v63 = vor.u32 1.1754944e-38, %v1555_v45 }
 0x2cc   : > { %v3472_v26 = vpop.eup %3471  ;;  %v1542_v50 = vsel %vm1539_vm8, %v1541_v23, %v1537_v28  ;;  %v1508_v38 = vsub.f32 1.0, %v1507_v3  ;;  %v1568_v20 = vadd.f32 1.0, %v3470_v17  ;;  %v1601_v44 = vmul.f32 %v3468_v12, %v1504_v62 }
 0x2cd   : > { %v1599_v13 = vmul.f32 %v1542_v50, %v4439_v35  ;;  %v1545_v49 = vmul.f32 %v3472_v26, %v4508_v24  ;;  %v3474_v16 = vpop.eup %3473  ;;  %vm1550_vm11 = vweird.f32 %v3472_v26  ;;  %v1518_v12 = vor.u32 1.1754944e-38, %v1517_v0 }
 0x2ce   : > { %v1509_v56 = vmul.f32 %v3466_v31, %v1508_v38  ;;  %3475 = vrcp.f32 %v1568_v20  ;;  %v1572_v23 = vmul.f32 %v4512_v25, %v1571_v48  ;;  %vm1551_vm15 = vmor %vm1549_vm14, %vm1550_vm11  ;;  %vm1554_vm0 = vcmp.eq.f32.partialorder %v1553_v21, 8.507059e+37 }
 0x2cf   : > { %v1546_v57 = vsub.f32 1.0, %v1545_v49  ;;  %v4524_v7 = vadd.f32 %v1601_v44, %v1599_v13  ;;  %v1578_v44 = vand.u32 2147483647, %v4502_v40  ;;  %vm1589_vm5 = vweird.f32 %v1568_v20 }
 0x2d0   : > { %v1510_v61 = vadd.f32 %v3466_v31, %v1509_v56  ;;  %v1573_v13 = vadd.f32 %v4512_v25, %v1572_v23  ;;  %v1593_v45 = vand.u32 2147483647, %v1568_v20 }
 0x2d1   : > { %v1547_v35 = vmul.f32 %v3472_v26, %v1546_v57  ;;  %3477 = vtanh.f32 %v4524_v7  ;;  %v1595_v57 = vand.u32 2147483648, %v1568_v20  ;;  %vm1579_vm6 = vcmp.eq.f32.partialorder %v1578_v44, 8.507059e+37 }
 0x2d2   : > { %v1514_v11 = vsel %vm1513_vm12, %v3466_v31, %v1510_v61  ;;  %v1580_v31 = vand.u32 2147483648, %v4502_v40  ;;  %v1577_v0 = vsel %vm1576_vm3, %v4512_v25, %v1573_v13  ;;  %vm1594_vm8 = vcmp.eq.f32.partialorder %v1593_v45, 8.507059e+37 }
 0x2d3   : > { %v1519_v32 = vsel %vm1516_vm13, %v1518_v12, %v1514_v11  ;;  %v1548_v3 = vadd.f32 %v3472_v26, %v1547_v35 }
 0x2d4   : > { %v3476_v17 = vpop.eup %3475  ;;  %v1602_v28 = vmul.f32 %v3474_v16, %v1519_v32  ;;  %v1581_v56 = vor.u32 1.1754944e-38, %v1580_v31  ;;  %v1596_v16 = vor.u32 1.1754944e-38, %v1595_v57 }
 0x2d5   : > { %v1552_v62 = vsel %vm1551_vm15, %v3472_v26, %v1548_v3  ;;  %v1585_v50 = vmul.f32 %v3476_v17, %v1568_v20  ;;  %vm1590_vm4 = vweird.f32 %v3476_v17  ;;  %v1622_v20 = vld [vmem:[%s4578_s22] sm:$0xff] }
 0x2d6   : > { %v1557_v38 = vsel %vm1554_vm0, %v1556_v63, %v1552_v62  ;;  %vm1591_vm7 = vmor %vm1589_vm5, %vm1590_vm4  ;;  %v1582_v40 = vsel %vm1579_vm6, %v1581_v56, %v1577_v0  ;;  %v1626_v0 = vld [vmem:[%s4578_s22 + $0x20] sm:$0xff]  ;;  %v1627_v56 = vld [vmem:[%s4578_s22 + $0x28] sm:$0xff] }
 0x2d7   : > { %v1600_v24 = vmul.f32 %v1557_v38, %v4450_v4  ;;  %v1586_v43 = vsub.f32 1.0, %v1585_v50  ;;  %v3478_v48 = vpop.eup %3477 }
 0x2d8   : > { %v1607_v21 = vmul.f32 %v3478_v48, %v1582_v40 }
 0x2d9   : > { %v4535_v49 = vadd.f32 %v1602_v28, %v1600_v24  ;;  %v1587_v26 = vmul.f32 %v3476_v17, %v1586_v43  ;;  %v1623_v28 = vld [vmem:[%s4578_s22 + $0x8] sm:$0xff]  ;;  %v1625_v43 = vld [vmem:[%s4578_s22 + $0x18] sm:$0xff] }
 0x2da   : > { %v1609_v23 = vpack.c.bf16 %v1607_v21, %v1607_v21 }
 0x2db   : > { %3479 = vtanh.f32 %v4535_v49  ;;  %v1588_v4 = vadd.f32 %v3476_v17, %v1587_v26 }
 0x2dc   : > { %v1632_v3 = vunpack.c.l.b16 %v1609_v23 }
 0x2dd   : > { %v1592_v61 = vsel %vm1591_vm7, %v3476_v17, %v1588_v4 }
 0x2de   : > { %v1597_v12 = vsel %vm1594_vm8, %v1596_v16, %v1592_v61 }
 0x2e1   : > { %v3480_v35 = vpop.eup %3479 }
 0x2e2   : > { %v1608_v25 = vmul.f32 %v3480_v35, %v1597_v12 }
 0x2e4   : > { %v1610_v11 = vpack.c.bf16 %v1608_v25, %v1608_v25  ;;  %v3285_v32 = vpack.c.bf16 %v1608_v25, %v1607_v21 }
 0x2e6   : > { %3286 = vst [vmem:[%s1612_s6] sm:$0xff] %v3285_v32   ;;  %v1633_v63 = vunpack.c.l.b16 %v1610_v11  ;;  %s2049_s6 = scalar_select %p808_p5, 2, 5 }
 0x2e8   : > { %v1634_v62 = vpack.c.b16 %v1633_v63, %v1632_v3  ;;  %v1629_v3 = vld [vmem:[%s4578_s22 + $0x38] sm:$0xff]  ;;  %s3180_s5 = sshll.u32 %s2049_s6, 4 }
 0x2e9   : > { %s4745_s13 = sshra.s32 %s3180_s5, 3 }
 0x2ea   : > { %1644 = vmatmul.bf16.vlgmr.msra.gmra.mxu0 %v1634_v62  ;;  %1658 = vmatmul.bf16.vlgmr.msra.gmra.mxu1 %v1634_v62  ;;  %s3269_s14 = sshll.u32 %s4745_s13, 5 }
 0x2eb   : > { %1672 = vmatmul.bf16.vlgmr.msra.gmra.mxu2 %v1634_v62  ;;  %1686 = vmatmul.bf16.vlgmr.msra.gmra.mxu3 %v1634_v62  ;;  %s4748_s27 = scalar_lea.vmem [#allocation4], %s3269_s14 }
 0x2ec   : > { %2070 = vmatpush.bf16.msra.mxu0 %v3955_v29  ;;  %2084 = vmatpush.bf16.msra.mxu1 %v3957_v30 }
 0x2ed   : > { %2098 = vmatpush.bf16.msra.mxu2 %v3967_v37  ;;  %2112 = vmatpush.bf16.msra.mxu3 %v3965_v36 }
 0x2f0   : > { %2071 = vmatpush.bf16.msra.mxu0 %v3974_v41  ;;  %2085 = vmatpush.bf16.msra.mxu1 %v3976_v42 }
 0x2f1   : > { %2099 = vmatpush.bf16.msra.mxu2 %v3986_v47  ;;  %2113 = vmatpush.bf16.msra.mxu3 %v3993_v51 }
 0x2f4   : > { %2072 = vmatpush.bf16.msra.mxu0 %v3995_v52  ;;  %2086 = vmatpush.bf16.msra.mxu1 %v4000_v55 }
 0x2f5   : > { %2100 = vmatpush.bf16.msra.mxu2 %v4006_v59  ;;  %2114 = vmatpush.bf16.msra.mxu3 %v4010_v60 }
 0x2f8   : > { %2073 = vmatpush.bf16.msra.mxu0 %v4025_v1  ;;  %2087 = vmatpush.bf16.msra.mxu1 %v4030_v5 }
 0x2f9   : > { %2101 = vmatpush.bf16.msra.mxu2 %v4037_v9  ;;  %2115 = vmatpush.bf16.msra.mxu3 %v4032_v6 }
 0x2fc   : > { %2074 = vmatpush.bf16.msra.mxu0 %v4052_v14  ;;  %2088 = vmatpush.bf16.msra.mxu1 %v4057_v18 }
 0x2fd   : > { %2102 = vmatpush.bf16.msra.mxu2 %v4064_v22  ;;  %2116 = vmatpush.bf16.msra.mxu3 %v4059_v19 }
 0x300   : > { %2075 = vmatpush.bf16.msra.mxu0 %v4079_v27  ;;  %2089 = vmatpush.bf16.msra.mxu1 %v4084_v33 }
 0x301   : > { %2103 = vmatpush.bf16.msra.mxu2 %v4091_v39  ;;  %2117 = vmatpush.bf16.msra.mxu3 %v4086_v34 }
 0x304   : > { %2076 = vmatpush.bf16.msra.mxu0 %v4106_v46  ;;  %2090 = vmatpush.bf16.msra.mxu1 %v4111_v53 }
 0x305   : > { %2104 = vmatpush.bf16.msra.mxu2 %v4118_v58  ;;  %2118 = vmatpush.bf16.msra.mxu3 %v4113_v54 }
 0x308   : > { %2077 = vmatpush.bf16.msra.mxu0 %v4133_v2  ;;  %2091 = vmatpush.bf16.msra.mxu1 %v4138_v8 }
 0x309   : > { %2105 = vmatpush.bf16.msra.mxu2 %v4156_v15  ;;  %2119 = vmatpush.bf16.msra.mxu3 %v4140_v10 }
 0x367   : > { %v1645_v17 = vpop.f32.mrf.mxu0  ;;  %v1659_v50 = vpop.f32.mrf.mxu1 }
 0x368   : > { %v1692_v38 = vadd.f32 %v1645_v17, %v1622_v20  ;;  %v1693_v13 = vadd.f32 %v1659_v50, %v1623_v28 }
 0x36a   : > { %v3163_v31 = vmul.f32 -1.442695, %v1692_v38  ;;  %v3165_v24 = vmul.f32 -1.442695, %v1693_v13  ;;  %v1624_v13 = vld [vmem:[%s4578_s22 + $0x10] sm:$0xff] }
 0x36c   : > { %3481 = vpow2.f32 %v3163_v31 }
 0x36d   : > { %3483 = vpow2.f32 %v3165_v24 }
 0x36e   : > { %v1687_v44 = vpop.f32.mrf.mxu3  ;;  %v1673_v23 = vpop.f32.mrf.mxu2 }
 0x36f   : > { %v1695_v26 = vadd.f32 %v1687_v44, %v1625_v43  ;;  %v1647_v48 = vpop.f32.mrf.mxu0  ;;  %v1661_v57 = vpop.f32.mrf.mxu1  ;;  %v1694_v43 = vadd.f32 %v1673_v23, %v1624_v13  ;;  %v1628_v23 = vld [vmem:[%s4578_s22 + $0x30] sm:$0xff]  ;;  %s3189_s22 = sshll.u32 %s4745_s13, 2 }
 0x370   : > { %v1696_v4 = vadd.f32 %v1647_v48, %v1626_v0  ;;  %v1697_v45 = vadd.f32 %v1661_v57, %v1627_v56  ;;  %s2263_s24 = scalar_lea.vmem %s4368_s1, %s3189_s22 [#allocation10] }
 0x371   : > { %v3167_v40 = vmul.f32 -1.442695, %v1695_v26 }
 0x372   : > { %v3482_v61 = vpop.eup %3481  ;;  %v3164_v21 = vmul.f32 -1.442695, %v1696_v4  ;;  %v3166_v12 = vmul.f32 -1.442695, %v1697_v45 }
 0x373   : > { %v3484_v16 = vpop.eup %3483  ;;  %v1706_v35 = vadd.f32 1.0, %v3482_v61  ;;  %3485 = vpow2.f32 %v3167_v40 }
 0x374   : > { %v1744_v25 = vadd.f32 1.0, %v3484_v16  ;;  %3487 = vpow2.f32 %v3164_v21 }
 0x375   : > { %3489 = vrcp.f32 %v1706_v35  ;;  %v1717_v57 = vand.u32 2147483647, %v1706_v35  ;;  %v1719_v4 = vand.u32 2147483648, %v1706_v35  ;;  %vm1713_vm11 = vweird.f32 %v1706_v35 }
 0x376   : > { %3491 = vrcp.f32 %v1744_v25  ;;  %v1689_v11 = vpop.f32.mrf.mxu3  ;;  %v1757_v56 = vand.u32 2147483648, %v1744_v25  ;;  %v1755_v40 = vand.u32 2147483647, %v1744_v25  ;;  %v1675_v61 = vpop.f32.mrf.mxu2  ;;  %vm1751_vm12 = vweird.f32 %v1744_v25 }
 0x377   : > { %3493 = vpow2.f32 %v3166_v12  ;;  %v1699_v20 = vadd.f32 %v1689_v11, %v1629_v3  ;;  %v1720_v11 = vor.u32 1.1754944e-38, %v1719_v4  ;;  %v1698_v3 = vadd.f32 %v1675_v61, %v1628_v23 }
 0x378   : > { %vm1718_vm15 = vcmp.eq.f32.partialorder %v1717_v57, 8.507059e+37  ;;  %vm1756_vm0 = vcmp.eq.f32.partialorder %v1755_v40, 8.507059e+37 }
 0x379   : > { %v3486_v32 = vpop.eup %3485  ;;  %v3168_v0 = vmul.f32 -1.442695, %v1699_v20  ;;  %v1758_v20 = vor.u32 1.1754944e-38, %v1757_v56 }
 0x37a   : > { %v3488_v63 = vpop.eup %3487  ;;  %v4586_v62 = vadd.f32 1.0, %v3486_v32 }
 0x37b   : > { %v3490_v17 = vpop.eup %3489  ;;  %v4588_v28 = vadd.f32 1.0, %v3488_v63 }
 0x37c   : > { %v3492_v50 = vpop.eup %3491  ;;  %v1709_v38 = vmul.f32 %v3490_v17, %v1706_v35  ;;  %3495 = vrcp.f32 %v4586_v62  ;;  %vm1714_vm9 = vweird.f32 %v3490_v17 }
 0x37d   : > { %v3494_v31 = vpop.eup %3493  ;;  %v1747_v24 = vmul.f32 %v3492_v50, %v1744_v25  ;;  %3497 = vrcp.f32 %v4588_v28  ;;  %vm1752_vm10 = vweird.f32 %v3492_v50  ;;  %vm1715_vm13 = vmor %vm1713_vm11, %vm1714_vm9  ;;  %v1732_v57 = vand.u32 2147483647, %v4588_v28 }
 0x37e   : > { %v1710_v44 = vsub.f32 1.0, %v1709_v38  ;;  %v4593_v26 = vadd.f32 1.0, %v3494_v31  ;;  %vm1753_vm14 = vmor %vm1751_vm12, %vm1752_vm10  ;;  %vm1728_vm2 = vweird.f32 %v4588_v28  ;;  %vm1791_vm10 = vweird.f32 %v4586_v62 }
 0x37f   : > { %v1748_v48 = vsub.f32 1.0, %v1747_v24  ;;  %vm1733_vm6 = vcmp.eq.f32.partialorder %v1732_v57, 8.507059e+37 }
 0x380   : > { %v1711_v45 = vmul.f32 %v3490_v17, %v1710_v44  ;;  %3499 = vrcp.f32 %v4593_v26  ;;  %vm1766_vm4 = vweird.f32 %v4593_v26 }
 0x381   : > { %v1749_v21 = vmul.f32 %v3492_v50, %v1748_v48  ;;  %3501 = vtanh.f32 %v1694_v43 }
 0x382   : > { %v4596_v16 = vpop.eup %3495  ;;  %v1712_v12 = vadd.f32 %v3490_v17, %v1711_v45  ;;  %3503 = vpow2.f32 %v3168_v0 }
 0x383   : > { %v1750_v32 = vadd.f32 %v3492_v50, %v1749_v21  ;;  %v3498_v63 = vpop.eup %3497  ;;  %v1787_v24 = vmul.f32 %v4596_v16, %v4586_v62  ;;  %3505 = vtanh.f32 %v1698_v3  ;;  %v1772_v21 = vand.u32 2147483648, %v4593_v26 }
 0x384   : > { %v1716_v38 = vsel %vm1715_vm13, %v3490_v17, %v1712_v12  ;;  %v1724_v35 = vmul.f32 %v3498_v63, %v4588_v28  ;;  %vm1729_vm1 = vweird.f32 %v3498_v63  ;;  %vm1792_vm9 = vweird.f32 %v4596_v16 }
 0x385   : > { %v1721_v13 = vsel %vm1718_vm15, %v1720_v11, %v1716_v38  ;;  %v1754_v31 = vsel %vm1753_vm14, %v3492_v50, %v1750_v32  ;;  %v1734_v50 = vand.u32 2147483648, %v4588_v28  ;;  %v1788_v45 = vsub.f32 1.0, %v1787_v24  ;;  %vm1730_vm5 = vmor %vm1728_vm2, %vm1729_vm1 }
 0x386   : > { %v3500_v43 = vpop.eup %3499  ;;  %v1759_v44 = vsel %vm1756_vm0, %v1758_v20, %v1754_v31  ;;  %v1725_v0 = vsub.f32 1.0, %v1724_v35  ;;  %v1770_v32 = vand.u32 2147483647, %v4593_v26  ;;  %v1773_v28 = vor.u32 1.1754944e-38, %v1772_v21  ;;  %vm1793_vm11 = vmor %vm1791_vm10, %vm1792_vm9 }
 0x387   : > { %v3502_v25 = vpop.eup %3501  ;;  %v1762_v48 = vmul.f32 %v3500_v43, %v4593_v26  ;;  %v1816_v56 = vmul.f32 %v1759_v44, %v4524_v7  ;;  %vm1767_vm3 = vweird.f32 %v3500_v43  ;;  %v1735_v3 = vor.u32 1.1754944e-38, %v1734_v50 }
 0x388   : > { %v3504_v4 = vpop.eup %3503  ;;  %v1818_v17 = vmul.f32 %v3502_v25, %v1721_v13  ;;  %v1726_v61 = vmul.f32 %v3498_v63, %v1725_v0  ;;  %v1789_v38 = vmul.f32 %v4596_v16, %v1788_v45  ;;  %vm1768_vm7 = vmor %vm1766_vm4, %vm1767_vm3  ;;  %vm1771_vm8 = vcmp.eq.f32.partialorder %v1770_v32, 8.507059e+37 }
 0x389   : > { %v1763_v40 = vsub.f32 1.0, %v1762_v48  ;;  %v1785_v12 = vadd.f32 1.0, %v3504_v4  ;;  %v3506_v20 = vpop.eup %3505  ;;  %v1795_v4 = vand.u32 2147483647, %v4586_v62 }
 0x38a   : > { %v1727_v11 = vadd.f32 %v3498_v63, %v1726_v61  ;;  %v4609_v7 = vadd.f32 %v1818_v17, %v1816_v56  ;;  %v1790_v26 = vadd.f32 %v4596_v16, %v1789_v38 }
 0x38b   : > { %v1764_v23 = vmul.f32 %v3500_v43, %v1763_v40  ;;  %3507 = vrcp.f32 %v1785_v12  ;;  %vm1796_vm12 = vcmp.eq.f32.partialorder %v1795_v4, 8.507059e+37  ;;  %v1810_v61 = vand.u32 2147483647, %v1785_v12 }
 0x38c   : > { %v1731_v13 = vsel %vm1730_vm5, %v3498_v63, %v1727_v11  ;;  %3509 = vtanh.f32 %v4609_v7  ;;  %v1797_v63 = vand.u32 2147483648, %v4586_v62  ;;  %v1794_v17 = vsel %vm1793_vm11, %v4596_v16, %v1790_v26 }
 0x38d   : > { %v1765_v31 = vadd.f32 %v3500_v43, %v1764_v23  ;;  %v1736_v24 = vsel %vm1733_vm6, %v1735_v3, %v1731_v13  ;;  %vm1806_vm14 = vweird.f32 %v1785_v12  ;;  %vm1811_vm0 = vcmp.eq.f32.partialorder %v1810_v61, 8.507059e+37 }
 0x38e   : > { %v1819_v44 = vmul.f32 %v3506_v20, %v1736_v24  ;;  %v1798_v45 = vor.u32 1.1754944e-38, %v1797_v63 }
 0x38f   : > { %v1769_v35 = vsel %vm1768_vm7, %v3500_v43, %v1765_v31 }
 0x390   : > { %v1774_v25 = vsel %vm1771_vm8, %v1773_v28, %v1769_v35  ;;  %v1799_v21 = vsel %vm1796_vm12, %v1798_v45, %v1794_v17 }
 0x391   : > { %v1817_v0 = vmul.f32 %v1774_v25, %v4535_v49  ;;  %v3508_v48 = vpop.eup %3507  ;;  %v1812_v49 = vand.u32 2147483648, %v1785_v12  ;;  %v1840_v25 = vld [vmem:[%s4663_s10 + $0x8] sm:$0xff] }
 0x392   : > { %v1802_v43 = vmul.f32 %v3508_v48, %v1785_v12  ;;  %v3510_v50 = vpop.eup %3509  ;;  %vm1807_vm13 = vweird.f32 %v3508_v48  ;;  %v1839_v12 = vld [vmem:[%s4663_s10] sm:$0xff] }
 0x393   : > { %v4620_v56 = vadd.f32 %v1819_v44, %v1817_v0  ;;  %v1824_v23 = vmul.f32 %v3510_v50, %v1799_v21  ;;  %vm1808_vm15 = vmor %vm1806_vm14, %vm1807_vm13  ;;  %v1813_v11 = vor.u32 1.1754944e-38, %v1812_v49  ;;  %v1843_v50 = vld [vmem:[%s4663_s10 + $0x20] sm:$0xff]  ;;  %v1844_v49 = vld [vmem:[%s4663_s10 + $0x28] sm:$0xff] }
 0x394   : > { %v1803_v57 = vsub.f32 1.0, %v1802_v43  ;;  %v1842_v43 = vld [vmem:[%s4663_s10 + $0x18] sm:$0xff] }
 0x395   : > { %3511 = vtanh.f32 %v4620_v56  ;;  %v1826_v38 = vpack.c.bf16 %v1824_v23, %v1824_v23 }
 0x396   : > { %v1804_v40 = vmul.f32 %v3508_v48, %v1803_v57 }
 0x397   : > { %v1849_v28 = vunpack.c.l.b16 %v1826_v38 }
 0x398   : > { %v1805_v62 = vadd.f32 %v3508_v48, %v1804_v40 }
 0x39a   : > { %v1809_v16 = vsel %vm1808_vm15, %v3508_v48, %v1805_v62 }
 0x39b   : > { %v3512_v32 = vpop.eup %3511  ;;  %v1814_v3 = vsel %vm1811_vm0, %v1813_v11, %v1809_v16 }
 0x39c   : > { %v1825_v20 = vmul.f32 %v3512_v32, %v1814_v3 }
 0x39e   : > { %v1827_v13 = vpack.c.bf16 %v1825_v20, %v1825_v20  ;;  %v3290_v31 = vpack.c.bf16 %v1825_v20, %v1824_v23 }
 0x3a0   : > { %3291 = vst [vmem:[%s1829_s26] sm:$0xff] %v3290_v31   ;;  %v1850_v24 = vunpack.c.l.b16 %v1827_v13  ;;  %s2266_s26 = scalar_select %p808_p5, 1, 6 }
 0x3a2   : > { %v1851_v35 = vpack.c.b16 %v1850_v24, %v1849_v28  ;;  %v1846_v28 = vld [vmem:[%s4663_s10 + $0x38] sm:$0xff]  ;;  %s3190_s7 = sshll.u32 %s2266_s26, 4 }
 0x3a3   : > { %s4798_s8 = sshra.s32 %s3190_s7, 3  ;;  %s2724_s7 = sshll.u32 %s4368_s1, 4  ;;  %s2725_s7 = int_to_ptr.vmem [resolvable:$true] %s2724_s7 }
 0x3a4   : > { %1861 = vmatmul.bf16.vlgmr.msrb.gmra.mxu0 %v1851_v35  ;;  %1875 = vmatmul.bf16.vlgmr.msrb.gmra.mxu1 %v1851_v35  ;;  %s3270_s25 = sshll.u32 %s4798_s8, 5 }
 0x3a5   : > { %1889 = vmatmul.bf16.vlgmr.msrb.gmra.mxu2 %v1851_v35  ;;  %1903 = vmatmul.bf16.vlgmr.msrb.gmra.mxu3 %v1851_v35  ;;  %s4801_s9 = scalar_lea.vmem [#allocation4], %s3270_s25 }
 0x3a6   : > { %2287 = vmatpush.bf16.msrb.mxu0 %v3955_v29  ;;  %2301 = vmatpush.bf16.msrb.mxu1 %v3957_v30 }
 0x3a7   : > { %2315 = vmatpush.bf16.msrb.mxu2 %v3967_v37  ;;  %2329 = vmatpush.bf16.msrb.mxu3 %v3965_v36 }
 0x3aa   : > { %2288 = vmatpush.bf16.msrb.mxu0 %v3974_v41  ;;  %2302 = vmatpush.bf16.msrb.mxu1 %v3976_v42 }
 0x3ab   : > { %2316 = vmatpush.bf16.msrb.mxu2 %v3986_v47  ;;  %2330 = vmatpush.bf16.msrb.mxu3 %v3993_v51 }
 0x3ae   : > { %2289 = vmatpush.bf16.msrb.mxu0 %v3995_v52  ;;  %2303 = vmatpush.bf16.msrb.mxu1 %v4000_v55 }
 0x3af   : > { %2317 = vmatpush.bf16.msrb.mxu2 %v4006_v59  ;;  %2331 = vmatpush.bf16.msrb.mxu3 %v4010_v60 }
 0x3b2   : > { %2290 = vmatpush.bf16.msrb.mxu0 %v4025_v1  ;;  %2304 = vmatpush.bf16.msrb.mxu1 %v4030_v5 }
 0x3b3   : > { %2318 = vmatpush.bf16.msrb.mxu2 %v4037_v9  ;;  %2332 = vmatpush.bf16.msrb.mxu3 %v4032_v6 }
 0x3b6   : > { %2291 = vmatpush.bf16.msrb.mxu0 %v4052_v14  ;;  %2305 = vmatpush.bf16.msrb.mxu1 %v4057_v18 }
 0x3b7   : > { %2319 = vmatpush.bf16.msrb.mxu2 %v4064_v22  ;;  %2333 = vmatpush.bf16.msrb.mxu3 %v4059_v19 }
 0x3ba   : > { %2292 = vmatpush.bf16.msrb.mxu0 %v4079_v27  ;;  %2306 = vmatpush.bf16.msrb.mxu1 %v4084_v33 }
 0x3bb   : > { %2320 = vmatpush.bf16.msrb.mxu2 %v4091_v39  ;;  %2334 = vmatpush.bf16.msrb.mxu3 %v4086_v34 }
 0x3be   : > { %2293 = vmatpush.bf16.msrb.mxu0 %v4106_v46  ;;  %2307 = vmatpush.bf16.msrb.mxu1 %v4111_v53 }
 0x3bf   : > { %2321 = vmatpush.bf16.msrb.mxu2 %v4118_v58  ;;  %2335 = vmatpush.bf16.msrb.mxu3 %v4113_v54 }
 0x3c2   : > { %2294 = vmatpush.bf16.msrb.mxu0 %v4133_v2  ;;  %2308 = vmatpush.bf16.msrb.mxu1 %v4138_v8 }
 0x3c3   : > { %2322 = vmatpush.bf16.msrb.mxu2 %v4156_v15  ;;  %2336 = vmatpush.bf16.msrb.mxu3 %v4140_v10 }
 0x421   : > { %v1862_v44 = vpop.f32.mrf.mxu0  ;;  %v1876_v26 = vpop.f32.mrf.mxu1 }
 0x422   : > { %v1909_v0 = vadd.f32 %v1862_v44, %v1839_v12  ;;  %v1910_v48 = vadd.f32 %v1876_v26, %v1840_v25 }
 0x424   : > { %v3173_v63 = vmul.f32 -1.442695, %v1909_v0  ;;  %v3175_v4 = vmul.f32 -1.442695, %v1910_v48  ;;  %v1841_v48 = vld [vmem:[%s4663_s10 + $0x10] sm:$0xff] }
 0x426   : > { %3513 = vpow2.f32 %v3173_v63 }
 0x427   : > { %3515 = vpow2.f32 %v3175_v4 }
 0x428   : > { %v1904_v17 = vpop.f32.mrf.mxu3  ;;  %v1890_v38 = vpop.f32.mrf.mxu2 }
 0x429   : > { %v1912_v57 = vadd.f32 %v1904_v17, %v1842_v43  ;;  %v1864_v45 = vpop.f32.mrf.mxu0  ;;  %v1878_v40 = vpop.f32.mrf.mxu1  ;;  %v1911_v43 = vadd.f32 %v1890_v38, %v1841_v48  ;;  %v1845_v38 = vld [vmem:[%s4663_s10 + $0x30] sm:$0xff]  ;;  %s3199_s10 = sshll.u32 %s4798_s8, 2 }
 0x42a   : > { %v1913_v61 = vadd.f32 %v1864_v45, %v1843_v50  ;;  %v1914_v21 = vadd.f32 %v1878_v40, %v1844_v49  ;;  %s2480_s11 = scalar_lea.vmem %s4368_s1, %s3199_s10 [#allocation10] }
 0x42b   : > { %v3177_v62 = vmul.f32 -1.442695, %v1912_v57 }
 0x42c   : > { %v3514_v23 = vpop.eup %3513  ;;  %v3174_v11 = vmul.f32 -1.442695, %v1913_v61  ;;  %v3176_v3 = vmul.f32 -1.442695, %v1914_v21 }
 0x42d   : > { %v3516_v32 = vpop.eup %3515  ;;  %v1923_v16 = vadd.f32 1.0, %v3514_v23  ;;  %3517 = vpow2.f32 %v3177_v62 }
 0x42e   : > { %v1961_v20 = vadd.f32 1.0, %v3516_v32  ;;  %3519 = vpow2.f32 %v3174_v11 }
 0x42f   : > { %3521 = vrcp.f32 %v1923_v16  ;;  %v1934_v40 = vand.u32 2147483647, %v1923_v16  ;;  %v1936_v61 = vand.u32 2147483648, %v1923_v16  ;;  %vm1930_vm3 = vweird.f32 %v1923_v16 }
 0x430   : > { %3523 = vrcp.f32 %v1961_v20  ;;  %v1906_v13 = vpop.f32.mrf.mxu3  ;;  %v1974_v49 = vand.u32 2147483648, %v1961_v20  ;;  %v1972_v62 = vand.u32 2147483647, %v1961_v20  ;;  %v1892_v23 = vpop.f32.mrf.mxu2  ;;  %vm1968_vm4 = vweird.f32 %v1961_v20 }
 0x431   : > { %3525 = vpow2.f32 %v3176_v3  ;;  %v1916_v12 = vadd.f32 %v1906_v13, %v1846_v28  ;;  %v1937_v13 = vor.u32 1.1754944e-38, %v1936_v61  ;;  %v1915_v28 = vadd.f32 %v1892_v23, %v1845_v38 }
 0x432   : > { %vm1935_vm7 = vcmp.eq.f32.partialorder %v1934_v40, 8.507059e+37  ;;  %vm1973_vm8 = vcmp.eq.f32.partialorder %v1972_v62, 8.507059e+37 }
 0x433   : > { %v3518_v31 = vpop.eup %3517  ;;  %v3178_v50 = vmul.f32 -1.442695, %v1916_v12  ;;  %v1975_v12 = vor.u32 1.1754944e-38, %v1974_v49 }
 0x434   : > { %v3520_v24 = vpop.eup %3519  ;;  %v4671_v35 = vadd.f32 1.0, %v3518_v31 }
 0x435   : > { %v3522_v44 = vpop.eup %3521  ;;  %v4673_v25 = vadd.f32 1.0, %v3520_v24 }
 0x436   : > { %v3524_v26 = vpop.eup %3523  ;;  %v1926_v0 = vmul.f32 %v3522_v44, %v1923_v16  ;;  %3527 = vrcp.f32 %v4671_v35  ;;  %vm1931_vm1 = vweird.f32 %v3522_v44 }
 0x437   : > { %v3526_v63 = vpop.eup %3525  ;;  %v1964_v4 = vmul.f32 %v3524_v26, %v1961_v20  ;;  %3529 = vrcp.f32 %v4673_v25  ;;  %vm1969_vm2 = vweird.f32 %v3524_v26  ;;  %vm1932_vm5 = vmor %vm1930_vm3, %vm1931_vm1  ;;  %v1949_v40 = vand.u32 2147483647, %v4673_v25 }
 0x438   : > { %v1927_v17 = vsub.f32 1.0, %v1926_v0  ;;  %v4678_v57 = vadd.f32 1.0, %v3526_v63  ;;  %vm1970_vm6 = vmor %vm1968_vm4, %vm1969_vm2  ;;  %vm1945_vm10 = vweird.f32 %v4673_v25  ;;  %vm2008_vm2 = vweird.f32 %v4671_v35 }
 0x439   : > { %v1965_v45 = vsub.f32 1.0, %v1964_v4  ;;  %vm1950_vm14 = vcmp.eq.f32.partialorder %v1949_v40, 8.507059e+37 }
 0x43a   : > { %v1928_v21 = vmul.f32 %v3522_v44, %v1927_v17  ;;  %3531 = vrcp.f32 %v4678_v57  ;;  %vm1983_vm12 = vweird.f32 %v4678_v57 }
 0x43b   : > { %v1966_v11 = vmul.f32 %v3524_v26, %v1965_v45  ;;  %3533 = vtanh.f32 %v1911_v43 }
 0x43c   : > { %v4681_v32 = vpop.eup %3527  ;;  %v1929_v3 = vadd.f32 %v3522_v44, %v1928_v21  ;;  %3535 = vpow2.f32 %v3178_v50 }
 0x43d   : > { %v1967_v31 = vadd.f32 %v3524_v26, %v1966_v11  ;;  %v3530_v24 = vpop.eup %3529  ;;  %v2004_v4 = vmul.f32 %v4681_v32, %v4671_v35  ;;  %3537 = vtanh.f32 %v1915_v28  ;;  %v1989_v11 = vand.u32 2147483648, %v4678_v57 }
 0x43e   : > { %v1933_v0 = vsel %vm1932_vm5, %v3522_v44, %v1929_v3  ;;  %v1941_v16 = vmul.f32 %v3530_v24, %v4673_v25  ;;  %vm1946_vm9 = vweird.f32 %v3530_v24  ;;  %vm2009_vm1 = vweird.f32 %v4681_v32 }
 0x43f   : > { %v1938_v48 = vsel %vm1935_vm7, %v1937_v13, %v1933_v0  ;;  %v1971_v63 = vsel %vm1970_vm6, %v3524_v26, %v1967_v31  ;;  %v1951_v26 = vand.u32 2147483648, %v4673_v25  ;;  %v2005_v21 = vsub.f32 1.0, %v2004_v4  ;;  %vm1947_vm13 = vmor %vm1945_vm10, %vm1946_vm9 }
 0x440   : > { %v3532_v43 = vpop.eup %3531  ;;  %v1976_v17 = vsel %vm1973_vm8, %v1975_v12, %v1971_v63  ;;  %v1942_v50 = vsub.f32 1.0, %v1941_v16  ;;  %v1987_v31 = vand.u32 2147483647, %v4678_v57  ;;  %v1990_v25 = vor.u32 1.1754944e-38, %v1989_v11  ;;  %vm2010_vm3 = vmor %vm2008_vm2, %vm2009_vm1 }
 0x441   : > { %v3534_v20 = vpop.eup %3533  ;;  %v1979_v45 = vmul.f32 %v3532_v43, %v4678_v57  ;;  %v2033_v49 = vmul.f32 %v1976_v17, %v4609_v7  ;;  %vm1984_vm11 = vweird.f32 %v3532_v43  ;;  %v1952_v28 = vor.u32 1.1754944e-38, %v1951_v26 }
 0x442   : > { %v3536_v61 = vpop.eup %3535  ;;  %v2035_v44 = vmul.f32 %v3534_v20, %v1938_v48  ;;  %v1943_v23 = vmul.f32 %v3530_v24, %v1942_v50  ;;  %v2006_v0 = vmul.f32 %v4681_v32, %v2005_v21  ;;  %vm1985_vm15 = vmor %vm1983_vm12, %vm1984_vm11  ;;  %vm1988_vm0 = vcmp.eq.f32.partialorder %v1987_v31, 8.507059e+37 }
 0x443   : > { %v1980_v62 = vsub.f32 1.0, %v1979_v45  ;;  %v2002_v3 = vadd.f32 1.0, %v3536_v61  ;;  %v3538_v12 = vpop.eup %3537  ;;  %v2012_v61 = vand.u32 2147483647, %v4671_v35 }
 0x444   : > { %v1944_v13 = vadd.f32 %v3530_v24, %v1943_v23  ;;  %v4694_v7 = vadd.f32 %v2035_v44, %v2033_v49  ;;  %v2007_v57 = vadd.f32 %v4681_v32, %v2006_v0 }
 0x445   : > { %v1981_v38 = vmul.f32 %v3532_v43, %v1980_v62  ;;  %3539 = vrcp.f32 %v2002_v3  ;;  %vm2013_vm4 = vcmp.eq.f32.partialorder %v2012_v61, 8.507059e+37  ;;  %v2027_v23 = vand.u32 2147483647, %v2002_v3 }
 0x446   : > { %v1948_v48 = vsel %vm1947_vm13, %v3530_v24, %v1944_v13  ;;  %3541 = vtanh.f32 %v4694_v7  ;;  %v2014_v24 = vand.u32 2147483648, %v4671_v35  ;;  %v2011_v44 = vsel %vm2010_vm3, %v4681_v32, %v2007_v57  ;;  %v2058_v57 = vld [vmem:[%s4748_s27 + $0x10] sm:$0xff] }
 0x447   : > { %v1982_v63 = vadd.f32 %v3532_v43, %v1981_v38  ;;  %v1953_v4 = vsel %vm1950_vm14, %v1952_v28, %v1948_v48  ;;  %vm2023_vm6 = vweird.f32 %v2002_v3  ;;  %vm2028_vm8 = vcmp.eq.f32.partialorder %v2027_v23, 8.507059e+37 }
 0x448   : > { %v2036_v17 = vmul.f32 %v3538_v12, %v1953_v4  ;;  %v2015_v21 = vor.u32 1.1754944e-38, %v2014_v24 }
 0x449   : > { %v1986_v16 = vsel %vm1985_vm15, %v3532_v43, %v1982_v63 }
 0x44a   : > { %v1991_v20 = vsel %vm1988_vm0, %v1990_v25, %v1986_v16  ;;  %v2016_v11 = vsel %vm2013_vm4, %v2015_v21, %v2011_v44 }
 0x44b   : > { %v2034_v50 = vmul.f32 %v1991_v20, %v4620_v56  ;;  %v3540_v45 = vpop.eup %3539  ;;  %v2029_v56 = vand.u32 2147483648, %v2002_v3 }
 0x44c   : > { %v2019_v43 = vmul.f32 %v3540_v45, %v2002_v3  ;;  %v3542_v26 = vpop.eup %3541  ;;  %vm2024_vm5 = vweird.f32 %v3540_v45 }
 0x44d   : > { %v4705_v49 = vadd.f32 %v2036_v17, %v2034_v50  ;;  %v2041_v38 = vmul.f32 %v3542_v26, %v2016_v11  ;;  %vm2025_vm7 = vmor %vm2023_vm6, %vm2024_vm5  ;;  %v2030_v13 = vor.u32 1.1754944e-38, %v2029_v56 }
 0x44e   : > { %v2020_v40 = vsub.f32 1.0, %v2019_v43 }
 0x44f   : > { %3543 = vtanh.f32 %v4705_v49  ;;  %v2043_v0 = vpack.c.bf16 %v2041_v38, %v2041_v38 }
 0x450   : > { %v2021_v62 = vmul.f32 %v3540_v45, %v2020_v40 }
 0x451   : > { %v2066_v25 = vunpack.c.l.b16 %v2043_v0 }
 0x452   : > { %v2022_v35 = vadd.f32 %v3540_v45, %v2021_v62 }
 0x454   : > { %v2026_v32 = vsel %vm2025_vm7, %v3540_v45, %v2022_v35 }
 0x455   : > { %v3544_v31 = vpop.eup %3543  ;;  %v2031_v28 = vsel %vm2028_vm8, %v2030_v13, %v2026_v32 }
 0x456   : > { %v2042_v12 = vmul.f32 %v3544_v31, %v2031_v28  ;;  %v2062_v31 = vld [vmem:[%s4748_s27 + $0x30] sm:$0xff] }
 0x458   : > { %v2044_v48 = vpack.c.bf16 %v2042_v12, %v2042_v12  ;;  %v3295_v63 = vpack.c.bf16 %v2042_v12, %v2041_v38 }
 0x45a   : > { %3296 = vst [vmem:[%s2046_s21] sm:$0xff] %v3295_v63   ;;  %v2067_v4 = vunpack.c.l.b16 %v2044_v48  ;;  %s2483_s21 = scalar_select %p808_p5, 0, 7 }
 0x45c   : > { %v2068_v16 = vpack.c.b16 %v2067_v4, %v2066_v25  ;;  %s3200_s6 = sshll.u32 %s2483_s21, 4 }
 0x45d   : > { %s4851_s5 = sshra.s32 %s3200_s6, 3 }
 0x45e   : > { %2078 = vmatmul.bf16.vlgmr.msra.gmra.mxu0 %v2068_v16  ;;  %2092 = vmatmul.bf16.vlgmr.msra.gmra.mxu1 %v2068_v16  ;;  %s3271_s13 = sshll.u32 %s4851_s5, 5  ;;  %s3209_s26 = sshll.u32 %s4851_s5, 2 }
 0x45f   : > { %2106 = vmatmul.bf16.vlgmr.msra.gmra.mxu2 %v2068_v16  ;;  %2120 = vmatmul.bf16.vlgmr.msra.gmra.mxu3 %v2068_v16  ;;  %s4854_s14 = scalar_lea.vmem [#allocation4], %s3271_s13  ;;  %s2697_s25 = scalar_lea.vmem %s4368_s1, %s3209_s26 [#allocation10] }
 0x460   : > { %2504 = vmatpush.bf16.msra.mxu0 %v3955_v29  ;;  %2518 = vmatpush.bf16.msra.mxu1 %v3957_v30  ;;  %v2056_v29 = vld [vmem:[%s4748_s27] sm:$0xff]  ;;  %s3721_s1 = scalar_lea.hbm %s4959_s4, 128 }
 0x461   : > { %2532 = vmatpush.bf16.msra.mxu2 %v3967_v37  ;;  %2546 = vmatpush.bf16.msra.mxu3 %v3965_v36  ;;  %v2057_v36 = vld [vmem:[%s4748_s27 + $0x8] sm:$0xff] }
 0x464   : > { %2505 = vmatpush.bf16.msra.mxu0 %v3974_v41  ;;  %2519 = vmatpush.bf16.msra.mxu1 %v3976_v42 }
 0x465   : > { %2533 = vmatpush.bf16.msra.mxu2 %v3986_v47  ;;  %2547 = vmatpush.bf16.msra.mxu3 %v3993_v51 }
 0x468   : > { %2506 = vmatpush.bf16.msra.mxu0 %v3995_v52  ;;  %2520 = vmatpush.bf16.msra.mxu1 %v4000_v55  ;;  %v2059_v52 = vld [vmem:[%s4748_s27 + $0x18] sm:$0xff] }
 0x469   : > { %2534 = vmatpush.bf16.msra.mxu2 %v4006_v59  ;;  %2548 = vmatpush.bf16.msra.mxu3 %v4010_v60  ;;  %v2060_v60 = vld [vmem:[%s4748_s27 + $0x20] sm:$0xff] }
 0x46c   : > { %2507 = vmatpush.bf16.msra.mxu0 %v4025_v1  ;;  %2521 = vmatpush.bf16.msra.mxu1 %v4030_v5  ;;  %v2061_v5 = vld [vmem:[%s4748_s27 + $0x28] sm:$0xff] }
 0x46d   : > { %2535 = vmatpush.bf16.msra.mxu2 %v4037_v9  ;;  %2549 = vmatpush.bf16.msra.mxu3 %v4032_v6 }
 0x470   : > { %2508 = vmatpush.bf16.msra.mxu0 %v4052_v14  ;;  %2522 = vmatpush.bf16.msra.mxu1 %v4057_v18 }
 0x471   : > { %2536 = vmatpush.bf16.msra.mxu2 %v4064_v22  ;;  %2550 = vmatpush.bf16.msra.mxu3 %v4059_v19 }
 0x474   : > { %2509 = vmatpush.bf16.msra.mxu0 %v4079_v27  ;;  %2523 = vmatpush.bf16.msra.mxu1 %v4084_v33 }
 0x475   : > { %2537 = vmatpush.bf16.msra.mxu2 %v4091_v39  ;;  %2551 = vmatpush.bf16.msra.mxu3 %v4086_v34 }
 0x478   : > { %2510 = vmatpush.bf16.msra.mxu0 %v4106_v46  ;;  %2524 = vmatpush.bf16.msra.mxu1 %v4111_v53 }
 0x479   : > { %2538 = vmatpush.bf16.msra.mxu2 %v4118_v58  ;;  %2552 = vmatpush.bf16.msra.mxu3 %v4113_v54  ;;  %v2063_v58 = vld [vmem:[%s4748_s27 + $0x38] sm:$0xff]  ;;  %s3211_s27 = sshll.u32 %s3779_s18, 2 }
 0x47a   : > { %s2723_s18 = scalar_lea.hbm %s4959_s4, %s3211_s27 }
 0x47b   : > { %s2726_s8 = sshll.u32 %s2723_s18, 4  ;;  %s2727_s8 = int_to_ptr.hbm [resolvable:$true] %s2726_s8 }
 0x47c   : > { %2511 = vmatpush.bf16.msra.mxu0 %v4133_v2  ;;  %2525 = vmatpush.bf16.msra.mxu1 %v4138_v8  ;;  %s3715_s10 = sshra.s32 %s2727_s8, 4  ;;  %s3716_s10 = int_to_ptr.hbm [resolvable:$true] %s3715_s10 }
 0x47d   : > { %2539 = vmatpush.bf16.msra.mxu2 %v4156_v15  ;;  %2553 = vmatpush.bf16.msra.mxu3 %v4140_v10  ;;  %p3722_p10 = scmp.lt.s32.totalorder %s3716_s10, %s4959_s4 }
 0x4db   : > { %v2079_v30 = vpop.f32.mrf.mxu0  ;;  %v2093_v37 = vpop.f32.mrf.mxu1 }
 0x4dc   : > { %v2126_v41 = vadd.f32 %v2079_v30, %v2056_v29  ;;  %v2127_v42 = vadd.f32 %v2093_v37, %v2057_v36 }
 0x4de   : > { %v3183_v47 = vmul.f32 -1.442695, %v2126_v41  ;;  %v3185_v51 = vmul.f32 -1.442695, %v2127_v42 }
 0x4e0   : > { %3545 = vpow2.f32 %v3183_v47 }
 0x4e1   : > { %3547 = vpow2.f32 %v3185_v51 }
 0x4e2   : > { %v2121_v55 = vpop.f32.mrf.mxu3  ;;  %v2107_v46 = vpop.f32.mrf.mxu2 }
 0x4e3   : > { %v2129_v59 = vadd.f32 %v2121_v55, %v2059_v52  ;;  %v2081_v1 = vpop.f32.mrf.mxu0  ;;  %v2095_v6 = vpop.f32.mrf.mxu1  ;;  %v2128_v24 = vadd.f32 %v2107_v46, %v2058_v57 }
 0x4e4   : > { %v2130_v9 = vadd.f32 %v2081_v1, %v2060_v60  ;;  %v2131_v14 = vadd.f32 %v2095_v6, %v2061_v5 }
 0x4e5   : > { %v3187_v18 = vmul.f32 -1.442695, %v2129_v59 }
 0x4e6   : > { %v3546_v19 = vpop.eup %3545  ;;  %v3184_v22 = vmul.f32 -1.442695, %v2130_v9  ;;  %v3186_v34 = vmul.f32 -1.442695, %v2131_v14 }
 0x4e7   : > { %v3548_v27 = vpop.eup %3547  ;;  %v2140_v33 = vadd.f32 1.0, %v3546_v19  ;;  %3549 = vpow2.f32 %v3187_v18 }
 0x4e8   : > { %v2178_v39 = vadd.f32 1.0, %v3548_v27  ;;  %3551 = vpow2.f32 %v3184_v22 }
 0x4e9   : > { %3553 = vrcp.f32 %v2140_v33  ;;  %v2151_v21 = vand.u32 2147483647, %v2140_v33  ;;  %v2153_v56 = vand.u32 2147483648, %v2140_v33  ;;  %vm2147_vm11 = vweird.f32 %v2140_v33 }
 0x4ea   : > { %3555 = vrcp.f32 %v2178_v39  ;;  %v2123_v53 = vpop.f32.mrf.mxu3  ;;  %v2191_v26 = vand.u32 2147483648, %v2178_v39  ;;  %v2189_v23 = vand.u32 2147483647, %v2178_v39  ;;  %v2109_v11 = vpop.f32.mrf.mxu2  ;;  %vm2185_vm12 = vweird.f32 %v2178_v39 }
 0x4eb   : > { %3557 = vpow2.f32 %v3186_v34  ;;  %v2133_v10 = vadd.f32 %v2123_v53, %v2063_v58  ;;  %v2154_v32 = vor.u32 1.1754944e-38, %v2153_v56  ;;  %v2132_v12 = vadd.f32 %v2109_v11, %v2062_v31 }
 0x4ec   : > { %v2192_v48 = vor.u32 1.1754944e-38, %v2191_v26  ;;  %vm2152_vm15 = vcmp.eq.f32.partialorder %v2151_v21, 8.507059e+37  ;;  %vm2190_vm0 = vcmp.eq.f32.partialorder %v2189_v23, 8.507059e+37 }
 0x4ed   : > { %v3550_v54 = vpop.eup %3549  ;;  %v3188_v44 = vmul.f32 -1.442695, %v2133_v10 }
 0x4ee   : > { %v3552_v2 = vpop.eup %3551  ;;  %v4756_v8 = vadd.f32 1.0, %v3550_v54 }
 0x4ef   : > { %v3554_v15 = vpop.eup %3553  ;;  %v4758_v3 = vadd.f32 1.0, %v3552_v2 }
 0x4f0   : > { %v3556_v17 = vpop.eup %3555  ;;  %v2143_v20 = vmul.f32 %v3554_v15, %v2140_v33  ;;  %3559 = vrcp.f32 %v4756_v8  ;;  %vm2148_vm9 = vweird.f32 %v3554_v15 }
 0x4f1   : > { %v3558_v50 = vpop.eup %3557  ;;  %v2181_v45 = vmul.f32 %v3556_v17, %v2178_v39  ;;  %3561 = vrcp.f32 %v4758_v3  ;;  %vm2186_vm10 = vweird.f32 %v3556_v17  ;;  %vm2149_vm13 = vmor %vm2147_vm11, %vm2148_vm9  ;;  %v2166_v55 = vand.u32 2147483647, %v4758_v3 }
 0x4f2   : > { %v2144_v61 = vsub.f32 1.0, %v2143_v20  ;;  %v4763_v43 = vadd.f32 1.0, %v3558_v50  ;;  %vm2187_vm14 = vmor %vm2185_vm12, %vm2186_vm10  ;;  %v2168_v59 = vand.u32 2147483648, %v4758_v3  ;;  %vm2162_vm2 = vweird.f32 %v4758_v3 }
 0x4f3   : > { %v2182_v40 = vsub.f32 1.0, %v2181_v45  ;;  %vm2167_vm6 = vcmp.eq.f32.partialorder %v2166_v55, 8.507059e+37  ;;  %vm2225_vm10 = vweird.f32 %v4756_v8  ;;  %v2229_v20 = vand.u32 2147483647, %v4756_v8 }
 0x4f4   : > { %v2145_v62 = vmul.f32 %v3554_v15, %v2144_v61  ;;  %3563 = vrcp.f32 %v4763_v43  ;;  %v2206_v6 = vand.u32 2147483648, %v4763_v43  ;;  %v2204_v19 = vand.u32 2147483647, %v4763_v43 }
 0x4f5   : > { %v2183_v35 = vmul.f32 %v3556_v17, %v2182_v40  ;;  %3565 = vtanh.f32 %v2128_v24  ;;  %vm2200_vm4 = vweird.f32 %v4763_v43  ;;  %v2169_v22 = vor.u32 1.1754944e-38, %v2168_v59 }
 0x4f6   : > { %v4766_v38 = vpop.eup %3559  ;;  %v2146_v13 = vadd.f32 %v3554_v15, %v2145_v62  ;;  %3567 = vpow2.f32 %v3188_v44  ;;  %v2207_v46 = vor.u32 1.1754944e-38, %v2206_v6  ;;  %vm2205_vm8 = vcmp.eq.f32.partialorder %v2204_v19, 8.507059e+37 }
 0x4f7   : > { %v2184_v28 = vadd.f32 %v3556_v17, %v2183_v35  ;;  %v3562_v0 = vpop.eup %3561  ;;  %v2221_v16 = vmul.f32 %v4766_v38, %v4756_v8  ;;  %3569 = vtanh.f32 %v2132_v12  ;;  %vm2226_vm9 = vweird.f32 %v4766_v38 }
 0x4f8   : > { %v2150_v63 = vsel %vm2149_vm13, %v3554_v15, %v2146_v13  ;;  %v2158_v29 = vmul.f32 %v3562_v0, %v4758_v3  ;;  %vm2163_vm1 = vweird.f32 %v3562_v0  ;;  %vm2227_vm11 = vmor %vm2225_vm10, %vm2226_vm9  ;;  %vm2230_vm12 = vcmp.eq.f32.partialorder %v2229_v20, 8.507059e+37 }
 0x4f9   : > { %v2155_v25 = vsel %vm2152_vm15, %v2154_v32, %v2150_v63  ;;  %v2188_v4 = vsel %vm2187_vm14, %v3556_v17, %v2184_v28  ;;  %v2222_v60 = vsub.f32 1.0, %v2221_v16  ;;  %vm2164_vm5 = vmor %vm2162_vm2, %vm2163_vm1  ;;  %v2231_v17 = vand.u32 2147483648, %v4756_v8  ;;  %v2274_v63 = vld [vmem:[%s4801_s9 + $0x8] sm:$0xff] }
 0x4fa   : > { %v3564_v30 = vpop.eup %3563  ;;  %v2193_v36 = vsel %vm2190_vm0, %v2192_v48, %v2188_v4  ;;  %v2159_v41 = vsub.f32 1.0, %v2158_v29 }
 0x4fb   : > { %v3566_v37 = vpop.eup %3565  ;;  %v2196_v42 = vmul.f32 %v3564_v30, %v4763_v43  ;;  %v2250_v51 = vmul.f32 %v2193_v36, %v4694_v7  ;;  %vm2201_vm3 = vweird.f32 %v3564_v30  ;;  %v2223_v33 = vmul.f32 %v4766_v38, %v2222_v60  ;;  %v2276_v36 = vld [vmem:[%s4801_s9 + $0x18] sm:$0xff] }
 0x4fc   : > { %v3568_v47 = vpop.eup %3567  ;;  %v2252_v52 = vmul.f32 %v3566_v37, %v2155_v25  ;;  %v2160_v5 = vmul.f32 %v3562_v0, %v2159_v41  ;;  %vm2202_vm7 = vmor %vm2200_vm4, %vm2201_vm3  ;;  %v2232_v43 = vor.u32 1.1754944e-38, %v2231_v17 }
 0x4fd   : > { %v2197_v1 = vsub.f32 1.0, %v2196_v42  ;;  %v2219_v9 = vadd.f32 1.0, %v3568_v47  ;;  %v3570_v27 = vpop.eup %3569  ;;  %v2224_v10 = vadd.f32 %v4766_v38, %v2223_v33  ;;  %v2277_v42 = vld [vmem:[%s4801_s9 + $0x20] sm:$0xff]  ;;  %v2280_v33 = vld [vmem:[%s4801_s9 + $0x38] sm:$0xff] }
 0x4fe   : > { %v2161_v18 = vadd.f32 %v3562_v0, %v2160_v5  ;;  %v4779_v7 = vadd.f32 %v2252_v52, %v2250_v51  ;;  %v2278_v51 = vld [vmem:[%s4801_s9 + $0x28] sm:$0xff] }
 0x4ff   : > { %v2198_v14 = vmul.f32 %v3564_v30, %v2197_v1  ;;  %3571 = vrcp.f32 %v2219_v9  ;;  %v2228_v45 = vsel %vm2227_vm11, %v4766_v38, %v2224_v10  ;;  %v2244_v40 = vand.u32 2147483647, %v2219_v9  ;;  %v2275_v10 = vld [vmem:[%s4801_s9 + $0x10] sm:$0xff] }
 0x500   : > { %v2165_v34 = vsel %vm2164_vm5, %v3562_v0, %v2161_v18  ;;  %3573 = vtanh.f32 %v4779_v7  ;;  %v2233_v26 = vsel %vm2230_vm12, %v2232_v43, %v2228_v45  ;;  %vm2240_vm14 = vweird.f32 %v2219_v9  ;;  %v2273_v0 = vld [vmem:[%s4801_s9] sm:$0xff] }
 0x501   : > { %v2199_v39 = vadd.f32 %v3564_v30, %v2198_v14  ;;  %v2170_v53 = vsel %vm2167_vm6, %v2169_v22, %v2165_v34  ;;  %vm2245_vm0 = vcmp.eq.f32.partialorder %v2244_v40, 8.507059e+37 }
 0x502   : > { %v2253_v58 = vmul.f32 %v3570_v27, %v2170_v53 }
 0x503   : > { %v2203_v54 = vsel %vm2202_vm7, %v3564_v30, %v2199_v39 }
 0x504   : > { %v2208_v2 = vsel %vm2205_vm8, %v2207_v46, %v2203_v54 }
 0x505   : > { %v2251_v15 = vmul.f32 %v2208_v2, %v4705_v49  ;;  %v3572_v3 = vpop.eup %3571  ;;  %v2246_v49 = vand.u32 2147483648, %v2219_v9 }
 0x506   : > { %v2236_v50 = vmul.f32 %v3572_v3, %v2219_v9  ;;  %v3574_v61 = vpop.eup %3573  ;;  %vm2241_vm13 = vweird.f32 %v3572_v3 }
 0x507   : > { %v4790_v57 = vadd.f32 %v2253_v58, %v2251_v15  ;;  %v2258_v21 = vmul.f32 %v3574_v61, %v2233_v26  ;;  %vm2242_vm15 = vmor %vm2240_vm14, %vm2241_vm13  ;;  %v2247_v56 = vor.u32 1.1754944e-38, %v2246_v49 }
 0x508   : > { %v2237_v24 = vsub.f32 1.0, %v2236_v50 }
 0x509   : > { %3575 = vtanh.f32 %v4790_v57  ;;  %v2260_v38 = vpack.c.bf16 %v2258_v21, %v2258_v21 }
 0x50a   : > { %v2238_v44 = vmul.f32 %v3572_v3, %v2237_v24 }
 0x50b   : > { %v2283_v32 = vunpack.c.l.b16 %v2260_v38 }
 0x50c   : > { %v2239_v8 = vadd.f32 %v3572_v3, %v2238_v44 }
 0x50e   : > { %v2243_v23 = vsel %vm2242_vm15, %v3572_v3, %v2239_v8 }
 0x50f   : > { %v3576_v62 = vpop.eup %3575  ;;  %v2248_v11 = vsel %vm2245_vm0, %v2247_v56, %v2243_v23 }
 0x510   : > { %v2259_v35 = vmul.f32 %v3576_v62, %v2248_v11  ;;  %v2279_v62 = vld [vmem:[%s4801_s9 + $0x30] sm:$0xff]  ;;  %s2705_s9 = scalar_lea.sflag [#allocation7], %s3912_s12 }
 0x512   : > { %v2261_v13 = vpack.c.bf16 %v2259_v35, %v2259_v35  ;;  %v3300_v31 = vpack.c.bf16 %v2259_v35, %v2258_v21 }
 0x514   : > { %3301 = vst [vmem:[%s2263_s24] sm:$0xff] %v3300_v31   ;;  %v2284_v28 = vunpack.c.l.b16 %v2261_v13 }
 0x516   : > { %v2285_v12 = vpack.c.b16 %v2284_v28, %v2283_v32 }
 0x518   : > { %2295 = vmatmul.bf16.vlgmr.msrb.gmra.mxu0 %v2285_v12  ;;  %2309 = vmatmul.bf16.vlgmr.msrb.gmra.mxu1 %v2285_v12 }
 0x519   : > { %2323 = vmatmul.bf16.vlgmr.msrb.gmra.mxu2 %v2285_v12  ;;  %2337 = vmatmul.bf16.vlgmr.msrb.gmra.mxu3 %v2285_v12 }
 0x595   : > { %v2296_v48 = vpop.f32.mrf.mxu0  ;;  %v2310_v25 = vpop.f32.mrf.mxu1 }
 0x596   : > { %v2343_v4 = vadd.f32 %v2296_v48, %v2273_v0  ;;  %v2344_v16 = vadd.f32 %v2310_v25, %v2274_v63 }
 0x598   : > { %v3193_v29 = vmul.f32 -1.442695, %v2343_v4  ;;  %v3195_v30 = vmul.f32 -1.442695, %v2344_v16 }
 0x59a   : > { %3577 = vpow2.f32 %v3193_v29 }
 0x59b   : > { %3579 = vpow2.f32 %v3195_v30 }
 0x59c   : > { %v2338_v37 = vpop.f32.mrf.mxu3  ;;  %v2324_v19 = vpop.f32.mrf.mxu2 }
 0x59d   : > { %v2346_v41 = vadd.f32 %v2338_v37, %v2276_v36  ;;  %v2298_v47 = vpop.f32.mrf.mxu0  ;;  %v2312_v52 = vpop.f32.mrf.mxu1  ;;  %v2345_v17 = vadd.f32 %v2324_v19, %v2275_v10 }
 0x59e   : > { %v2347_v55 = vadd.f32 %v2298_v47, %v2277_v42  ;;  %v2348_v59 = vadd.f32 %v2312_v52, %v2278_v51 }
 0x59f   : > { %v3197_v60 = vmul.f32 -1.442695, %v2346_v41 }
 0x5a0   : > { %v3578_v1 = vpop.eup %3577  ;;  %v3194_v5 = vmul.f32 -1.442695, %v2347_v55  ;;  %v3196_v14 = vmul.f32 -1.442695, %v2348_v59 }
 0x5a1   : > { %v3580_v6 = vpop.eup %3579  ;;  %v2357_v9 = vadd.f32 1.0, %v3578_v1  ;;  %3581 = vpow2.f32 %v3197_v60 }
 0x5a2   : > { %v2395_v18 = vadd.f32 1.0, %v3580_v6  ;;  %3583 = vpow2.f32 %v3194_v5 }
 0x5a3   : > { %3585 = vrcp.f32 %v2357_v9  ;;  %v2368_v43 = vand.u32 2147483647, %v2357_v9  ;;  %v2370_v49 = vand.u32 2147483648, %v2357_v9  ;;  %vm2364_vm3 = vweird.f32 %v2357_v9 }
 0x5a4   : > { %3587 = vrcp.f32 %v2395_v18  ;;  %v2340_v22 = vpop.f32.mrf.mxu3  ;;  %v2408_v61 = vand.u32 2147483648, %v2395_v18  ;;  %v2406_v40 = vand.u32 2147483647, %v2395_v18  ;;  %v2326_v26 = vpop.f32.mrf.mxu2  ;;  %vm2402_vm4 = vweird.f32 %v2395_v18 }
 0x5a5   : > { %3589 = vpow2.f32 %v3196_v14  ;;  %v2350_v46 = vadd.f32 %v2340_v22, %v2280_v33  ;;  %v2371_v23 = vor.u32 1.1754944e-38, %v2370_v49  ;;  %v2349_v35 = vadd.f32 %v2326_v26, %v2279_v62 }
 0x5a6   : > { %v2409_v13 = vor.u32 1.1754944e-38, %v2408_v61  ;;  %vm2369_vm7 = vcmp.eq.f32.partialorder %v2368_v43, 8.507059e+37  ;;  %vm2407_vm8 = vcmp.eq.f32.partialorder %v2406_v40, 8.507059e+37 }
 0x5a7   : > { %v3582_v27 = vpop.eup %3581  ;;  %v3198_v45 = vmul.f32 -1.442695, %v2350_v46 }
 0x5a8   : > { %v3584_v34 = vpop.eup %3583  ;;  %v4809_v39 = vadd.f32 1.0, %v3582_v27 }
 0x5a9   : > { %v3586_v53 = vpop.eup %3585  ;;  %v4811_v54 = vadd.f32 1.0, %v3584_v34 }
 0x5aa   : > { %v3588_v58 = vpop.eup %3587  ;;  %v2360_v2 = vmul.f32 %v3586_v53, %v2357_v9  ;;  %3591 = vrcp.f32 %v4809_v39  ;;  %vm2365_vm1 = vweird.f32 %v3586_v53 }
 0x5ab   : > { %v3590_v15 = vpop.eup %3589  ;;  %v2398_v3 = vmul.f32 %v3588_v58, %v2395_v18  ;;  %3593 = vrcp.f32 %v4811_v54  ;;  %vm2403_vm2 = vweird.f32 %v3588_v58  ;;  %vm2366_vm5 = vmor %vm2364_vm3, %vm2365_vm1  ;;  %v2383_v37 = vand.u32 2147483647, %v4811_v54 }
 0x5ac   : > { %v2361_v20 = vsub.f32 1.0, %v2360_v2  ;;  %v4816_v50 = vadd.f32 1.0, %v3590_v15  ;;  %vm2404_vm6 = vmor %vm2402_vm4, %vm2403_vm2  ;;  %v2385_v41 = vand.u32 2147483648, %v4811_v54  ;;  %vm2379_vm10 = vweird.f32 %v4811_v54 }
 0x5ad   : > { %v2399_v24 = vsub.f32 1.0, %v2398_v3  ;;  %vm2384_vm14 = vcmp.eq.f32.partialorder %v2383_v37, 8.507059e+37  ;;  %vm2442_vm2 = vweird.f32 %v4809_v39  ;;  %v2446_v2 = vand.u32 2147483647, %v4809_v39 }
 0x5ae   : > { %v2362_v44 = vmul.f32 %v3586_v53, %v2361_v20  ;;  %3595 = vrcp.f32 %v4816_v50  ;;  %v2423_v52 = vand.u32 2147483648, %v4816_v50  ;;  %v2421_v1 = vand.u32 2147483647, %v4816_v50 }
 0x5af   : > { %v2400_v8 = vmul.f32 %v3588_v58, %v2399_v24  ;;  %3597 = vtanh.f32 %v2345_v17  ;;  %vm2417_vm12 = vweird.f32 %v4816_v50  ;;  %v2386_v5 = vor.u32 1.1754944e-38, %v2385_v41 }
 0x5b0   : > { %v4819_v21 = vpop.eup %3591  ;;  %v2363_v56 = vadd.f32 %v3586_v53, %v2362_v44  ;;  %3599 = vpow2.f32 %v3198_v45  ;;  %v2424_v19 = vor.u32 1.1754944e-38, %v2423_v52  ;;  %vm2422_vm0 = vcmp.eq.f32.partialorder %v2421_v1, 8.507059e+37 }
 0x5b1   : > { %v2401_v11 = vadd.f32 %v3588_v58, %v2400_v8  ;;  %v3594_v38 = vpop.eup %3593  ;;  %v2438_v12 = vmul.f32 %v4819_v21, %v4809_v39  ;;  %3601 = vtanh.f32 %v2349_v35  ;;  %vm2443_vm1 = vweird.f32 %v4819_v21 }
 0x5b2   : > { %v2367_v31 = vsel %vm2366_vm5, %v3586_v53, %v2363_v56  ;;  %v2375_v0 = vmul.f32 %v3594_v38, %v4811_v54  ;;  %vm2380_vm9 = vweird.f32 %v3594_v38  ;;  %vm2444_vm3 = vmor %vm2442_vm2, %vm2443_vm1  ;;  %vm2447_vm4 = vcmp.eq.f32.partialorder %v2446_v2, 8.507059e+37 }
 0x5b3   : > { %v2372_v32 = vsel %vm2369_vm7, %v2371_v23, %v2367_v31  ;;  %v2405_v28 = vsel %vm2404_vm6, %v3588_v58, %v2401_v11  ;;  %v2439_v42 = vsub.f32 1.0, %v2438_v12  ;;  %vm2381_vm13 = vmor %vm2379_vm10, %vm2380_vm9  ;;  %v2448_v58 = vand.u32 2147483648, %v4809_v39  ;;  %v2491_v31 = vld [vmem:[%s4854_s14 + $0x8] sm:$0xff] }
 0x5b4   : > { %v3596_v48 = vpop.eup %3595  ;;  %v2410_v63 = vsel %vm2407_vm8, %v2409_v13, %v2405_v28  ;;  %v2376_v4 = vsub.f32 1.0, %v2375_v0 }
 0x5b5   : > { %v3598_v25 = vpop.eup %3597  ;;  %v2413_v16 = vmul.f32 %v3596_v48, %v4816_v50  ;;  %v2467_v30 = vmul.f32 %v2410_v63, %v4779_v7  ;;  %vm2418_vm11 = vweird.f32 %v3596_v48  ;;  %v2440_v9 = vmul.f32 %v4819_v21, %v2439_v42  ;;  %v2493_v63 = vld [vmem:[%s4854_s14 + $0x18] sm:$0xff] }
 0x5b6   : > { %v3600_v29 = vpop.eup %3599  ;;  %v2469_v36 = vmul.f32 %v3598_v25, %v2372_v32  ;;  %v2377_v51 = vmul.f32 %v3594_v38, %v2376_v4  ;;  %vm2419_vm15 = vmor %vm2417_vm12, %vm2418_vm11  ;;  %v2449_v50 = vor.u32 1.1754944e-38, %v2448_v58 }
 0x5b7   : > { %v2414_v47 = vsub.f32 1.0, %v2413_v16  ;;  %v2436_v55 = vadd.f32 1.0, %v3600_v29  ;;  %v3602_v6 = vpop.eup %3601  ;;  %v2441_v46 = vadd.f32 %v4819_v21, %v2440_v9  ;;  %v2494_v16 = vld [vmem:[%s4854_s14 + $0x20] sm:$0xff]  ;;  %v2497_v9 = vld [vmem:[%s4854_s14 + $0x38] sm:$0xff] }
 0x5b8   : > { %v2378_v60 = vadd.f32 %v3594_v38, %v2377_v51  ;;  %v4832_v7 = vadd.f32 %v2469_v36, %v2467_v30  ;;  %v2495_v30 = vld [vmem:[%s4854_s14 + $0x28] sm:$0xff] }
 0x5b9   : > { %v2415_v59 = vmul.f32 %v3596_v48, %v2414_v47  ;;  %3603 = vrcp.f32 %v2436_v55  ;;  %v2445_v3 = vsel %vm2444_vm3, %v4819_v21, %v2441_v46  ;;  %v2461_v24 = vand.u32 2147483647, %v2436_v55 }
 0x5ba   : > { %v2382_v14 = vsel %vm2381_vm13, %v3594_v38, %v2378_v60  ;;  %3605 = vtanh.f32 %v4832_v7  ;;  %v2450_v61 = vsel %vm2447_vm4, %v2449_v50, %v2445_v3  ;;  %vm2457_vm6 = vweird.f32 %v2436_v55  ;;  %v2490_v38 = vld [vmem:[%s4854_s14] sm:$0xff]  ;;  %v2492_v3 = vld [vmem:[%s4854_s14 + $0x10] sm:$0xff] }
 0x5bb   : > { %v2416_v18 = vadd.f32 %v3596_v48, %v2415_v59  ;;  %v2387_v22 = vsel %vm2384_vm14, %v2386_v5, %v2382_v14  ;;  %vm2462_vm8 = vcmp.eq.f32.partialorder %v2461_v24, 8.507059e+37 }
 0x5bc   : > { %v2470_v33 = vmul.f32 %v3602_v6, %v2387_v22 }
 0x5bd   : > { %v2420_v27 = vsel %vm2419_vm15, %v3596_v48, %v2416_v18 }
 0x5be   : > { %v2425_v34 = vsel %vm2422_vm0, %v2424_v19, %v2420_v27 }
 0x5bf   : > { %v2468_v53 = vmul.f32 %v2425_v34, %v4790_v57  ;;  %v3604_v54 = vpop.eup %3603  ;;  %v2463_v57 = vand.u32 2147483648, %v2436_v55 }
 0x5c0   : > { %v2453_v15 = vmul.f32 %v3604_v54, %v2436_v55  ;;  %v3606_v20 = vpop.eup %3605  ;;  %vm2458_vm5 = vweird.f32 %v3604_v54 }
 0x5c1   : > { %v4843_v10 = vadd.f32 %v2470_v33, %v2468_v53  ;;  %v2475_v43 = vmul.f32 %v3606_v20, %v2450_v61  ;;  %vm2459_vm7 = vmor %vm2457_vm6, %vm2458_vm5  ;;  %v2464_v49 = vor.u32 1.1754944e-38, %v2463_v57 }
 0x5c2   : > { %v2454_v17 = vsub.f32 1.0, %v2453_v15 }
 0x5c3   : > { %3607 = vtanh.f32 %v4843_v10  ;;  %v2477_v21 = vpack.c.bf16 %v2475_v43, %v2475_v43 }
 0x5c4   : > { %v2455_v45 = vmul.f32 %v3604_v54, %v2454_v17 }
 0x5c5   : > { %v2500_v23 = vunpack.c.l.b16 %v2477_v21 }
 0x5c6   : > { %v2456_v39 = vadd.f32 %v3604_v54, %v2455_v45 }
 0x5c8   : > { %v2460_v40 = vsel %vm2459_vm7, %v3604_v54, %v2456_v39 }
 0x5c9   : > { %v3608_v44 = vpop.eup %3607  ;;  %v2465_v26 = vsel %vm2462_vm8, %v2464_v49, %v2460_v40 }
 0x5ca   : > { %v2476_v8 = vmul.f32 %v3608_v44, %v2465_v26 }
 0x5cc   : > { %v2478_v56 = vpack.c.bf16 %v2476_v8, %v2476_v8  ;;  %v3305_v62 = vpack.c.bf16 %v2476_v8, %v2475_v43  ;;  %v2496_v43 = vld [vmem:[%s4854_s14 + $0x30] sm:$0xff] }
 0x5ce   : > { %3306 = vst [vmem:[%s2480_s11] sm:$0xff] %v3305_v62   ;;  %v2501_v11 = vunpack.c.l.b16 %v2478_v56  ;;  %s3717_s11 = scalar_lea.hbm %s3716_s10, 64 }
 0x5cf   : > { %p3718_p6 = scmp.ne.s32.totalorder %s3716_s10, %s3717_s11  ;;  %p3723_p13 = scmp.lt.s32.totalorder %s3721_s1, %s3717_s11 }
 0x5d0   : > { %v2502_v35 = vpack.c.b16 %v2501_v11, %v2500_v23 }
 0x5d1   : > { %p3719_p7 = pnand %p3718_p6, %p3871_p9  ;;  %p3724_p0 = por %p3723_p13, %p3722_p10 }
 0x5d2   : > { %2512 = vmatmul.bf16.vlgmr.msra.gmra.mxu0 %v2502_v35  ;;  %2526 = vmatmul.bf16.vlgmr.msra.gmra.mxu1 %v2502_v35 }
 0x5d3   : > { %2540 = vmatmul.bf16.vlgmr.msra.gmra.mxu2 %v2502_v35  ;;  %2554 = vmatmul.bf16.vlgmr.msra.gmra.mxu3 %v2502_v35  ;;  %p3720_p8 = pneg %p3719_p7 }
 0x5d5   : > { %p3725_p1 = pnand %p3724_p0, %p3720_p8 }
 0x64f   : > { %v2513_v13 = vpop.f32.mrf.mxu0  ;;  %v2527_v32 = vpop.f32.mrf.mxu1 }
 0x650   : > { %v2560_v28 = vadd.f32 %v2513_v13, %v2490_v38  ;;  %v2561_v12 = vadd.f32 %v2527_v32, %v2491_v31 }
 0x652   : > { %v3203_v0 = vmul.f32 -1.442695, %v2560_v28  ;;  %v3205_v48 = vmul.f32 -1.442695, %v2561_v12 }
 0x654   : > { %3609 = vpow2.f32 %v3203_v0 }
 0x655   : > { %3611 = vpow2.f32 %v3205_v48 }
 0x656   : > { %v2555_v25 = vpop.f32.mrf.mxu3  ;;  %v2541_v1 = vpop.f32.mrf.mxu2 }
 0x657   : > { %v2563_v4 = vadd.f32 %v2555_v25, %v2493_v63  ;;  %v2515_v29 = vpop.f32.mrf.mxu0  ;;  %v2529_v36 = vpop.f32.mrf.mxu1  ;;  %v2562_v17 = vadd.f32 %v2541_v1, %v2492_v3 }
 0x658   : > { %v2564_v37 = vadd.f32 %v2515_v29, %v2494_v16  ;;  %v2565_v41 = vadd.f32 %v2529_v36, %v2495_v30 }
 0x659   : > { %v3207_v42 = vmul.f32 -1.442695, %v2563_v4 }
 0x65a   : > { %v3610_v47 = vpop.eup %3609  ;;  %v3204_v51 = vmul.f32 -1.442695, %v2564_v37  ;;  %v3206_v59 = vmul.f32 -1.442695, %v2565_v41 }
 0x65b   : > { %v3612_v52 = vpop.eup %3611  ;;  %v2574_v55 = vadd.f32 1.0, %v3610_v47  ;;  %3613 = vpow2.f32 %v3207_v42 }
 0x65c   : > { %v2612_v60 = vadd.f32 1.0, %v3612_v52  ;;  %3615 = vpow2.f32 %v3204_v51 }
 0x65d   : > { %3617 = vrcp.f32 %v2574_v55  ;;  %v2585_v45 = vand.u32 2147483647, %v2574_v55  ;;  %v2587_v24 = vand.u32 2147483648, %v2574_v55  ;;  %vm2581_vm11 = vweird.f32 %v2574_v55 }
 0x65e   : > { %3619 = vrcp.f32 %v2612_v60  ;;  %v2557_v5 = vpop.f32.mrf.mxu3  ;;  %v2543_v50 = vpop.f32.mrf.mxu2  ;;  %v2625_v61 = vand.u32 2147483648, %v2612_v60  ;;  %v2623_v44 = vand.u32 2147483647, %v2612_v60  ;;  %vm2619_vm12 = vweird.f32 %v2612_v60 }
 0x65f   : > { %3621 = vpow2.f32 %v3206_v59  ;;  %v2567_v18 = vadd.f32 %v2557_v5, %v2497_v9  ;;  %v2566_v40 = vadd.f32 %v2543_v50, %v2496_v43  ;;  %vm2586_vm15 = vcmp.eq.f32.partialorder %v2585_v45, 8.507059e+37 }
 0x660   : > { %v2626_v35 = vor.u32 1.1754944e-38, %v2625_v61  ;;  %v2588_v38 = vor.u32 1.1754944e-38, %v2587_v24  ;;  %vm2624_vm0 = vcmp.eq.f32.partialorder %v2623_v44, 8.507059e+37 }
 0x661   : > { %v3614_v6 = vpop.eup %3613  ;;  %v3208_v2 = vmul.f32 -1.442695, %v2567_v18 }
 0x662   : > { %v3616_v14 = vpop.eup %3615  ;;  %v4862_v22 = vadd.f32 1.0, %v3614_v6 }
 0x663   : > { %v3618_v19 = vpop.eup %3617  ;;  %v4864_v27 = vadd.f32 1.0, %v3616_v14 }
 0x664   : > { %v3620_v33 = vpop.eup %3619  ;;  %v2577_v34 = vmul.f32 %v3618_v19, %v2574_v55  ;;  %vm2582_vm9 = vweird.f32 %v3618_v19 }
 0x665   : > { %v3622_v46 = vpop.eup %3621  ;;  %v2615_v53 = vmul.f32 %v3620_v33, %v2612_v60  ;;  %3623 = vrcp.f32 %v4864_v27  ;;  %vm2620_vm10 = vweird.f32 %v3620_v33  ;;  %vm4873_vm13 = vmor %vm2581_vm11, %vm2582_vm9  ;;  %v2600_v48 = vand.u32 2147483647, %v4864_v27 }
 0x666   : > { %v2578_v54 = vsub.f32 1.0, %v2577_v34  ;;  %v4867_v58 = vadd.f32 1.0, %v3622_v46  ;;  %3625 = vrcp.f32 %v4862_v22  ;;  %vm4879_vm14 = vmor %vm2619_vm12, %vm2620_vm10  ;;  %v2602_v63 = vand.u32 2147483648, %v4864_v27 }
 0x667   : > { %v2616_v15 = vsub.f32 1.0, %v2615_v53  ;;  %vm2596_vm3 = vweird.f32 %v4864_v27  ;;  %vm2601_vm6 = vcmp.eq.f32.partialorder %v2600_v48, 8.507059e+37  ;;  %vm2659_vm10 = vweird.f32 %v4862_v22 }
 0x668   : > { %v2579_v20 = vmul.f32 %v3618_v19, %v2578_v54  ;;  %3627 = vrcp.f32 %v4867_v58  ;;  %vm2634_vm2 = vweird.f32 %v4867_v58  ;;  %v2640_v29 = vand.u32 2147483648, %v4867_v58 }
 0x669   : > { %v2617_v57 = vmul.f32 %v3620_v33, %v2616_v15  ;;  %3629 = vpow2.f32 %v3208_v2  ;;  %v2638_v42 = vand.u32 2147483647, %v4867_v58  ;;  %v2603_v52 = vor.u32 1.1754944e-38, %v2602_v63 }
 0x66a   : > { %v2580_v39 = vadd.f32 %v3618_v19, %v2579_v20  ;;  %3631 = vtanh.f32 %v2562_v17  ;;  %v2641_v5 = vor.u32 1.1754944e-38, %v2640_v29 }
 0x66b   : > { %v2618_v49 = vadd.f32 %v3620_v33, %v2617_v57  ;;  %v3624_v26 = vpop.eup %3623  ;;  %3633 = vtanh.f32 %v2566_v40  ;;  %vm2639_vm8 = vcmp.eq.f32.partialorder %v2638_v42, 8.507059e+37 }
 0x66c   : > { %v4877_v21 = vpop.eup %3625  ;;  %v2584_v62 = vsel %vm4873_vm13, %v3618_v19, %v2580_v39  ;;  %v2592_v23 = vmul.f32 %v3624_v26, %v4864_v27  ;;  %vm2597_vm1 = vweird.f32 %v3624_v26 }
 0x66d   : > { %v2622_v13 = vsel %vm4879_vm14, %v3620_v33, %v2618_v49  ;;  %v2589_v12 = vsel %vm2586_vm15, %v2588_v38, %v2584_v62  ;;  %v2655_v0 = vmul.f32 %v4877_v21, %v4862_v22  ;;  %vm2598_vm5 = vmor %vm2596_vm3, %vm2597_vm1  ;;  %vm2660_vm9 = vweird.f32 %v4877_v21 }
 0x66e   : > { %v3628_v11 = vpop.eup %3627  ;;  %v2593_v31 = vsub.f32 1.0, %v2592_v23  ;;  %v2627_v25 = vsel %vm2624_vm0, %v2626_v35, %v2622_v13  ;;  %vm4908_vm12 = vmor %vm2659_vm10, %vm2660_vm9 }
 0x66f   : > { %v2630_v32 = vmul.f32 %v3628_v11, %v4867_v58  ;;  %v3630_v28 = vpop.eup %3629  ;;  %vm2635_vm4 = vweird.f32 %v3628_v11  ;;  %v2684_v47 = vmul.f32 %v2627_v25, %v4832_v7  ;;  %v2656_v59 = vsub.f32 1.0, %v2655_v0 }
 0x670   : > { %v2594_v16 = vmul.f32 %v3624_v26, %v2593_v31  ;;  %v2653_v30 = vadd.f32 1.0, %v3630_v28  ;;  %v3632_v36 = vpop.eup %3631  ;;  %vm2636_vm7 = vmor %vm2634_vm2, %vm2635_vm4  ;;  %v2665_v58 = vand.u32 2147483648, %v4862_v22 }
 0x671   : > { %v2631_v4 = vsub.f32 1.0, %v2630_v32  ;;  %v2686_v51 = vmul.f32 %v3632_v36, %v2589_v12  ;;  %v3634_v55 = vpop.eup %3633  ;;  %v2657_v19 = vmul.f32 %v4877_v21, %v2656_v59 }
 0x672   : > { %v2595_v41 = vadd.f32 %v3624_v26, %v2594_v16  ;;  %3635 = vrcp.f32 %v2653_v30  ;;  %v2680_v2 = vand.u32 2147483648, %v2653_v30  ;;  %v2678_v3 = vand.u32 2147483647, %v2653_v30 }
 0x673   : > { %v2632_v37 = vmul.f32 %v3628_v11, %v2631_v4  ;;  %v2688_v18 = vadd.f32 %v2686_v51, %v2684_v47  ;;  %v2658_v53 = vadd.f32 %v4877_v21, %v2657_v19  ;;  %vm2674_vm13 = vweird.f32 %v2653_v30 }
 0x674   : > { %v2599_v60 = vsel %vm2598_vm5, %v3624_v26, %v2595_v41  ;;  %v2666_v57 = vor.u32 1.1754944e-38, %v2665_v58  ;;  %v2681_v45 = vor.u32 1.1754944e-38, %v2680_v2  ;;  %vm2679_vm0 = vcmp.eq.f32.partialorder %v2678_v3, 8.507059e+37 }
 0x675   : > { %v2633_v1 = vadd.f32 %v3628_v11, %v2632_v37  ;;  %v2604_v6 = vsel %vm2601_vm6, %v2603_v52, %v2599_v60  ;;  %3637 = vtanh.f32 %v2688_v18  ;;  %v2662_v20 = vsel %vm4908_vm12, %v4877_v21, %v2658_v53 }
 0x676   : > { %v2687_v14 = vmul.f32 %v3634_v55, %v2604_v6 }
 0x677   : > { %v2637_v9 = vsel %vm2636_vm7, %v3628_v11, %v2633_v1 }
 0x678   : > { %v2642_v7 = vsel %vm2639_vm8, %v2641_v5, %v2637_v9  ;;  %v3636_v33 = vpop.eup %3635 }
 0x679   : > { %v2685_v27 = vmul.f32 %v2642_v7, %v4843_v10  ;;  %v2670_v46 = vmul.f32 %v3636_v33, %v2653_v30  ;;  %v2663_v10 = vand.u32 2147483647, %v4862_v22  ;;  %vm2675_vm11 = vweird.f32 %v3636_v33 }
 0x67a   : > { %vm2676_vm14 = vmor %vm2674_vm13, %vm2675_vm11 }
 0x67b   : > { %v2689_v34 = vadd.f32 %v2687_v14, %v2685_v27  ;;  %v2671_v54 = vsub.f32 1.0, %v2670_v46  ;;  %v3638_v22 = vpop.eup %3637  ;;  %vm2664_vm15 = vcmp.eq.f32.partialorder %v2663_v10, 8.507059e+37 }
 0x67c   : > { %v2667_v39 = vsel %vm2664_vm15, %v2666_v57, %v2662_v20 }
 0x67d   : > { %3639 = vtanh.f32 %v2689_v34  ;;  %v2672_v15 = vmul.f32 %v3636_v33, %v2671_v54  ;;  %v2692_v49 = vmul.f32 %v3638_v22, %v2667_v39 }
 0x67f   : > { %v2673_v50 = vadd.f32 %v3636_v33, %v2672_v15 }
 0x681   : > { %v2677_v61 = vsel %vm2676_vm14, %v3636_v33, %v2673_v50 }
 0x682   : > { %v2682_v43 = vsel %vm2679_vm0, %v2681_v45, %v2677_v61 }
 0x683   : > { %v3640_v24 = vpop.eup %3639 }
 0x684   : > { %v2693_v44 = vmul.f32 %v3640_v24, %v2682_v43 }
 0x686   : > { %v3310_v40 = vpack.c.bf16 %v2693_v44, %v2692_v49 }
 0x688   : > { %3311 = vst [vmem:[%s2697_s25] sm:$0xff] %v3310_v40  }
 0x689   : > { %3728 = shalt.err (!%p3725_p1)
}
 0x68a   : > { %s3792_s12 = smov 64   ;;  %s3793_s14 = smov 128  }
 0x68b   : > { %s3794_s27 = smov 4  }
 0x68c   : > { %3316 = dma.vmem_to_hbm [thread:$0]  (%p3871_p9), %s2725_s7, 1024, %s2727_s8, %s2705_s9, %s3792_s12, %s3793_s14, %s3794_s27  }
 0x68d PF: > { %s2741_s22 = sand.u32 1, %s3767_s15   ;;  %p3326_p2 = pnand %p2893_p12, %p3878_p11 }
 0x68e   : > { %s2742_s24 = scalar_lea.sflag [#allocation7], %s2741_s22 }
 0x68f   : > { %p3327_p3 = pneg %p3326_p2 }
 0x691   : > { %3762 = dma.done.wait (%p3327_p3), %s2742_s24, 1024  }
 0x692   : > { %3764 = vsyncadd (%p3327_p3), %s2742_s24, 4294966272  ;;  %s23_s20 = sadd.s32 1, %s3787_s20   ;;  %s4973_s15 = smov %s3771_s16 }
 0x693   : > { %p20_p4 = scmp.ge.s32.totalorder %s23_s20, 4   ;;  %s4974_s16 = smov %s3775_s17 }
 0x694   : > { %s4975_s17 = smov %s3876_s29  ;;  %s4976_s18 = smov %s3783_s19 }
 0x695   : > { %s4977_s19 = smov %s4979_s23  ;;  %22 = sbr.rel (!%p20_p4) target bundleno = 10 (0xa), region = 120 }
 0x69a   :  { %2748 = vsyncpa [#allocation6], 1 }
 0x69b   :  { %2750 = vsyncpa [#allocation6 + $0x1], 1 }
 0x69c   :  { %2751 = vsyncpa [#allocation9], 1 }
 0x69d   :  { %2753 = vsyncpa [#allocation9 + $0x1], 1 }
 0x69e   :  { %2754 = vsyncpa [#allocation7], 1 }
 0x69f   :  { %2756 = vsyncpa [#allocation7 + $0x1], 1 }

</bundles_post_ra>
